<compile_context>
chip_gen: v7x
topology: tpu7x:2x2x1
jax: 0.10.0
libtpu: 0.0.40
codegen_flags: <defaults>
</compile_context>

<pallas_src>
import functools
import math

import jax
import jax.numpy as jnp
from jax.experimental import pallas as pl
from jax.experimental.pallas import tpu as pltpu

# Above the 16/32 MiB scoped defaults, below v7x's 64 MiB physical VMEM.
VMEM_LIMIT = 48 * 1024 * 1024


# ------------------------------ tiling helpers -------------------------------

def _pick_tile(dim, target, base):
    """Largest multiple of `base` that divides `dim` and is <= target.
    If dim <= target (or nothing divides), use the full dim (always legal)."""
    if dim <= target:
        return dim
    best = None
    t = base
    while t <= target:
        if dim % t == 0:
            best = t
        t += base
    return best if best is not None else dim


# ----------------------------- linear kernels -------------------------------

def _linear_kernel(x_ref, w_ref, b_ref, o_ref, acc_ref, *, act):
    # K-accumulating tiled matmul: acc init at k==0, epilogue at k==last.
    @pl.when(pl.program_id(2) == 0)
    def _():
        acc_ref[...] = jnp.zeros_like(acc_ref)

    acc_ref[...] += jnp.dot(x_ref[...], w_ref[...],
                            preferred_element_type=jnp.float32)

    @pl.when(pl.program_id(2) == pl.num_programs(2) - 1)
    def _():
        y = acc_ref[...] + b_ref[...]
        if act == "relu":
            y = jnp.maximum(y, 0.0)
        elif act == "softmax":
            m = jnp.max(y, axis=-1, keepdims=True)
            e = jnp.exp(y - m)
            y = e / jnp.sum(e, axis=-1, keepdims=True)   # exact divide (sum-to-1)
        o_ref[...] = y.astype(o_ref.dtype)


def linear(x2d, w_t, b_row, act=None, out_dtype=jnp.bfloat16,
           *, tm=512, tn=512, tk=512):
    """x2d: (M, K) bf16; w_t: (K, N) pre-transposed bf16; b_row: (1, N) f32."""
    M, K = x2d.shape
    N = w_t.shape[1]
    tm = _pick_tile(M, tm, 16)          # bf16 packs 2 rows / sublane
    tk = _pick_tile(K, tk, 128)
    if act == "softmax":
        # softmax epilogue needs the whole output row resident in one block;
        # re-derive tm against a VMEM budget (acc + 2x f32 out + 2x bf16 x/w).
        tn = N
        budget = 24 * 1024 * 1024
        while tm > 16:
            foot = 3 * tm * N * 4 + 2 * tm * tk * 2 + 2 * tk * N * 2
            if foot <= budget:
                break
            nt = _pick_tile(M, max(tm // 2, 16), 16)
            if nt >= tm:
                break
            tm = nt
    else:
        tn = _pick_tile(N, tn, 128)
    grid = (M // tm, N // tn, K // tk)
    return pl.pallas_call(
        functools.partial(_linear_kernel, act=act),
        out_shape=jax.ShapeDtypeStruct((M, N), out_dtype),
        grid=grid,
        in_specs=[
            pl.BlockSpec((tm, tk), lambda i, j, k: (i, k)),
            pl.BlockSpec((tk, tn), lambda i, j, k: (k, j)),
            pl.BlockSpec((1, tn), lambda i, j, k: (0, j)),
        ],
        out_specs=pl.BlockSpec((tm, tn), lambda i, j, k: (i, j)),
        scratch_shapes=[pltpu.VMEM((tm, tn), jnp.float32)],
        compiler_params=pltpu.CompilerParams(
            dimension_semantics=("parallel", "parallel", "arbitrary"),
            vmem_limit_bytes=VMEM_LIMIT),
    )(x2d, w_t, b_row)


def _linear_res_ln_kernel(x_ref, r_ref, w_ref, b_ref, g_ref, be_ref,
                          o_ref, acc_ref):
    # y = LayerNorm((x @ w + b) + residual); LN math in f32, bf16 out.
    @pl.when(pl.program_id(1) == 0)
    def _():
        acc_ref[...] = jnp.zeros_like(acc_ref)

    acc_ref[...] += jnp.dot(x_ref[...], w_ref[...],
                            preferred_element_type=jnp.float32)

    @pl.when(pl.program_id(1) == pl.num_programs(1) - 1)
    def _():
        z = acc_ref[...] + b_ref[...] + r_ref[...].astype(jnp.float32)
        mu = jnp.mean(z, axis=-1, keepdims=True)
        var = jnp.mean(jnp.square(z - mu), axis=-1, keepdims=True)
        y = (z - mu) * jax.lax.rsqrt(var + 1e-5) * g_ref[...] + be_ref[...]
        o_ref[...] = y.astype(o_ref.dtype)


def linear_res_ln(x2d, res2d, w_t, b_row, gamma, beta, *, tm=512, tk=512):
    """LayerNorm(x2d @ w_t + b + res2d).  N (== dmodel) kept full-width."""
    M, K = x2d.shape
    N = w_t.shape[1]
    tm = _pick_tile(M, tm, 16)
    tk = _pick_tile(K, tk, 128)
    grid = (M // tm, K // tk)
    return pl.pallas_call(
        _linear_res_ln_kernel,
        out_shape=jax.ShapeDtypeStruct((M, N), jnp.bfloat16),
        grid=grid,
        in_specs=[
            pl.BlockSpec((tm, tk), lambda i, k: (i, k)),
            pl.BlockSpec((tm, N), lambda i, k: (i, 0)),
            pl.BlockSpec((tk, N), lambda i, k: (k, 0)),
            pl.BlockSpec((1, N), lambda i, k: (0, 0)),
            pl.BlockSpec((1, N), lambda i, k: (0, 0)),
            pl.BlockSpec((1, N), lambda i, k: (0, 0)),
        ],
        out_specs=pl.BlockSpec((tm, N), lambda i, k: (i, 0)),
        scratch_shapes=[pltpu.VMEM((tm, N), jnp.float32)],
        compiler_params=pltpu.CompilerParams(
            dimension_semantics=("parallel", "arbitrary"),
            vmem_limit_bytes=VMEM_LIMIT),
    )(x2d, res2d, w_t, b_row, gamma, beta)


# -------------------------- flash-style MHSA kernel ---------------------------

def _mhsa_kernel(valid_ref, q_ref, kv_ref, wq_ref, wk_ref, wv_ref, wo_ref,
                 bo_ref, g_ref, b_ref, o_ref,
                 qh_sc, m_sc, l_sc, acc_sc, *, h, dk, causal):
    qi = pl.program_id(1)
    ki = pl.program_id(2)
    tq = q_ref.shape[1]
    tk = kv_ref.shape[1]
    scale = 1.0 / math.sqrt(dk)

    @pl.when(ki == 0)
    def _():
        # Cache the scaled per-head Q projection for this (b, qi) tile;
        # 1/sqrt(dk) is folded in here (no (tq, tk) scale pass later).
        qh = jnp.dot(q_ref[0], wq_ref[...], preferred_element_type=jnp.float32)
        qh_sc[...] = (qh * scale).astype(jnp.bfloat16)
        m_sc[...] = jnp.full_like(m_sc, -jnp.inf)
        l_sc[...] = jnp.zeros_like(l_sc)
        acc_sc[...] = jnp.zeros_like(acc_sc)

    # Per-head K/V projections for this kv tile via block-diagonal weights
    # (K and V share the same (1, tk, D) input block -> single DMA).
    # NOTE: block-diag trick is only worthwhile while dk < 128 (true here).
    kv = kv_ref[0]
    kh = jnp.dot(kv, wk_ref[...],
                 preferred_element_type=jnp.float32).astype(jnp.bfloat16)
    vh = jnp.dot(kv, wv_ref[...],
                 preferred_element_type=jnp.float32).astype(jnp.bfloat16)
    qh = qh_sc[...]

    # Build the mask in-kernel (no (B,Sq,Sk) HBM mask tensors).
    allow = jnp.broadcast_to(valid_ref[0] != 0.0, (tq, tk))
    if causal:
        qpos = qi * tq + jax.lax.broadcasted_iota(jnp.int32, (tq, tk), 0)
        kpos = ki * tk + jax.lax.broadcasted_iota(jnp.int32, (tq, tk), 1)
        allow = jnp.logical_and(allow, kpos <= qpos)
    neg_big = jnp.float32(-1e20 * scale)     # torch masks with -1e20 pre-scale

    # Online softmax per head; context written into a lane-dense (tq, D) slab.
    # h is small & static; intermediates are bounded by (tq, tk) tiles.
    for i in range(h):
        sl = slice(i * dk, (i + 1) * dk)
        s = jax.lax.dot_general(qh[:, sl], kh[:, sl],
                                (((1,), (1,)), ((), ())),
                                preferred_element_type=jnp.float32)  # (tq, tk)
        s = jnp.where(allow, s, neg_big)
        m_prev = m_sc[:, i:i + 1]
        m_new = jnp.maximum(m_prev, jnp.max(s, axis=-1, keepdims=True))
        alpha = jnp.exp(m_prev - m_new)
        p = jnp.exp(s - m_new)
        l_sc[:, i:i + 1] = alpha * l_sc[:, i:i + 1] + jnp.sum(p, axis=-1,
                                                              keepdims=True)
        acc_sc[:, sl] = alpha * acc_sc[:, sl] + jnp.dot(
            p.astype(jnp.bfloat16), vh[:, sl], preferred_element_type=jnp.float32)
        m_sc[:, i:i + 1] = m_new

    @pl.when(ki == pl.num_programs(2) - 1)
    def _():
        # Normalize per head (EUP reciprocal), fused output projection,
        # fused residual-add + LayerNorm -> single lane-dense bf16 store.
        inv = pl.reciprocal(l_sc[...], approx=True)        # (tq, h)
        for i in range(h):
            sl = slice(i * dk, (i + 1) * dk)
            acc_sc[:, sl] = acc_sc[:, sl] * inv[:, i:i + 1]
        out = jnp.dot(acc_sc[...].astype(jnp.bfloat16), wo_ref[...],
                      preferred_element_type=jnp.float32) + bo_ref[...]
        z = out + q_ref[0].astype(jnp.float32)             # residual = query
        mu = jnp.mean(z, axis=-1, keepdims=True)
        var = jnp.mean(jnp.square(z - mu), axis=-1, keepdims=True)
        y = (z - mu) * jax.lax.rsqrt(var + 1e-5) * g_ref[...] + b_ref[...]
        o_ref[0] = y.astype(o_ref.dtype)


def mhsa_res_ln(q, kv, key_valid, p, h, causal=False, *, tq=256, tk=256):
    """LayerNorm(MHSA(q, kv, kv) + q).  q: (B,Sq,D) bf16, kv: (B,Sk,D) bf16,
    key_valid: (B,1,Sk) f32 (0 => masked key).  Output bf16."""
    B, Sq, D = q.shape
    Sk = kv.shape[1]
    dk = D // h
    tq = _pick_tile(Sq, tq, 16)
    tk = _pick_tile(Sk, tk, 16)
    grid = (B, Sq // tq, Sk // tk)
    return pl.pallas_call(
        functools.partial(_mhsa_kernel, h=h, dk=dk, causal=causal),
        out_shape=jax.ShapeDtypeStruct((B, Sq, D), jnp.bfloat16),
        grid=grid,
        in_specs=[
            pl.BlockSpec((1, 1, tk), lambda b, qi, ki: (b, 0, ki)),
            pl.BlockSpec((1, tq, D), lambda b, qi, ki: (b, qi, 0)),
            pl.BlockSpec((1, tk, D), lambda b, qi, ki: (b, ki, 0)),
            pl.BlockSpec((D, D), lambda b, qi, ki: (0, 0)),
            pl.BlockSpec((D, D), lambda b, qi, ki: (0, 0)),
            pl.BlockSpec((D, D), lambda b, qi, ki: (0, 0)),
            pl.BlockSpec((D, D), lambda b, qi, ki: (0, 0)),
            pl.BlockSpec((1, D), lambda b, qi, ki: (0, 0)),
            pl.BlockSpec((1, D), lambda b, qi, ki: (0, 0)),
            pl.BlockSpec((1, D), lambda b, qi, ki: (0, 0)),
        ],
        out_specs=pl.BlockSpec((1, tq, D), lambda b, qi, ki: (b, qi, 0)),
        scratch_shapes=[
            pltpu.VMEM((tq, D), jnp.bfloat16),   # cached scaled Q projection
            pltpu.VMEM((tq, h), jnp.float32),    # running max per head
            pltpu.VMEM((tq, h), jnp.float32),    # running sum per head
            pltpu.VMEM((tq, D), jnp.float32),    # context slab (lane-dense)
        ],
        compiler_params=pltpu.CompilerParams(
            dimension_semantics=("parallel", "parallel", "arbitrary"),
            vmem_limit_bytes=VMEM_LIMIT),
    )(key_valid, q, kv, p["wq_bd"], p["wk_bd"], p["wv_bd"], p["wo_t"], p["bo"],
      p["ln_g"], p["ln_b"])


# ------------------------------- model glue ---------------------------------

def encoder_block(q, kv, key_valid, p, h):
    # attention + residual + ln1 fused; dropout == identity (eval).
    x = mhsa_res_ln(q, kv, key_valid, p["attn"], h, causal=False)
    B, S, D = x.shape
    x2 = x.reshape(B * S, D)
    hid = linear(x2, p["w1_t"], p["b1"], act="relu")                 # bf16 hidden
    y = linear_res_ln(hid, x2, p["w2_t"], p["b2"], p["ln2_g"], p["ln2_b"])
    return y.reshape(B, S, D)                                        # dropout == identity


def decoder_block(x, enc_out, tgt_valid, src_valid, p, h):
    # masked self-attention + residual + ln fused; dropout == identity (eval).
    query = mhsa_res_ln(x, x, tgt_valid, p["mattn"], h, causal=True)
    return encoder_block(query, enc_out, src_valid, p["enc"], h)


def transformer_forward(params, src, tgt, *, pad_token, h):
    B, S_src = src.shape
    _, S_tgt = tgt.shape

    # tiny per-key validity vectors (masks themselves are built in-kernel)
    src_valid = (src != pad_token).astype(jnp.float32).reshape(B, 1, S_src)
    tgt_valid = jnp.ones((B, 1, S_tgt), jnp.float32)   # decoder self-attn: causal only

    # encoder (embedding tables are bf16 -> bf16 activation stream, no casts)
    x = params["enc_emb"][src] + params["enc_pos"][:S_src][None, :, :]
    for p in params["enc_layers"]:
        x = encoder_block(x, x, src_valid, p, h)
    enc_out = x

    # decoder
    y = params["dec_emb"][tgt] + params["dec_pos"][:S_tgt][None, :, :]
    for p in params["dec_layers"]:
        y = decoder_block(y, enc_out, tgt_valid, src_valid, p, h)

    # vocab projection with softmax fused into the kernel epilogue (f32, exact)
    D = y.shape[-1]
    probs = linear(y.reshape(B * S_tgt, D), params["out_w_t"], params["out_b"],
                   act="softmax", out_dtype=jnp.float32)
    return probs.reshape(B, S_tgt, -1)


# ------------------------------ parameter init -------------------------------

def init_params(key, src_vocab, tgt_vocab, max_length, D, h, expand, n_layers):
    keys = iter(jax.random.split(key, 8 + n_layers * 32))
    dk = D // h

    def nrm(shape):
        return (0.02 * jax.random.normal(next(keys), shape)).astype(jnp.float32)

    def emb(shape):
        return nrm(shape).astype(jnp.bfloat16)

    def lin(in_f, out_f):
        # torch Linear weight is (out, in); store pre-transposed (in, out) bf16
        w = nrm((out_f, in_f))
        return w.T.astype(jnp.bfloat16), jnp.zeros((1, out_f), jnp.float32)

    def head_block_diag():
        # torch wq/wk/wv: single Linear(dk, dk, bias=False) shared across heads.
        w = nrm((dk, dk))
        return jnp.kron(jnp.eye(h, dtype=jnp.float32), w.T).astype(jnp.bfloat16)

    def attn_params():
        wo_t, bo = lin(D, D)
        return dict(wq_bd=head_block_diag(), wk_bd=head_block_diag(),
                    wv_bd=head_block_diag(), wo_t=wo_t, bo=bo,
                    ln_g=jnp.ones((1, D), jnp.float32),
                    ln_b=jnp.zeros((1, D), jnp.float32))

    def enc_block_params():
        w1_t, b1 = lin(D, D * expand)
        w2_t, b2 = lin(D * expand, D)
        return dict(attn=attn_params(),        # attn["ln_*"] == ln1
                    w1_t=w1_t, b1=b1, w2_t=w2_t, b2=b2,
                    ln2_g=jnp.ones((1, D), jnp.float32),
                    ln2_b=jnp.zeros((1, D), jnp.float32))

    def dec_block_params():
        return dict(mattn=attn_params(),       # mattn["ln_*"] == decoder ln
                    enc=enc_block_params())

    out_w_t, out_b = lin(D, tgt_vocab)
    return dict(
        enc_emb=emb((src_vocab, D)), enc_pos=emb((max_length, D)),
        dec_emb=emb((tgt_vocab, D)), dec_pos=emb((max_length, D)),
        enc_layers=[enc_block_params() for _ in range(n_layers)],
        dec_layers=[dec_block_params() for _ in range(n_layers)],
        out_w_t=out_w_t, out_b=out_b)


# ---------------------------------- main -------------------------------------

if __name__ == "__main__":
    # small, deterministic config
    SRC_VOCAB, TGT_VOCAB = 16, 16
    PAD_TOKEN = -1           # module default
    D_MODEL, H, EXPAND = 32, 4, 4
    N_LAYERS = 2
    MAX_LEN = 16
    B, S_SRC, S_TGT = 2, 8, 8

    key = jax.random.PRNGKey(0)
    k_param, k_src, k_tgt = jax.random.split(key, 3)
    params = init_params(k_param, SRC_VOCAB, TGT_VOCAB, MAX_LEN,
                         D_MODEL, H, EXPAND, N_LAYERS)

    src = jax.random.randint(k_src, (B, S_SRC), 0, SRC_VOCAB, dtype=jnp.int32)
    tgt = jax.random.randint(k_tgt, (B, S_TGT), 0, TGT_VOCAB, dtype=jnp.int32)

    fwd = jax.jit(functools.partial(transformer_forward, pad_token=PAD_TOKEN, h=H))
    out = fwd(params, src, tgt)
    out = jax.block_until_ready(out)

    assert out.shape == (B, S_TGT, TGT_VOCAB)
    assert bool(jnp.all(jnp.isfinite(out)))
    # rows of the final (fused, exact) softmax must sum to 1
    assert bool(jnp.allclose(jnp.sum(out, axis=-1), 1.0, atol=1e-5))
    print("KERNEL_OK")
</pallas_src>

<mosaic_0001>
module attributes {stable_mosaic.version = 11 : i64} {
  func.func @_linear_kernel(%arg0: i32, %arg1: i32, %arg2: i32, %arg3: memref<16x32xbf16, #tpu.memory_space<vmem>>, %arg4: memref<32x128xbf16, #tpu.memory_space<vmem>>, %arg5: memref<1x128xf32, #tpu.memory_space<vmem>>, %arg6: memref<16x128xbf16, #tpu.memory_space<vmem>>, %arg7: memref<16x128xf32, #tpu.memory_space<vmem>>) attributes {dimension_semantics = [#tpu.dimension_semantics<parallel>, #tpu.dimension_semantics<parallel>, #tpu.dimension_semantics<arbitrary>], iteration_bounds = array<i64: 1, 1, 1>, scalar_prefetch = 0 : i64, scratch_operands = 1 : i64, tpu.core_type = #tpu.core_type<tc>, window_params = [{transform_indices = @transform_0, window_bounds = array<i64: 16, 32>}, {transform_indices = @transform_1, window_bounds = array<i64: 32, 128>}, {transform_indices = @transform_2, window_bounds = array<i64: 1, 128>}, {transform_indices = @transform_3, window_bounds = array<i64: 16, 128>}]} {
    %c0_i32 = arith.constant 0 : i32
    %0 = arith.cmpi eq, %arg2, %c0_i32 : i32
    %1 = arith.extui %0 : i1 to i32
    %c0_i32_0 = arith.constant 0 : i32
    %2 = arith.cmpi ne, %1, %c0_i32_0 : i32
    scf.if %2 {
      %cst_10 = arith.constant 0.000000e+00 : f32
      %12 = vector.broadcast %cst_10 : f32 to vector<16x128xf32>
      %c0_11 = arith.constant 0 : index
      %c0_12 = arith.constant 0 : index
      %13 = vector.load %arg7[%c0_11, %c0_12] : memref<16x128xf32, #tpu.memory_space<vmem>>, vector<16x128xf32>
      tpu.vector_store %arg7[%c0_11, %c0_12], %12 {strides = array<i32>} : memref<16x128xf32, #tpu.memory_space<vmem>>, vector<16x128xf32>,
    } else {
    }
    %c0 = arith.constant 0 : index
    %c0_1 = arith.constant 0 : index
    %3 = vector.load %arg7[%c0, %c0_1] : memref<16x128xf32, #tpu.memory_space<vmem>>, vector<16x128xf32>
    %c0_2 = arith.constant 0 : index
    %c0_3 = arith.constant 0 : index
    %4 = vector.load %arg3[%c0_2, %c0_3] : memref<16x32xbf16, #tpu.memory_space<vmem>>, vector<16x32xbf16>
    %c0_4 = arith.constant 0 : index
    %c0_5 = arith.constant 0 : index
    %5 = vector.load %arg4[%c0_4, %c0_5] : memref<32x128xbf16, #tpu.memory_space<vmem>>, vector<32x128xbf16>
    %cst = arith.constant dense<0.000000e+00> : vector<16x128xf32>
    %6 = tpu.matmul %4, %5, %cst {dimension_numbers = #tpu.dot_dimension_numbers<[1], [0], [0], [1], [0, 0, 1, 1], [], []>} : vector<16x32xbf16>, vector<32x128xbf16>, vector<16x128xf32> -> vector<16x128xf32>
    %7 = arith.addf %3, %6 : vector<16x128xf32>
    %c0_6 = arith.constant 0 : index
    %c0_7 = arith.constant 0 : index
    %8 = vector.load %arg7[%c0_6, %c0_7] : memref<16x128xf32, #tpu.memory_space<vmem>>, vector<16x128xf32>
    tpu.vector_store %arg7[%c0_6, %c0_7], %7 {strides = array<i32>} : memref<16x128xf32, #tpu.memory_space<vmem>>, vector<16x128xf32>,
    %c0_i32_8 = arith.constant 0 : i32
    %9 = arith.cmpi eq, %arg2, %c0_i32_8 : i32
    %10 = arith.extui %9 : i1 to i32
    %c0_i32_9 = arith.constant 0 : i32
    %11 = arith.cmpi ne, %10, %c0_i32_9 : i32
    scf.if %11 {
      %c0_10 = arith.constant 0 : index
      %c0_11 = arith.constant 0 : index
      %12 = vector.load %arg7[%c0_10, %c0_11] : memref<16x128xf32, #tpu.memory_space<vmem>>, vector<16x128xf32>
      %c0_12 = arith.constant 0 : index
      %c0_13 = arith.constant 0 : index
      %13 = vector.load %arg5[%c0_12, %c0_13] : memref<1x128xf32, #tpu.memory_space<vmem>>, vector<1x128xf32>
      %14 = vector.broadcast %13 : vector<1x128xf32> to vector<16x128xf32>
      %15 = arith.addf %12, %14 : vector<16x128xf32>
      %cst_14 = arith.constant 0.000000e+00 : f32
      %16 = vector.broadcast %cst_14 : f32 to vector<16x128xf32>
      %17 = arith.maximumf %15, %16 : vector<16x128xf32>
      %18 = arith.truncf %17 : vector<16x128xf32> to vector<16x128xbf16>
      %c0_15 = arith.constant 0 : index
      %c0_16 = arith.constant 0 : index
      %19 = vector.load %arg6[%c0_15, %c0_16] : memref<16x128xbf16, #tpu.memory_space<vmem>>, vector<16x128xbf16>
      tpu.vector_store %arg6[%c0_15, %c0_16], %18 {strides = array<i32>} : memref<16x128xbf16, #tpu.memory_space<vmem>>, vector<16x128xbf16>,
    } else {
    }
    return
  }
  func.func @transform_0(%arg0: i32, %arg1: i32, %arg2: i32) -> (i32, i32) {
    %c0_i32 = arith.constant 0 : i32
    return %arg0, %arg2 : i32, i32
  }
  func.func @transform_1(%arg0: i32, %arg1: i32, %arg2: i32) -> (i32, i32) {
    %c0_i32 = arith.constant 0 : i32
    return %arg2, %arg1 : i32, i32
  }
  func.func @transform_2(%arg0: i32, %arg1: i32, %arg2: i32) -> (i32, i32) {
    %c0_i32 = arith.constant 0 : i32
    %c0_i32_0 = arith.constant 0 : i32
    return %c0_i32, %arg1 : i32, i32
  }
  func.func @transform_3(%arg0: i32, %arg1: i32, %arg2: i32) -> (i32, i32) {
    %c0_i32 = arith.constant 0 : i32
    return %arg0, %arg1 : i32, i32
  }
}

module attributes {stable_mosaic.version = 11 : i64} {
  func.func @_mhsa_kernel(%arg0: i32, %arg1: i32, %arg2: i32, %arg3: memref<1x1x8xf32, #tpu.memory_space<vmem>>, %arg4: memref<1x8x32xbf16, #tpu.memory_space<vmem>>, %arg5: memref<1x8x32xbf16, #tpu.memory_space<vmem>>, %arg6: memref<32x32xbf16, #tpu.memory_space<vmem>>, %arg7: memref<32x32xbf16, #tpu.memory_space<vmem>>, %arg8: memref<32x32xbf16, #tpu.memory_space<vmem>>, %arg9: memref<32x32xbf16, #tpu.memory_space<vmem>>, %arg10: memref<1x32xf32, #tpu.memory_space<vmem>>, %arg11: memref<1x32xf32, #tpu.memory_space<vmem>>, %arg12: memref<1x32xf32, #tpu.memory_space<vmem>>, %arg13: memref<1x8x32xbf16, #tpu.memory_space<vmem>>, %arg14: memref<8x32xbf16, #tpu.memory_space<vmem>>, %arg15: memref<8x4xf32, #tpu.memory_space<vmem>>, %arg16: memref<8x4xf32, #tpu.memory_space<vmem>>, %arg17: memref<8x32xf32, #tpu.memory_space<vmem>>) attributes {dimension_semantics = [#tpu.dimension_semantics<parallel>, #tpu.dimension_semantics<parallel>, #tpu.dimension_semantics<arbitrary>], iteration_bounds = array<i64: 2, 1, 1>, scalar_prefetch = 0 : i64, scratch_operands = 4 : i64, tpu.core_type = #tpu.core_type<tc>, window_params = [{transform_indices = @transform_0, window_bounds = array<i64: 1, 1, 8>}, {transform_indices = @transform_1, window_bounds = array<i64: 1, 8, 32>}, {transform_indices = @transform_2, window_bounds = array<i64: 1, 8, 32>}, {pipeline_mode = #tpu.pipeline_mode<synchronous>, transform_indices = @transform_3, window_bounds = array<i64: 32, 32>}, {pipeline_mode = #tpu.pipeline_mode<synchronous>, transform_indices = @transform_4, window_bounds = array<i64: 32, 32>}, {pipeline_mode = #tpu.pipeline_mode<synchronous>, transform_indices = @transform_5, window_bounds = array<i64: 32, 32>}, {pipeline_mode = #tpu.pipeline_mode<synchronous>, transform_indices = @transform_6, window_bounds = array<i64: 32, 32>}, {pipeline_mode = #tpu.pipeline_mode<synchronous>, transform_indices = @transform_7, window_bounds = array<i64: 1, 32>}, {pipeline_mode = #tpu.pipeline_mode<synchronous>, transform_indices = @transform_8, window_bounds = array<i64: 1, 32>}, {pipeline_mode = #tpu.pipeline_mode<synchronous>, transform_indices = @transform_9, window_bounds = array<i64: 1, 32>}, {transform_indices = @transform_10, window_bounds = array<i64: 1, 8, 32>}]} {
    %c0_i32 = arith.constant 0 : i32
    %0 = arith.cmpi eq, %arg2, %c0_i32 : i32
    %1 = arith.extui %0 : i1 to i32
    %c0_i32_0 = arith.constant 0 : i32
    %2 = arith.cmpi ne, %1, %c0_i32_0 : i32
    scf.if %2 {
      %c0_78 = arith.constant 0 : index
      %c0_79 = arith.constant 0 : index
      %c0_80 = arith.constant 0 : index
      %137 = vector.load %arg4[%c0_78, %c0_79, %c0_80] : memref<1x8x32xbf16, #tpu.memory_space<vmem>>, vector<1x8x32xbf16>
      %138 = vector.shape_cast %137 : vector<1x8x32xbf16> to vector<8x32xbf16>
      %c0_81 = arith.constant 0 : index
      %c0_82 = arith.constant 0 : index
      %139 = vector.load %arg6[%c0_81, %c0_82] : memref<32x32xbf16, #tpu.memory_space<vmem>>, vector<32x32xbf16>
      %cst_83 = arith.constant dense<0.000000e+00> : vector<8x32xf32>
      %140 = tpu.matmul %138, %139, %cst_83 {dimension_numbers = #tpu.dot_dimension_numbers<[1], [0], [0], [1], [0, 0, 1, 1], [], []>} : vector<8x32xbf16>, vector<32x32xbf16>, vector<8x32xf32> -> vector<8x32xf32>
      %cst_84 = arith.constant 0.353553385 : f32
      %141 = vector.broadcast %cst_84 : f32 to vector<8x32xf32>
      %142 = arith.mulf %140, %141 : vector<8x32xf32>
      %143 = arith.truncf %142 : vector<8x32xf32> to vector<8x32xbf16>
      %c0_85 = arith.constant 0 : index
      %c0_86 = arith.constant 0 : index
      %144 = vector.load %arg14[%c0_85, %c0_86] : memref<8x32xbf16, #tpu.memory_space<vmem>>, vector<8x32xbf16>
      tpu.vector_store %arg14[%c0_85, %c0_86], %143 {strides = array<i32>} : memref<8x32xbf16, #tpu.memory_space<vmem>>, vector<8x32xbf16>,
      %cst_87 = arith.constant 0xFF800000 : f32
      %145 = vector.broadcast %cst_87 : f32 to vector<8x4xf32>
      %c0_88 = arith.constant 0 : index
      %c0_89 = arith.constant 0 : index
      %146 = vector.load %arg15[%c0_88, %c0_89] : memref<8x4xf32, #tpu.memory_space<vmem>>, vector<8x4xf32>
      tpu.vector_store %arg15[%c0_88, %c0_89], %145 {strides = array<i32>} : memref<8x4xf32, #tpu.memory_space<vmem>>, vector<8x4xf32>,
      %cst_90 = arith.constant 0.000000e+00 : f32
      %147 = vector.broadcast %cst_90 : f32 to vector<8x4xf32>
      %c0_91 = arith.constant 0 : index
      %c0_92 = arith.constant 0 : index
      %148 = vector.load %arg16[%c0_91, %c0_92] : memref<8x4xf32, #tpu.memory_space<vmem>>, vector<8x4xf32>
      tpu.vector_store %arg16[%c0_91, %c0_92], %147 {strides = array<i32>} : memref<8x4xf32, #tpu.memory_space<vmem>>, vector<8x4xf32>,
      %cst_93 = arith.constant 0.000000e+00 : f32
      %149 = vector.broadcast %cst_93 : f32 to vector<8x32xf32>
      %c0_94 = arith.constant 0 : index
      %c0_95 = arith.constant 0 : index
      %150 = vector.load %arg17[%c0_94, %c0_95] : memref<8x32xf32, #tpu.memory_space<vmem>>, vector<8x32xf32>
      tpu.vector_store %arg17[%c0_94, %c0_95], %149 {strides = array<i32>} : memref<8x32xf32, #tpu.memory_space<vmem>>, vector<8x32xf32>,
    } else {
    }
    %c0 = arith.constant 0 : index
    %c0_1 = arith.constant 0 : index
    %c0_2 = arith.constant 0 : index
    %3 = vector.load %arg5[%c0, %c0_1, %c0_2] : memref<1x8x32xbf16, #tpu.memory_space<vmem>>, vector<1x8x32xbf16>
    %4 = vector.shape_cast %3 : vector<1x8x32xbf16> to vector<8x32xbf16>
    %c0_3 = arith.constant 0 : index
    %c0_4 = arith.constant 0 : index
    %5 = vector.load %arg7[%c0_3, %c0_4] : memref<32x32xbf16, #tpu.memory_space<vmem>>, vector<32x32xbf16>
    %cst = arith.constant dense<0.000000e+00> : vector<8x32xf32>
    %6 = tpu.matmul %4, %5, %cst {dimension_numbers = #tpu.dot_dimension_numbers<[1], [0], [0], [1], [0, 0, 1, 1], [], []>} : vector<8x32xbf16>, vector<32x32xbf16>, vector<8x32xf32> -> vector<8x32xf32>
    %7 = arith.truncf %6 : vector<8x32xf32> to vector<8x32xbf16>
    %c0_5 = arith.constant 0 : index
    %c0_6 = arith.constant 0 : index
    %8 = vector.load %arg8[%c0_5, %c0_6] : memref<32x32xbf16, #tpu.memory_space<vmem>>, vector<32x32xbf16>
    %cst_7 = arith.constant dense<0.000000e+00> : vector<8x32xf32>
    %9 = tpu.matmul %4, %8, %cst_7 {dimension_numbers = #tpu.dot_dimension_numbers<[1], [0], [0], [1], [0, 0, 1, 1], [], []>} : vector<8x32xbf16>, vector<32x32xbf16>, vector<8x32xf32> -> vector<8x32xf32>
    %10 = arith.truncf %9 : vector<8x32xf32> to vector<8x32xbf16>
    %c0_8 = arith.constant 0 : index
    %c0_9 = arith.constant 0 : index
    %11 = vector.load %arg14[%c0_8, %c0_9] : memref<8x32xbf16, #tpu.memory_space<vmem>>, vector<8x32xbf16>
    %c0_10 = arith.constant 0 : index
    %c0_11 = arith.constant 0 : index
    %c0_12 = arith.constant 0 : index
    %12 = vector.load %arg3[%c0_10, %c0_11, %c0_12] : memref<1x1x8xf32, #tpu.memory_space<vmem>>, vector<1x1x8xf32>
    %13 = vector.shape_cast %12 : vector<1x1x8xf32> to vector<1x8xf32>
    %cst_13 = arith.constant 0.000000e+00 : f32
    %14 = vector.broadcast %cst_13 : f32 to vector<1x8xf32>
    %15 = arith.cmpf one, %13, %14 : vector<1x8xf32>
    %16 = vector.shape_cast %15 : vector<1x8xi1> to vector<1x8xi1>
    %17 = vector.broadcast %16 : vector<1x8xi1> to vector<8x8xi1>
    %18 = vector.extract_strided_slice %11 {offsets = [0, 0], sizes = [8, 8], strides = [1, 1]} : vector<8x32xbf16> to vector<8x8xbf16>
    %19 = vector.extract_strided_slice %7 {offsets = [0, 0], sizes = [8, 8], strides = [1, 1]} : vector<8x32xbf16> to vector<8x8xbf16>
    %cst_14 = arith.constant dense<0.000000e+00> : vector<8x8xf32>
    %20 = tpu.matmul %18, %19, %cst_14 {dimension_numbers = #tpu.dot_dimension_numbers<[1], [1], [0], [0], [0, 0, 1, 0], [], []>} : vector<8x8xbf16>, vector<8x8xbf16>, vector<8x8xf32> -> vector<8x8xf32>
    %cst_15 = arith.constant -3.53553395E+19 : f32
    %21 = vector.broadcast %cst_15 : f32 to vector<8x8xf32>
    %22 = arith.select %17, %20, %21 : vector<8x8xi1>, vector<8x8xf32>
    %c0_16 = arith.constant 0 : index
    %c0_17 = arith.constant 0 : index
    %23 = vector.load %arg15[%c0_16, %c0_17] : memref<8x4xf32, #tpu.memory_space<vmem>>, vector<8x1xf32>
    %cst_18 = arith.constant dense<0xFF800000> : vector<8xf32>
    %24 = vector.multi_reduction <maximumf>, %22, %cst_18 [1] : vector<8x8xf32> to vector<8xf32>
    %25 = vector.shape_cast %24 : vector<8xf32> to vector<8x1xf32>
    %26 = arith.maximumf %23, %25 : vector<8x1xf32>
    %27 = arith.subf %23, %26 : vector<8x1xf32>
    %28 = math.exp %27 : vector<8x1xf32>
    %29 = vector.broadcast %26 : vector<8x1xf32> to vector<8x8xf32>
    %30 = arith.subf %22, %29 : vector<8x8xf32>
    %31 = math.exp %30 : vector<8x8xf32>
    %c0_19 = arith.constant 0 : index
    %c0_20 = arith.constant 0 : index
    %32 = vector.load %arg16[%c0_19, %c0_20] : memref<8x4xf32, #tpu.memory_space<vmem>>, vector<8x1xf32>
    %33 = arith.mulf %28, %32 : vector<8x1xf32>
    %cst_21 = arith.constant dense<0.000000e+00> : vector<8xf32>
    %34 = vector.multi_reduction <add>, %31, %cst_21 [1] : vector<8x8xf32> to vector<8xf32>
    %35 = vector.shape_cast %34 : vector<8xf32> to vector<8x1xf32>
    %36 = arith.addf %33, %35 : vector<8x1xf32>
    %c0_22 = arith.constant 0 : index
    %c0_23 = arith.constant 0 : index
    %37 = vector.load %arg16[%c0_22, %c0_23] : memref<8x4xf32, #tpu.memory_space<vmem>>, vector<8x1xf32>
    tpu.vector_store %arg16[%c0_22, %c0_23], %36 {strides = array<i32>} : memref<8x4xf32, #tpu.memory_space<vmem>>, vector<8x1xf32>,
    %c0_24 = arith.constant 0 : index
    %c0_25 = arith.constant 0 : index
    %38 = vector.load %arg17[%c0_24, %c0_25] : memref<8x32xf32, #tpu.memory_space<vmem>>, vector<8x8xf32>
    %39 = vector.broadcast %28 : vector<8x1xf32> to vector<8x8xf32>
    %40 = arith.mulf %39, %38 : vector<8x8xf32>
    %41 = arith.truncf %31 : vector<8x8xf32> to vector<8x8xbf16>
    %42 = vector.extract_strided_slice %10 {offsets = [0, 0], sizes = [8, 8], strides = [1, 1]} : vector<8x32xbf16> to vector<8x8xbf16>
    %cst_26 = arith.constant dense<0.000000e+00> : vector<8x8xf32>
    %43 = tpu.matmul %41, %42, %cst_26 {dimension_numbers = #tpu.dot_dimension_numbers<[1], [0], [0], [1], [0, 0, 1, 1], [], []>} : vector<8x8xbf16>, vector<8x8xbf16>, vector<8x8xf32> -> vector<8x8xf32>
    %44 = arith.addf %40, %43 : vector<8x8xf32>
    %c0_27 = arith.constant 0 : index
    %c0_28 = arith.constant 0 : index
    %45 = vector.load %arg17[%c0_27, %c0_28] : memref<8x32xf32, #tpu.memory_space<vmem>>, vector<8x8xf32>
    tpu.vector_store %arg17[%c0_27, %c0_28], %44 {strides = array<i32>} : memref<8x32xf32, #tpu.memory_space<vmem>>, vector<8x8xf32>,
    %c0_29 = arith.constant 0 : index
    %c0_30 = arith.constant 0 : index
    %46 = vector.load %arg15[%c0_29, %c0_30] : memref<8x4xf32, #tpu.memory_space<vmem>>, vector<8x1xf32>
    tpu.vector_store %arg15[%c0_29, %c0_30], %26 {strides = array<i32>} : memref<8x4xf32, #tpu.memory_space<vmem>>, vector<8x1xf32>,
    %47 = vector.extract_strided_slice %11 {offsets = [0, 8], sizes = [8, 8], strides = [1, 1]} : vector<8x32xbf16> to vector<8x8xbf16>
    %48 = vector.extract_strided_slice %7 {offsets = [0, 8], sizes = [8, 8], strides = [1, 1]} : vector<8x32xbf16> to vector<8x8xbf16>
    %cst_31 = arith.constant dense<0.000000e+00> : vector<8x8xf32>
    %49 = tpu.matmul %47, %48, %cst_31 {dimension_numbers = #tpu.dot_dimension_numbers<[1], [1], [0], [0], [0, 0, 1, 0], [], []>} : vector<8x8xbf16>, vector<8x8xbf16>, vector<8x8xf32> -> vector<8x8xf32>
    %cst_32 = arith.constant -3.53553395E+19 : f32
    %50 = vector.broadcast %cst_32 : f32 to vector<8x8xf32>
    %51 = arith.select %17, %49, %50 : vector<8x8xi1>, vector<8x8xf32>
    %c0_33 = arith.constant 0 : index
    %c1 = arith.constant 1 : index
    %52 = vector.load %arg15[%c0_33, %c1] : memref<8x4xf32, #tpu.memory_space<vmem>>, vector<8x1xf32>
    %cst_34 = arith.constant dense<0xFF800000> : vector<8xf32>
    %53 = vector.multi_reduction <maximumf>, %51, %cst_34 [1] : vector<8x8xf32> to vector<8xf32>
    %54 = vector.shape_cast %53 : vector<8xf32> to vector<8x1xf32>
    %55 = arith.maximumf %52, %54 : vector<8x1xf32>
    %56 = arith.subf %52, %55 : vector<8x1xf32>
    %57 = math.exp %56 : vector<8x1xf32>
    %58 = vector.broadcast %55 : vector<8x1xf32> to vector<8x8xf32>
    %59 = arith.subf %51, %58 : vector<8x8xf32>
    %60 = math.exp %59 : vector<8x8xf32>
    %c0_35 = arith.constant 0 : index
    %c1_36 = arith.constant 1 : index
    %61 = vector.load %arg16[%c0_35, %c1_36] : memref<8x4xf32, #tpu.memory_space<vmem>>, vector<8x1xf32>
    %62 = arith.mulf %57, %61 : vector<8x1xf32>
    %cst_37 = arith.constant dense<0.000000e+00> : vector<8xf32>
    %63 = vector.multi_reduction <add>, %60, %cst_37 [1] : vector<8x8xf32> to vector<8xf32>
    %64 = vector.shape_cast %63 : vector<8xf32> to vector<8x1xf32>
    %65 = arith.addf %62, %64 : vector<8x1xf32>
    %c0_38 = arith.constant 0 : index
    %c1_39 = arith.constant 1 : index
    %66 = vector.load %arg16[%c0_38, %c1_39] : memref<8x4xf32, #tpu.memory_space<vmem>>, vector<8x1xf32>
    tpu.vector_store %arg16[%c0_38, %c1_39], %65 {strides = array<i32>} : memref<8x4xf32, #tpu.memory_space<vmem>>, vector<8x1xf32>,
    %c0_40 = arith.constant 0 : index
    %c8 = arith.constant 8 : index
    %67 = vector.load %arg17[%c0_40, %c8] : memref<8x32xf32, #tpu.memory_space<vmem>>, vector<8x8xf32>
    %68 = vector.broadcast %57 : vector<8x1xf32> to vector<8x8xf32>
    %69 = arith.mulf %68, %67 : vector<8x8xf32>
    %70 = arith.truncf %60 : vector<8x8xf32> to vector<8x8xbf16>
    %71 = vector.extract_strided_slice %10 {offsets = [0, 8], sizes = [8, 8], strides = [1, 1]} : vector<8x32xbf16> to vector<8x8xbf16>
    %cst_41 = arith.constant dense<0.000000e+00> : vector<8x8xf32>
    %72 = tpu.matmul %70, %71, %cst_41 {dimension_numbers = #tpu.dot_dimension_numbers<[1], [0], [0], [1], [0, 0, 1, 1], [], []>} : vector<8x8xbf16>, vector<8x8xbf16>, vector<8x8xf32> -> vector<8x8xf32>
    %73 = arith.addf %69, %72 : vector<8x8xf32>
    %c0_42 = arith.constant 0 : index
    %c8_43 = arith.constant 8 : index
    %74 = vector.load %arg17[%c0_42, %c8_43] : memref<8x32xf32, #tpu.memory_space<vmem>>, vector<8x8xf32>
    tpu.vector_store %arg17[%c0_42, %c8_43], %73 {strides = array<i32>} : memref<8x32xf32, #tpu.memory_space<vmem>>, vector<8x8xf32>,
    %c0_44 = arith.constant 0 : index
    %c1_45 = arith.constant 1 : index
    %75 = vector.load %arg15[%c0_44, %c1_45] : memref<8x4xf32, #tpu.memory_space<vmem>>, vector<8x1xf32>
    tpu.vector_store %arg15[%c0_44, %c1_45], %55 {strides = array<i32>} : memref<8x4xf32, #tpu.memory_space<vmem>>, vector<8x1xf32>,
    %76 = vector.extract_strided_slice %11 {offsets = [0, 16], sizes = [8, 8], strides = [1, 1]} : vector<8x32xbf16> to vector<8x8xbf16>
    %77 = vector.extract_strided_slice %7 {offsets = [0, 16], sizes = [8, 8], strides = [1, 1]} : vector<8x32xbf16> to vector<8x8xbf16>
    %cst_46 = arith.constant dense<0.000000e+00> : vector<8x8xf32>
    %78 = tpu.matmul %76, %77, %cst_46 {dimension_numbers = #tpu.dot_dimension_numbers<[1], [1], [0], [0], [0, 0, 1, 0], [], []>} : vector<8x8xbf16>, vector<8x8xbf16>, vector<8x8xf32> -> vector<8x8xf32>
    %cst_47 = arith.constant -3.53553395E+19 : f32
    %79 = vector.broadcast %cst_47 : f32 to vector<8x8xf32>
    %80 = arith.select %17, %78, %79 : vector<8x8xi1>, vector<8x8xf32>
    %c0_48 = arith.constant 0 : index
    %c2 = arith.constant 2 : index
    %81 = vector.load %arg15[%c0_48, %c2] : memref<8x4xf32, #tpu.memory_space<vmem>>, vector<8x1xf32>
    %cst_49 = arith.constant dense<0xFF800000> : vector<8xf32>
    %82 = vector.multi_reduction <maximumf>, %80, %cst_49 [1] : vector<8x8xf32> to vector<8xf32>
    %83 = vector.shape_cast %82 : vector<8xf32> to vector<8x1xf32>
    %84 = arith.maximumf %81, %83 : vector<8x1xf32>
    %85 = arith.subf %81, %84 : vector<8x1xf32>
    %86 = math.exp %85 : vector<8x1xf32>
    %87 = vector.broadcast %84 : vector<8x1xf32> to vector<8x8xf32>
    %88 = arith.subf %80, %87 : vector<8x8xf32>
    %89 = math.exp %88 : vector<8x8xf32>
    %c0_50 = arith.constant 0 : index
    %c2_51 = arith.constant 2 : index
    %90 = vector.load %arg16[%c0_50, %c2_51] : memref<8x4xf32, #tpu.memory_space<vmem>>, vector<8x1xf32>
    %91 = arith.mulf %86, %90 : vector<8x1xf32>
    %cst_52 = arith.constant dense<0.000000e+00> : vector<8xf32>
    %92 = vector.multi_reduction <add>, %89, %cst_52 [1] : vector<8x8xf32> to vector<8xf32>
    %93 = vector.shape_cast %92 : vector<8xf32> to vector<8x1xf32>
    %94 = arith.addf %91, %93 : vector<8x1xf32>
    %c0_53 = arith.constant 0 : index
    %c2_54 = arith.constant 2 : index
    %95 = vector.load %arg16[%c0_53, %c2_54] : memref<8x4xf32, #tpu.memory_space<vmem>>, vector<8x1xf32>
    tpu.vector_store %arg16[%c0_53, %c2_54], %94 {strides = array<i32>} : memref<8x4xf32, #tpu.memory_space<vmem>>, vector<8x1xf32>,
    %c0_55 = arith.constant 0 : index
    %c16 = arith.constant 16 : index
    %96 = vector.load %arg17[%c0_55, %c16] : memref<8x32xf32, #tpu.memory_space<vmem>>, vector<8x8xf32>
    %97 = vector.broadcast %86 : vector<8x1xf32> to vector<8x8xf32>
    %98 = arith.mulf %97, %96 : vector<8x8xf32>
    %99 = arith.truncf %89 : vector<8x8xf32> to vector<8x8xbf16>
    %100 = vector.extract_strided_slice %10 {offsets = [0, 16], sizes = [8, 8], strides = [1, 1]} : vector<8x32xbf16> to vector<8x8xbf16>
    %cst_56 = arith.constant dense<0.000000e+00> : vector<8x8xf32>
    %101 = tpu.matmul %99, %100, %cst_56 {dimension_numbers = #tpu.dot_dimension_numbers<[1], [0], [0], [1], [0, 0, 1, 1], [], []>} : vector<8x8xbf16>, vector<8x8xbf16>, vector<8x8xf32> -> vector<8x8xf32>
    %102 = arith.addf %98, %101 : vector<8x8xf32>
    %c0_57 = arith.constant 0 : index
    %c16_58 = arith.constant 16 : index
    %103 = vector.load %arg17[%c0_57, %c16_58] : memref<8x32xf32, #tpu.memory_space<vmem>>, vector<8x8xf32>
    tpu.vector_store %arg17[%c0_57, %c16_58], %102 {strides = array<i32>} : memref<8x32xf32, #tpu.memory_space<vmem>>, vector<8x8xf32>,
    %c0_59 = arith.constant 0 : index
    %c2_60 = arith.constant 2 : index
    %104 = vector.load %arg15[%c0_59, %c2_60] : memref<8x4xf32, #tpu.memory_space<vmem>>, vector<8x1xf32>
    tpu.vector_store %arg15[%c0_59, %c2_60], %84 {strides = array<i32>} : memref<8x4xf32, #tpu.memory_space<vmem>>, vector<8x1xf32>,
    %105 = vector.extract_strided_slice %11 {offsets = [0, 24], sizes = [8, 8], strides = [1, 1]} : vector<8x32xbf16> to vector<8x8xbf16>
    %106 = vector.extract_strided_slice %7 {offsets = [0, 24], sizes = [8, 8], strides = [1, 1]} : vector<8x32xbf16> to vector<8x8xbf16>
    %cst_61 = arith.constant dense<0.000000e+00> : vector<8x8xf32>
    %107 = tpu.matmul %105, %106, %cst_61 {dimension_numbers = #tpu.dot_dimension_numbers<[1], [1], [0], [0], [0, 0, 1, 0], [], []>} : vector<8x8xbf16>, vector<8x8xbf16>, vector<8x8xf32> -> vector<8x8xf32>
    %cst_62 = arith.constant -3.53553395E+19 : f32
    %108 = vector.broadcast %cst_62 : f32 to vector<8x8xf32>
    %109 = arith.select %17, %107, %108 : vector<8x8xi1>, vector<8x8xf32>
    %c0_63 = arith.constant 0 : index
    %c3 = arith.constant 3 : index
    %110 = vector.load %arg15[%c0_63, %c3] : memref<8x4xf32, #tpu.memory_space<vmem>>, vector<8x1xf32>
    %cst_64 = arith.constant dense<0xFF800000> : vector<8xf32>
    %111 = vector.multi_reduction <maximumf>, %109, %cst_64 [1] : vector<8x8xf32> to vector<8xf32>
    %112 = vector.shape_cast %111 : vector<8xf32> to vector<8x1xf32>
    %113 = arith.maximumf %110, %112 : vector<8x1xf32>
    %114 = arith.subf %110, %113 : vector<8x1xf32>
    %115 = math.exp %114 : vector<8x1xf32>
    %116 = vector.broadcast %113 : vector<8x1xf32> to vector<8x8xf32>
    %117 = arith.subf %109, %116 : vector<8x8xf32>
    %118 = math.exp %117 : vector<8x8xf32>
    %c0_65 = arith.constant 0 : index
    %c3_66 = arith.constant 3 : index
    %119 = vector.load %arg16[%c0_65, %c3_66] : memref<8x4xf32, #tpu.memory_space<vmem>>, vector<8x1xf32>
    %120 = arith.mulf %115, %119 : vector<8x1xf32>
    %cst_67 = arith.constant dense<0.000000e+00> : vector<8xf32>
    %121 = vector.multi_reduction <add>, %118, %cst_67 [1] : vector<8x8xf32> to vector<8xf32>
    %122 = vector.shape_cast %121 : vector<8xf32> to vector<8x1xf32>
    %123 = arith.addf %120, %122 : vector<8x1xf32>
    %c0_68 = arith.constant 0 : index
    %c3_69 = arith.constant 3 : index
    %124 = vector.load %arg16[%c0_68, %c3_69] : memref<8x4xf32, #tpu.memory_space<vmem>>, vector<8x1xf32>
    tpu.vector_store %arg16[%c0_68, %c3_69], %123 {strides = array<i32>} : memref<8x4xf32, #tpu.memory_space<vmem>>, vector<8x1xf32>,
    %c0_70 = arith.constant 0 : index
    %c24 = arith.constant 24 : index
    %125 = vector.load %arg17[%c0_70, %c24] : memref<8x32xf32, #tpu.memory_space<vmem>>, vector<8x8xf32>
    %126 = vector.broadcast %115 : vector<8x1xf32> to vector<8x8xf32>
    %127 = arith.mulf %126, %125 : vector<8x8xf32>
    %128 = arith.truncf %118 : vector<8x8xf32> to vector<8x8xbf16>
    %129 = vector.extract_strided_slice %10 {offsets = [0, 24], sizes = [8, 8], strides = [1, 1]} : vector<8x32xbf16> to vector<8x8xbf16>
    %cst_71 = arith.constant dense<0.000000e+00> : vector<8x8xf32>
    %130 = tpu.matmul %128, %129, %cst_71 {dimension_numbers = #tpu.dot_dimension_numbers<[1], [0], [0], [1], [0, 0, 1, 1], [], []>} : vector<8x8xbf16>, vector<8x8xbf16>, vector<8x8xf32> -> vector<8x8xf32>
    %131 = arith.addf %127, %130 : vector<8x8xf32>
    %c0_72 = arith.constant 0 : index
    %c24_73 = arith.constant 24 : index
    %132 = vector.load %arg17[%c0_72, %c24_73] : memref<8x32xf32, #tpu.memory_space<vmem>>, vector<8x8xf32>
    tpu.vector_store %arg17[%c0_72, %c24_73], %131 {strides = array<i32>} : memref<8x32xf32, #tpu.memory_space<vmem>>, vector<8x8xf32>,
    %c0_74 = arith.constant 0 : index
    %c3_75 = arith.constant 3 : index
    %133 = vector.load %arg15[%c0_74, %c3_75] : memref<8x4xf32, #tpu.memory_space<vmem>>, vector<8x1xf32>
    tpu.vector_store %arg15[%c0_74, %c3_75], %113 {strides = array<i32>} : memref<8x4xf32, #tpu.memory_space<vmem>>, vector<8x1xf32>,
    %c0_i32_76 = arith.constant 0 : i32
    %134 = arith.cmpi eq, %arg2, %c0_i32_76 : i32
    %135 = arith.extui %134 : i1 to i32
    %c0_i32_77 = arith.constant 0 : i32
    %136 = arith.cmpi ne, %135, %c0_i32_77 : i32
    scf.if %136 {
      %c0_78 = arith.constant 0 : index
      %c0_79 = arith.constant 0 : index
      %137 = vector.load %arg16[%c0_78, %c0_79] : memref<8x4xf32, #tpu.memory_space<vmem>>, vector<8x4xf32>
      %138 = tpu.reciprocal %137 {approx = true} : vector<8x4xf32> -> vector<8x4xf32>
      %c0_80 = arith.constant 0 : index
      %c0_81 = arith.constant 0 : index
      %139 = vector.load %arg17[%c0_80, %c0_81] : memref<8x32xf32, #tpu.memory_space<vmem>>, vector<8x8xf32>
      %140 = vector.extract_strided_slice %138 {offsets = [0, 0], sizes = [8, 1], strides = [1, 1]} : vector<8x4xf32> to vector<8x1xf32>
      %141 = vector.broadcast %140 : vector<8x1xf32> to vector<8x8xf32>
      %142 = arith.mulf %139, %141 : vector<8x8xf32>
      %c0_82 = arith.constant 0 : index
      %c0_83 = arith.constant 0 : index
      %143 = vector.load %arg17[%c0_82, %c0_83] : memref<8x32xf32, #tpu.memory_space<vmem>>, vector<8x8xf32>
      tpu.vector_store %arg17[%c0_82, %c0_83], %142 {strides = array<i32>} : memref<8x32xf32, #tpu.memory_space<vmem>>, vector<8x8xf32>,
      %c0_84 = arith.constant 0 : index
      %c8_85 = arith.constant 8 : index
      %144 = vector.load %arg17[%c0_84, %c8_85] : memref<8x32xf32, #tpu.memory_space<vmem>>, vector<8x8xf32>
      %145 = vector.extract_strided_slice %138 {offsets = [0, 1], sizes = [8, 1], strides = [1, 1]} : vector<8x4xf32> to vector<8x1xf32>
      %146 = vector.broadcast %145 : vector<8x1xf32> to vector<8x8xf32>
      %147 = arith.mulf %144, %146 : vector<8x8xf32>
      %c0_86 = arith.constant 0 : index
      %c8_87 = arith.constant 8 : index
      %148 = vector.load %arg17[%c0_86, %c8_87] : memref<8x32xf32, #tpu.memory_space<vmem>>, vector<8x8xf32>
      tpu.vector_store %arg17[%c0_86, %c8_87], %147 {strides = array<i32>} : memref<8x32xf32, #tpu.memory_space<vmem>>, vector<8x8xf32>,
      %c0_88 = arith.constant 0 : index
      %c16_89 = arith.constant 16 : index
      %149 = vector.load %arg17[%c0_88, %c16_89] : memref<8x32xf32, #tpu.memory_space<vmem>>, vector<8x8xf32>
      %150 = vector.extract_strided_slice %138 {offsets = [0, 2], sizes = [8, 1], strides = [1, 1]} : vector<8x4xf32> to vector<8x1xf32>
      %151 = vector.broadcast %150 : vector<8x1xf32> to vector<8x8xf32>
      %152 = arith.mulf %149, %151 : vector<8x8xf32>
      %c0_90 = arith.constant 0 : index
      %c16_91 = arith.constant 16 : index
      %153 = vector.load %arg17[%c0_90, %c16_91] : memref<8x32xf32, #tpu.memory_space<vmem>>, vector<8x8xf32>
      tpu.vector_store %arg17[%c0_90, %c16_91], %152 {strides = array<i32>} : memref<8x32xf32, #tpu.memory_space<vmem>>, vector<8x8xf32>,
      %c0_92 = arith.constant 0 : index
      %c24_93 = arith.constant 24 : index
      %154 = vector.load %arg17[%c0_92, %c24_93] : memref<8x32xf32, #tpu.memory_space<vmem>>, vector<8x8xf32>
      %155 = vector.extract_strided_slice %138 {offsets = [0, 3], sizes = [8, 1], strides = [1, 1]} : vector<8x4xf32> to vector<8x1xf32>
      %156 = vector.broadcast %155 : vector<8x1xf32> to vector<8x8xf32>
      %157 = arith.mulf %154, %156 : vector<8x8xf32>
      %c0_94 = arith.constant 0 : index
      %c24_95 = arith.constant 24 : index
      %158 = vector.load %arg17[%c0_94, %c24_95] : memref<8x32xf32, #tpu.memory_space<vmem>>, vector<8x8xf32>
      tpu.vector_store %arg17[%c0_94, %c24_95], %157 {strides = array<i32>} : memref<8x32xf32, #tpu.memory_space<vmem>>, vector<8x8xf32>,
      %c0_96 = arith.constant 0 : index
      %c0_97 = arith.constant 0 : index
      %159 = vector.load %arg17[%c0_96, %c0_97] : memref<8x32xf32, #tpu.memory_space<vmem>>, vector<8x32xf32>
      %160 = arith.truncf %159 : vector<8x32xf32> to vector<8x32xbf16>
      %c0_98 = arith.constant 0 : index
      %c0_99 = arith.constant 0 : index
      %161 = vector.load %arg9[%c0_98, %c0_99] : memref<32x32xbf16, #tpu.memory_space<vmem>>, vector<32x32xbf16>
      %cst_100 = arith.constant dense<0.000000e+00> : vector<8x32xf32>
      %162 = tpu.matmul %160, %161, %cst_100 {dimension_numbers = #tpu.dot_dimension_numbers<[1], [0], [0], [1], [0, 0, 1, 1], [], []>} : vector<8x32xbf16>, vector<32x32xbf16>, vector<8x32xf32> -> vector<8x32xf32>
      %c0_101 = arith.constant 0 : index
      %c0_102 = arith.constant 0 : index
      %163 = vector.load %arg10[%c0_101, %c0_102] : memref<1x32xf32, #tpu.memory_space<vmem>>, vector<1x32xf32>
      %164 = vector.broadcast %163 : vector<1x32xf32> to vector<8x32xf32>
      %165 = arith.addf %162, %164 : vector<8x32xf32>
      %c0_103 = arith.constant 0 : index
      %c0_104 = arith.constant 0 : index
      %c0_105 = arith.constant 0 : index
      %166 = vector.load %arg4[%c0_103, %c0_104, %c0_105] : memref<1x8x32xbf16, #tpu.memory_space<vmem>>, vector<1x8x32xbf16>
      %167 = vector.shape_cast %166 : vector<1x8x32xbf16> to vector<8x32xbf16>
      %168 = arith.extf %167 : vector<8x32xbf16> to vector<8x32xf32>
      %169 = arith.addf %165, %168 : vector<8x32xf32>
      %cst_106 = arith.constant dense<0.000000e+00> : vector<8xf32>
      %170 = vector.multi_reduction <add>, %169, %cst_106 [1] : vector<8x32xf32> to vector<8xf32>
      %171 = vector.shape_cast %170 : vector<8xf32> to vector<8x1xf32>
      %cst_107 = arith.constant 3.200000e+01 : f32
      %172 = vector.broadcast %cst_107 : f32 to vector<8x1xf32>
      %173 = arith.divf %171, %172 : vector<8x1xf32>
      %174 = vector.broadcast %173 : vector<8x1xf32> to vector<8x32xf32>
      %175 = arith.subf %169, %174 : vector<8x32xf32>
      %176 = arith.mulf %175, %175 : vector<8x32xf32>
      %cst_108 = arith.constant dense<0.000000e+00> : vector<8xf32>
      %177 = vector.multi_reduction <add>, %176, %cst_108 [1] : vector<8x32xf32> to vector<8xf32>
      %178 = vector.shape_cast %177 : vector<8xf32> to vector<8x1xf32>
      %cst_109 = arith.constant 3.200000e+01 : f32
      %179 = vector.broadcast %cst_109 : f32 to vector<8x1xf32>
      %180 = arith.divf %178, %179 : vector<8x1xf32>
      %181 = vector.broadcast %173 : vector<8x1xf32> to vector<8x32xf32>
      %182 = arith.subf %169, %181 : vector<8x32xf32>
      %cst_110 = arith.constant 9.99999974E-6 : f32
      %183 = vector.broadcast %cst_110 : f32 to vector<8x1xf32>
      %184 = arith.addf %180, %183 : vector<8x1xf32>
      %185 = math.rsqrt %184 : vector<8x1xf32>
      %186 = vector.broadcast %185 : vector<8x1xf32> to vector<8x32xf32>
      %187 = arith.mulf %182, %186 : vector<8x32xf32>
      %c0_111 = arith.constant 0 : index
      %c0_112 = arith.constant 0 : index
      %188 = vector.load %arg11[%c0_111, %c0_112] : memref<1x32xf32, #tpu.memory_space<vmem>>, vector<1x32xf32>
      %189 = vector.broadcast %188 : vector<1x32xf32> to vector<8x32xf32>
      %190 = arith.mulf %187, %189 : vector<8x32xf32>
      %c0_113 = arith.constant 0 : index
      %c0_114 = arith.constant 0 : index
      %191 = vector.load %arg12[%c0_113, %c0_114] : memref<1x32xf32, #tpu.memory_space<vmem>>, vector<1x32xf32>
      %192 = vector.broadcast %191 : vector<1x32xf32> to vector<8x32xf32>
      %193 = arith.addf %190, %192 : vector<8x32xf32>
      %194 = arith.truncf %193 : vector<8x32xf32> to vector<8x32xbf16>
      %c0_115 = arith.constant 0 : index
      %c0_116 = arith.constant 0 : index
      %c0_117 = arith.constant 0 : index
      %195 = vector.load %arg13[%c0_115, %c0_116, %c0_117] : memref<1x8x32xbf16, #tpu.memory_space<vmem>>, vector<1x8x32xbf16>
      %196 = vector.shape_cast %195 : vector<1x8x32xbf16> to vector<8x32xbf16>
      %197 = vector.shape_cast %194 : vector<8x32xbf16> to vector<1x8x32xbf16>
      tpu.vector_store %arg13[%c0_115, %c0_116, %c0_117], %197 {strides = array<i32>} : memref<1x8x32xbf16, #tpu.memory_space<vmem>>, vector<1x8x32xbf16>,
    } else {
    }
    return
  }
  func.func @transform_0(%arg0: i32, %arg1: i32, %arg2: i32) -> (i32, i32, i32) {
    %c0_i32 = arith.constant 0 : i32
    %c0_i32_0 = arith.constant 0 : i32
    return %arg0, %c0_i32, %arg2 : i32, i32, i32
  }
  func.func @transform_1(%arg0: i32, %arg1: i32, %arg2: i32) -> (i32, i32, i32) {
    %c0_i32 = arith.constant 0 : i32
    %c0_i32_0 = arith.constant 0 : i32
    return %arg0, %arg1, %c0_i32 : i32, i32, i32
  }
  func.func @transform_2(%arg0: i32, %arg1: i32, %arg2: i32) -> (i32, i32, i32) {
    %c0_i32 = arith.constant 0 : i32
    %c0_i32_0 = arith.constant 0 : i32
    return %arg0, %arg2, %c0_i32 : i32, i32, i32
  }
  func.func @transform_3(%arg0: i32, %arg1: i32, %arg2: i32) -> (i32, i32) {
    %c0_i32 = arith.constant 0 : i32
    %c0_i32_0 = arith.constant 0 : i32
    %c0_i32_1 = arith.constant 0 : i32
    return %c0_i32, %c0_i32_0 : i32, i32
  }
  func.func @transform_4(%arg0: i32, %arg1: i32, %arg2: i32) -> (i32, i32) {
    %c0_i32 = arith.constant 0 : i32
    %c0_i32_0 = arith.constant 0 : i32
    %c0_i32_1 = arith.constant 0 : i32
    return %c0_i32, %c0_i32_0 : i32, i32
  }
  func.func @transform_5(%arg0: i32, %arg1: i32, %arg2: i32) -> (i32, i32) {
    %c0_i32 = arith.constant 0 : i32
    %c0_i32_0 = arith.constant 0 : i32
    %c0_i32_1 = arith.constant 0 : i32
    return %c0_i32, %c0_i32_0 : i32, i32
  }
  func.func @transform_6(%arg0: i32, %arg1: i32, %arg2: i32) -> (i32, i32) {
    %c0_i32 = arith.constant 0 : i32
    %c0_i32_0 = arith.constant 0 : i32
    %c0_i32_1 = arith.constant 0 : i32
    return %c0_i32, %c0_i32_0 : i32, i32
  }
  func.func @transform_7(%arg0: i32, %arg1: i32, %arg2: i32) -> (i32, i32) {
    %c0_i32 = arith.constant 0 : i32
    %c0_i32_0 = arith.constant 0 : i32
    %c0_i32_1 = arith.constant 0 : i32
    return %c0_i32, %c0_i32_0 : i32, i32
  }
  func.func @transform_8(%arg0: i32, %arg1: i32, %arg2: i32) -> (i32, i32) {
    %c0_i32 = arith.constant 0 : i32
    %c0_i32_0 = arith.constant 0 : i32
    %c0_i32_1 = arith.constant 0 : i32
    return %c0_i32, %c0_i32_0 : i32, i32
  }
  func.func @transform_9(%arg0: i32, %arg1: i32, %arg2: i32) -> (i32, i32) {
    %c0_i32 = arith.constant 0 : i32
    %c0_i32_0 = arith.constant 0 : i32
    %c0_i32_1 = arith.constant 0 : i32
    return %c0_i32, %c0_i32_0 : i32, i32
  }
  func.func @transform_10(%arg0: i32, %arg1: i32, %arg2: i32) -> (i32, i32, i32) {
    %c0_i32 = arith.constant 0 : i32
    %c0_i32_0 = arith.constant 0 : i32
    return %arg0, %arg1, %c0_i32 : i32, i32, i32
  }
}

module attributes {stable_mosaic.version = 11 : i64} {
  func.func @_linear_res_ln_kernel(%arg0: i32, %arg1: i32, %arg2: memref<16x128xbf16, #tpu.memory_space<vmem>>, %arg3: memref<16x32xbf16, #tpu.memory_space<vmem>>, %arg4: memref<128x32xbf16, #tpu.memory_space<vmem>>, %arg5: memref<1x32xf32, #tpu.memory_space<vmem>>, %arg6: memref<1x32xf32, #tpu.memory_space<vmem>>, %arg7: memref<1x32xf32, #tpu.memory_space<vmem>>, %arg8: memref<16x32xbf16, #tpu.memory_space<vmem>>, %arg9: memref<16x32xf32, #tpu.memory_space<vmem>>) attributes {dimension_semantics = [#tpu.dimension_semantics<parallel>, #tpu.dimension_semantics<arbitrary>], iteration_bounds = array<i64: 1, 1>, scalar_prefetch = 0 : i64, scratch_operands = 1 : i64, tpu.core_type = #tpu.core_type<tc>, window_params = [{transform_indices = @transform_0, window_bounds = array<i64: 16, 128>}, {transform_indices = @transform_1, window_bounds = array<i64: 16, 32>}, {transform_indices = @transform_2, window_bounds = array<i64: 128, 32>}, {pipeline_mode = #tpu.pipeline_mode<synchronous>, transform_indices = @transform_3, window_bounds = array<i64: 1, 32>}, {pipeline_mode = #tpu.pipeline_mode<synchronous>, transform_indices = @transform_4, window_bounds = array<i64: 1, 32>}, {pipeline_mode = #tpu.pipeline_mode<synchronous>, transform_indices = @transform_5, window_bounds = array<i64: 1, 32>}, {transform_indices = @transform_6, window_bounds = array<i64: 16, 32>}]} {
    %c0_i32 = arith.constant 0 : i32
    %0 = arith.cmpi eq, %arg1, %c0_i32 : i32
    %1 = arith.extui %0 : i1 to i32
    %c0_i32_0 = arith.constant 0 : i32
    %2 = arith.cmpi ne, %1, %c0_i32_0 : i32
    scf.if %2 {
      %cst_10 = arith.constant 0.000000e+00 : f32
      %12 = vector.broadcast %cst_10 : f32 to vector<16x32xf32>
      %c0_11 = arith.constant 0 : index
      %c0_12 = arith.constant 0 : index
      %13 = vector.load %arg9[%c0_11, %c0_12] : memref<16x32xf32, #tpu.memory_space<vmem>>, vector<16x32xf32>
      tpu.vector_store %arg9[%c0_11, %c0_12], %12 {strides = array<i32>} : memref<16x32xf32, #tpu.memory_space<vmem>>, vector<16x32xf32>,
    } else {
    }
    %c0 = arith.constant 0 : index
    %c0_1 = arith.constant 0 : index
    %3 = vector.load %arg9[%c0, %c0_1] : memref<16x32xf32, #tpu.memory_space<vmem>>, vector<16x32xf32>
    %c0_2 = arith.constant 0 : index
    %c0_3 = arith.constant 0 : index
    %4 = vector.load %arg2[%c0_2, %c0_3] : memref<16x128xbf16, #tpu.memory_space<vmem>>, vector<16x128xbf16>
    %c0_4 = arith.constant 0 : index
    %c0_5 = arith.constant 0 : index
    %5 = vector.load %arg4[%c0_4, %c0_5] : memref<128x32xbf16, #tpu.memory_space<vmem>>, vector<128x32xbf16>
    %cst = arith.constant dense<0.000000e+00> : vector<16x32xf32>
    %6 = tpu.matmul %4, %5, %cst {dimension_numbers = #tpu.dot_dimension_numbers<[1], [0], [0], [1], [0, 0, 1, 1], [], []>} : vector<16x128xbf16>, vector<128x32xbf16>, vector<16x32xf32> -> vector<16x32xf32>
    %7 = arith.addf %3, %6 : vector<16x32xf32>
    %c0_6 = arith.constant 0 : index
    %c0_7 = arith.constant 0 : index
    %8 = vector.load %arg9[%c0_6, %c0_7] : memref<16x32xf32, #tpu.memory_space<vmem>>, vector<16x32xf32>
    tpu.vector_store %arg9[%c0_6, %c0_7], %7 {strides = array<i32>} : memref<16x32xf32, #tpu.memory_space<vmem>>, vector<16x32xf32>,
    %c0_i32_8 = arith.constant 0 : i32
    %9 = arith.cmpi eq, %arg1, %c0_i32_8 : i32
    %10 = arith.extui %9 : i1 to i32
    %c0_i32_9 = arith.constant 0 : i32
    %11 = arith.cmpi ne, %10, %c0_i32_9 : i32
    scf.if %11 {
      %c0_10 = arith.constant 0 : index
      %c0_11 = arith.constant 0 : index
      %12 = vector.load %arg9[%c0_10, %c0_11] : memref<16x32xf32, #tpu.memory_space<vmem>>, vector<16x32xf32>
      %c0_12 = arith.constant 0 : index
      %c0_13 = arith.constant 0 : index
      %13 = vector.load %arg5[%c0_12, %c0_13] : memref<1x32xf32, #tpu.memory_space<vmem>>, vector<1x32xf32>
      %14 = vector.broadcast %13 : vector<1x32xf32> to vector<16x32xf32>
      %15 = arith.addf %12, %14 : vector<16x32xf32>
      %c0_14 = arith.constant 0 : index
      %c0_15 = arith.constant 0 : index
      %16 = vector.load %arg3[%c0_14, %c0_15] : memref<16x32xbf16, #tpu.memory_space<vmem>>, vector<16x32xbf16>
      %17 = arith.extf %16 : vector<16x32xbf16> to vector<16x32xf32>
      %18 = arith.addf %15, %17 : vector<16x32xf32>
      %cst_16 = arith.constant dense<0.000000e+00> : vector<16xf32>
      %19 = vector.multi_reduction <add>, %18, %cst_16 [1] : vector<16x32xf32> to vector<16xf32>
      %20 = vector.shape_cast %19 : vector<16xf32> to vector<16x1xf32>
      %cst_17 = arith.constant 3.200000e+01 : f32
      %21 = vector.broadcast %cst_17 : f32 to vector<16x1xf32>
      %22 = arith.divf %20, %21 : vector<16x1xf32>
      %23 = vector.broadcast %22 : vector<16x1xf32> to vector<16x32xf32>
      %24 = arith.subf %18, %23 : vector<16x32xf32>
      %25 = arith.mulf %24, %24 : vector<16x32xf32>
      %cst_18 = arith.constant dense<0.000000e+00> : vector<16xf32>
      %26 = vector.multi_reduction <add>, %25, %cst_18 [1] : vector<16x32xf32> to vector<16xf32>
      %27 = vector.shape_cast %26 : vector<16xf32> to vector<16x1xf32>
      %cst_19 = arith.constant 3.200000e+01 : f32
      %28 = vector.broadcast %cst_19 : f32 to vector<16x1xf32>
      %29 = arith.divf %27, %28 : vector<16x1xf32>
      %30 = vector.broadcast %22 : vector<16x1xf32> to vector<16x32xf32>
      %31 = arith.subf %18, %30 : vector<16x32xf32>
      %cst_20 = arith.constant 9.99999974E-6 : f32
      %32 = vector.broadcast %cst_20 : f32 to vector<16x1xf32>
      %33 = arith.addf %29, %32 : vector<16x1xf32>
      %34 = math.rsqrt %33 : vector<16x1xf32>
      %35 = vector.broadcast %34 : vector<16x1xf32> to vector<16x32xf32>
      %36 = arith.mulf %31, %35 : vector<16x32xf32>
      %c0_21 = arith.constant 0 : index
      %c0_22 = arith.constant 0 : index
      %37 = vector.load %arg6[%c0_21, %c0_22] : memref<1x32xf32, #tpu.memory_space<vmem>>, vector<1x32xf32>
      %38 = vector.broadcast %37 : vector<1x32xf32> to vector<16x32xf32>
      %39 = arith.mulf %36, %38 : vector<16x32xf32>
      %c0_23 = arith.constant 0 : index
      %c0_24 = arith.constant 0 : index
      %40 = vector.load %arg7[%c0_23, %c0_24] : memref<1x32xf32, #tpu.memory_space<vmem>>, vector<1x32xf32>
      %41 = vector.broadcast %40 : vector<1x32xf32> to vector<16x32xf32>
      %42 = arith.addf %39, %41 : vector<16x32xf32>
      %43 = arith.truncf %42 : vector<16x32xf32> to vector<16x32xbf16>
      %c0_25 = arith.constant 0 : index
      %c0_26 = arith.constant 0 : index
      %44 = vector.load %arg8[%c0_25, %c0_26] : memref<16x32xbf16, #tpu.memory_space<vmem>>, vector<16x32xbf16>
      tpu.vector_store %arg8[%c0_25, %c0_26], %43 {strides = array<i32>} : memref<16x32xbf16, #tpu.memory_space<vmem>>, vector<16x32xbf16>,
    } else {
    }
    return
  }
  func.func @transform_0(%arg0: i32, %arg1: i32) -> (i32, i32) {
    %c0_i32 = arith.constant 0 : i32
    return %arg0, %arg1 : i32, i32
  }
  func.func @transform_1(%arg0: i32, %arg1: i32) -> (i32, i32) {
    %c0_i32 = arith.constant 0 : i32
    %c0_i32_0 = arith.constant 0 : i32
    return %arg0, %c0_i32 : i32, i32
  }
  func.func @transform_2(%arg0: i32, %arg1: i32) -> (i32, i32) {
    %c0_i32 = arith.constant 0 : i32
    %c0_i32_0 = arith.constant 0 : i32
    return %arg1, %c0_i32 : i32, i32
  }
  func.func @transform_3(%arg0: i32, %arg1: i32) -> (i32, i32) {
    %c0_i32 = arith.constant 0 : i32
    %c0_i32_0 = arith.constant 0 : i32
    %c0_i32_1 = arith.constant 0 : i32
    return %c0_i32, %c0_i32_0 : i32, i32
  }
  func.func @transform_4(%arg0: i32, %arg1: i32) -> (i32, i32) {
    %c0_i32 = arith.constant 0 : i32
    %c0_i32_0 = arith.constant 0 : i32
    %c0_i32_1 = arith.constant 0 : i32
    return %c0_i32, %c0_i32_0 : i32, i32
  }
  func.func @transform_5(%arg0: i32, %arg1: i32) -> (i32, i32) {
    %c0_i32 = arith.constant 0 : i32
    %c0_i32_0 = arith.constant 0 : i32
    %c0_i32_1 = arith.constant 0 : i32
    return %c0_i32, %c0_i32_0 : i32, i32
  }
  func.func @transform_6(%arg0: i32, %arg1: i32) -> (i32, i32) {
    %c0_i32 = arith.constant 0 : i32
    %c0_i32_0 = arith.constant 0 : i32
    return %arg0, %c0_i32 : i32, i32
  }
}

module attributes {stable_mosaic.version = 11 : i64} {
  func.func @_mhsa_kernel(%arg0: i32, %arg1: i32, %arg2: i32, %arg3: memref<1x1x8xf32, #tpu.memory_space<vmem>>, %arg4: memref<1x8x32xbf16, #tpu.memory_space<vmem>>, %arg5: memref<1x8x32xbf16, #tpu.memory_space<vmem>>, %arg6: memref<32x32xbf16, #tpu.memory_space<vmem>>, %arg7: memref<32x32xbf16, #tpu.memory_space<vmem>>, %arg8: memref<32x32xbf16, #tpu.memory_space<vmem>>, %arg9: memref<32x32xbf16, #tpu.memory_space<vmem>>, %arg10: memref<1x32xf32, #tpu.memory_space<vmem>>, %arg11: memref<1x32xf32, #tpu.memory_space<vmem>>, %arg12: memref<1x32xf32, #tpu.memory_space<vmem>>, %arg13: memref<1x8x32xbf16, #tpu.memory_space<vmem>>, %arg14: memref<8x32xbf16, #tpu.memory_space<vmem>>, %arg15: memref<8x4xf32, #tpu.memory_space<vmem>>, %arg16: memref<8x4xf32, #tpu.memory_space<vmem>>, %arg17: memref<8x32xf32, #tpu.memory_space<vmem>>) attributes {dimension_semantics = [#tpu.dimension_semantics<parallel>, #tpu.dimension_semantics<parallel>, #tpu.dimension_semantics<arbitrary>], iteration_bounds = array<i64: 2, 1, 1>, scalar_prefetch = 0 : i64, scratch_operands = 4 : i64, tpu.core_type = #tpu.core_type<tc>, window_params = [{transform_indices = @transform_0, window_bounds = array<i64: 1, 1, 8>}, {transform_indices = @transform_1, window_bounds = array<i64: 1, 8, 32>}, {transform_indices = @transform_2, window_bounds = array<i64: 1, 8, 32>}, {pipeline_mode = #tpu.pipeline_mode<synchronous>, transform_indices = @transform_3, window_bounds = array<i64: 32, 32>}, {pipeline_mode = #tpu.pipeline_mode<synchronous>, transform_indices = @transform_4, window_bounds = array<i64: 32, 32>}, {pipeline_mode = #tpu.pipeline_mode<synchronous>, transform_indices = @transform_5, window_bounds = array<i64: 32, 32>}, {pipeline_mode = #tpu.pipeline_mode<synchronous>, transform_indices = @transform_6, window_bounds = array<i64: 32, 32>}, {pipeline_mode = #tpu.pipeline_mode<synchronous>, transform_indices = @transform_7, window_bounds = array<i64: 1, 32>}, {pipeline_mode = #tpu.pipeline_mode<synchronous>, transform_indices = @transform_8, window_bounds = array<i64: 1, 32>}, {pipeline_mode = #tpu.pipeline_mode<synchronous>, transform_indices = @transform_9, window_bounds = array<i64: 1, 32>}, {transform_indices = @transform_10, window_bounds = array<i64: 1, 8, 32>}]} {
    %c0_i32 = arith.constant 0 : i32
    %0 = arith.cmpi eq, %arg2, %c0_i32 : i32
    %1 = arith.extui %0 : i1 to i32
    %c0_i32_0 = arith.constant 0 : i32
    %2 = arith.cmpi ne, %1, %c0_i32_0 : i32
    scf.if %2 {
      %c0_79 = arith.constant 0 : index
      %c0_80 = arith.constant 0 : index
      %c0_81 = arith.constant 0 : index
      %147 = vector.load %arg4[%c0_79, %c0_80, %c0_81] : memref<1x8x32xbf16, #tpu.memory_space<vmem>>, vector<1x8x32xbf16>
      %148 = vector.shape_cast %147 : vector<1x8x32xbf16> to vector<8x32xbf16>
      %c0_82 = arith.constant 0 : index
      %c0_83 = arith.constant 0 : index
      %149 = vector.load %arg6[%c0_82, %c0_83] : memref<32x32xbf16, #tpu.memory_space<vmem>>, vector<32x32xbf16>
      %cst_84 = arith.constant dense<0.000000e+00> : vector<8x32xf32>
      %150 = tpu.matmul %148, %149, %cst_84 {dimension_numbers = #tpu.dot_dimension_numbers<[1], [0], [0], [1], [0, 0, 1, 1], [], []>} : vector<8x32xbf16>, vector<32x32xbf16>, vector<8x32xf32> -> vector<8x32xf32>
      %cst_85 = arith.constant 0.353553385 : f32
      %151 = vector.broadcast %cst_85 : f32 to vector<8x32xf32>
      %152 = arith.mulf %150, %151 : vector<8x32xf32>
      %153 = arith.truncf %152 : vector<8x32xf32> to vector<8x32xbf16>
      %c0_86 = arith.constant 0 : index
      %c0_87 = arith.constant 0 : index
      %154 = vector.load %arg14[%c0_86, %c0_87] : memref<8x32xbf16, #tpu.memory_space<vmem>>, vector<8x32xbf16>
      tpu.vector_store %arg14[%c0_86, %c0_87], %153 {strides = array<i32>} : memref<8x32xbf16, #tpu.memory_space<vmem>>, vector<8x32xbf16>,
      %cst_88 = arith.constant 0xFF800000 : f32
      %155 = vector.broadcast %cst_88 : f32 to vector<8x4xf32>
      %c0_89 = arith.constant 0 : index
      %c0_90 = arith.constant 0 : index
      %156 = vector.load %arg15[%c0_89, %c0_90] : memref<8x4xf32, #tpu.memory_space<vmem>>, vector<8x4xf32>
      tpu.vector_store %arg15[%c0_89, %c0_90], %155 {strides = array<i32>} : memref<8x4xf32, #tpu.memory_space<vmem>>, vector<8x4xf32>,
      %cst_91 = arith.constant 0.000000e+00 : f32
      %157 = vector.broadcast %cst_91 : f32 to vector<8x4xf32>
      %c0_92 = arith.constant 0 : index
      %c0_93 = arith.constant 0 : index
      %158 = vector.load %arg16[%c0_92, %c0_93] : memref<8x4xf32, #tpu.memory_space<vmem>>, vector<8x4xf32>
      tpu.vector_store %arg16[%c0_92, %c0_93], %157 {strides = array<i32>} : memref<8x4xf32, #tpu.memory_space<vmem>>, vector<8x4xf32>,
      %cst_94 = arith.constant 0.000000e+00 : f32
      %159 = vector.broadcast %cst_94 : f32 to vector<8x32xf32>
      %c0_95 = arith.constant 0 : index
      %c0_96 = arith.constant 0 : index
      %160 = vector.load %arg17[%c0_95, %c0_96] : memref<8x32xf32, #tpu.memory_space<vmem>>, vector<8x32xf32>
      tpu.vector_store %arg17[%c0_95, %c0_96], %159 {strides = array<i32>} : memref<8x32xf32, #tpu.memory_space<vmem>>, vector<8x32xf32>,
    } else {
    }
    %c0 = arith.constant 0 : index
    %c0_1 = arith.constant 0 : index
    %c0_2 = arith.constant 0 : index
    %3 = vector.load %arg5[%c0, %c0_1, %c0_2] : memref<1x8x32xbf16, #tpu.memory_space<vmem>>, vector<1x8x32xbf16>
    %4 = vector.shape_cast %3 : vector<1x8x32xbf16> to vector<8x32xbf16>
    %c0_3 = arith.constant 0 : index
    %c0_4 = arith.constant 0 : index
    %5 = vector.load %arg7[%c0_3, %c0_4] : memref<32x32xbf16, #tpu.memory_space<vmem>>, vector<32x32xbf16>
    %cst = arith.constant dense<0.000000e+00> : vector<8x32xf32>
    %6 = tpu.matmul %4, %5, %cst {dimension_numbers = #tpu.dot_dimension_numbers<[1], [0], [0], [1], [0, 0, 1, 1], [], []>} : vector<8x32xbf16>, vector<32x32xbf16>, vector<8x32xf32> -> vector<8x32xf32>
    %7 = arith.truncf %6 : vector<8x32xf32> to vector<8x32xbf16>
    %c0_5 = arith.constant 0 : index
    %c0_6 = arith.constant 0 : index
    %8 = vector.load %arg8[%c0_5, %c0_6] : memref<32x32xbf16, #tpu.memory_space<vmem>>, vector<32x32xbf16>
    %cst_7 = arith.constant dense<0.000000e+00> : vector<8x32xf32>
    %9 = tpu.matmul %4, %8, %cst_7 {dimension_numbers = #tpu.dot_dimension_numbers<[1], [0], [0], [1], [0, 0, 1, 1], [], []>} : vector<8x32xbf16>, vector<32x32xbf16>, vector<8x32xf32> -> vector<8x32xf32>
    %10 = arith.truncf %9 : vector<8x32xf32> to vector<8x32xbf16>
    %c0_8 = arith.constant 0 : index
    %c0_9 = arith.constant 0 : index
    %11 = vector.load %arg14[%c0_8, %c0_9] : memref<8x32xbf16, #tpu.memory_space<vmem>>, vector<8x32xbf16>
    %c0_10 = arith.constant 0 : index
    %c0_11 = arith.constant 0 : index
    %c0_12 = arith.constant 0 : index
    %12 = vector.load %arg3[%c0_10, %c0_11, %c0_12] : memref<1x1x8xf32, #tpu.memory_space<vmem>>, vector<1x1x8xf32>
    %13 = vector.shape_cast %12 : vector<1x1x8xf32> to vector<1x8xf32>
    %cst_13 = arith.constant 0.000000e+00 : f32
    %14 = vector.broadcast %cst_13 : f32 to vector<1x8xf32>
    %15 = arith.cmpf one, %13, %14 : vector<1x8xf32>
    %16 = vector.shape_cast %15 : vector<1x8xi1> to vector<1x8xi1>
    %17 = vector.broadcast %16 : vector<1x8xi1> to vector<8x8xi1>
    %c8_i32 = arith.constant 8 : i32
    %18 = arith.muli %arg1, %c8_i32 : i32
    %19 = tpu.iota {dimensions = array<i32: 0>} : vector<8x8xi32>
    %20 = vector.broadcast %18 : i32 to vector<8x8xi32>
    %21 = arith.addi %20, %19 : vector<8x8xi32>
    %c8_i32_14 = arith.constant 8 : i32
    %22 = arith.muli %arg2, %c8_i32_14 : i32
    %23 = tpu.iota {dimensions = array<i32: 1>} : vector<8x8xi32>
    %24 = vector.broadcast %22 : i32 to vector<8x8xi32>
    %25 = arith.addi %24, %23 : vector<8x8xi32>
    %26 = arith.cmpi sle, %25, %21 : vector<8x8xi32>
    %27 = arith.andi %17, %26 : vector<8x8xi1>
    %28 = vector.extract_strided_slice %11 {offsets = [0, 0], sizes = [8, 8], strides = [1, 1]} : vector<8x32xbf16> to vector<8x8xbf16>
    %29 = vector.extract_strided_slice %7 {offsets = [0, 0], sizes = [8, 8], strides = [1, 1]} : vector<8x32xbf16> to vector<8x8xbf16>
    %cst_15 = arith.constant dense<0.000000e+00> : vector<8x8xf32>
    %30 = tpu.matmul %28, %29, %cst_15 {dimension_numbers = #tpu.dot_dimension_numbers<[1], [1], [0], [0], [0, 0, 1, 0], [], []>} : vector<8x8xbf16>, vector<8x8xbf16>, vector<8x8xf32> -> vector<8x8xf32>
    %cst_16 = arith.constant -3.53553395E+19 : f32
    %31 = vector.broadcast %cst_16 : f32 to vector<8x8xf32>
    %32 = arith.select %27, %30, %31 : vector<8x8xi1>, vector<8x8xf32>
    %c0_17 = arith.constant 0 : index
    %c0_18 = arith.constant 0 : index
    %33 = vector.load %arg15[%c0_17, %c0_18] : memref<8x4xf32, #tpu.memory_space<vmem>>, vector<8x1xf32>
    %cst_19 = arith.constant dense<0xFF800000> : vector<8xf32>
    %34 = vector.multi_reduction <maximumf>, %32, %cst_19 [1] : vector<8x8xf32> to vector<8xf32>
    %35 = vector.shape_cast %34 : vector<8xf32> to vector<8x1xf32>
    %36 = arith.maximumf %33, %35 : vector<8x1xf32>
    %37 = arith.subf %33, %36 : vector<8x1xf32>
    %38 = math.exp %37 : vector<8x1xf32>
    %39 = vector.broadcast %36 : vector<8x1xf32> to vector<8x8xf32>
    %40 = arith.subf %32, %39 : vector<8x8xf32>
    %41 = math.exp %40 : vector<8x8xf32>
    %c0_20 = arith.constant 0 : index
    %c0_21 = arith.constant 0 : index
    %42 = vector.load %arg16[%c0_20, %c0_21] : memref<8x4xf32, #tpu.memory_space<vmem>>, vector<8x1xf32>
    %43 = arith.mulf %38, %42 : vector<8x1xf32>
    %cst_22 = arith.constant dense<0.000000e+00> : vector<8xf32>
    %44 = vector.multi_reduction <add>, %41, %cst_22 [1] : vector<8x8xf32> to vector<8xf32>
    %45 = vector.shape_cast %44 : vector<8xf32> to vector<8x1xf32>
    %46 = arith.addf %43, %45 : vector<8x1xf32>
    %c0_23 = arith.constant 0 : index
    %c0_24 = arith.constant 0 : index
    %47 = vector.load %arg16[%c0_23, %c0_24] : memref<8x4xf32, #tpu.memory_space<vmem>>, vector<8x1xf32>
    tpu.vector_store %arg16[%c0_23, %c0_24], %46 {strides = array<i32>} : memref<8x4xf32, #tpu.memory_space<vmem>>, vector<8x1xf32>,
    %c0_25 = arith.constant 0 : index
    %c0_26 = arith.constant 0 : index
    %48 = vector.load %arg17[%c0_25, %c0_26] : memref<8x32xf32, #tpu.memory_space<vmem>>, vector<8x8xf32>
    %49 = vector.broadcast %38 : vector<8x1xf32> to vector<8x8xf32>
    %50 = arith.mulf %49, %48 : vector<8x8xf32>
    %51 = arith.truncf %41 : vector<8x8xf32> to vector<8x8xbf16>
    %52 = vector.extract_strided_slice %10 {offsets = [0, 0], sizes = [8, 8], strides = [1, 1]} : vector<8x32xbf16> to vector<8x8xbf16>
    %cst_27 = arith.constant dense<0.000000e+00> : vector<8x8xf32>
    %53 = tpu.matmul %51, %52, %cst_27 {dimension_numbers = #tpu.dot_dimension_numbers<[1], [0], [0], [1], [0, 0, 1, 1], [], []>} : vector<8x8xbf16>, vector<8x8xbf16>, vector<8x8xf32> -> vector<8x8xf32>
    %54 = arith.addf %50, %53 : vector<8x8xf32>
    %c0_28 = arith.constant 0 : index
    %c0_29 = arith.constant 0 : index
    %55 = vector.load %arg17[%c0_28, %c0_29] : memref<8x32xf32, #tpu.memory_space<vmem>>, vector<8x8xf32>
    tpu.vector_store %arg17[%c0_28, %c0_29], %54 {strides = array<i32>} : memref<8x32xf32, #tpu.memory_space<vmem>>, vector<8x8xf32>,
    %c0_30 = arith.constant 0 : index
    %c0_31 = arith.constant 0 : index
    %56 = vector.load %arg15[%c0_30, %c0_31] : memref<8x4xf32, #tpu.memory_space<vmem>>, vector<8x1xf32>
    tpu.vector_store %arg15[%c0_30, %c0_31], %36 {strides = array<i32>} : memref<8x4xf32, #tpu.memory_space<vmem>>, vector<8x1xf32>,
    %57 = vector.extract_strided_slice %11 {offsets = [0, 8], sizes = [8, 8], strides = [1, 1]} : vector<8x32xbf16> to vector<8x8xbf16>
    %58 = vector.extract_strided_slice %7 {offsets = [0, 8], sizes = [8, 8], strides = [1, 1]} : vector<8x32xbf16> to vector<8x8xbf16>
    %cst_32 = arith.constant dense<0.000000e+00> : vector<8x8xf32>
    %59 = tpu.matmul %57, %58, %cst_32 {dimension_numbers = #tpu.dot_dimension_numbers<[1], [1], [0], [0], [0, 0, 1, 0], [], []>} : vector<8x8xbf16>, vector<8x8xbf16>, vector<8x8xf32> -> vector<8x8xf32>
    %cst_33 = arith.constant -3.53553395E+19 : f32
    %60 = vector.broadcast %cst_33 : f32 to vector<8x8xf32>
    %61 = arith.select %27, %59, %60 : vector<8x8xi1>, vector<8x8xf32>
    %c0_34 = arith.constant 0 : index
    %c1 = arith.constant 1 : index
    %62 = vector.load %arg15[%c0_34, %c1] : memref<8x4xf32, #tpu.memory_space<vmem>>, vector<8x1xf32>
    %cst_35 = arith.constant dense<0xFF800000> : vector<8xf32>
    %63 = vector.multi_reduction <maximumf>, %61, %cst_35 [1] : vector<8x8xf32> to vector<8xf32>
    %64 = vector.shape_cast %63 : vector<8xf32> to vector<8x1xf32>
    %65 = arith.maximumf %62, %64 : vector<8x1xf32>
    %66 = arith.subf %62, %65 : vector<8x1xf32>
    %67 = math.exp %66 : vector<8x1xf32>
    %68 = vector.broadcast %65 : vector<8x1xf32> to vector<8x8xf32>
    %69 = arith.subf %61, %68 : vector<8x8xf32>
    %70 = math.exp %69 : vector<8x8xf32>
    %c0_36 = arith.constant 0 : index
    %c1_37 = arith.constant 1 : index
    %71 = vector.load %arg16[%c0_36, %c1_37] : memref<8x4xf32, #tpu.memory_space<vmem>>, vector<8x1xf32>
    %72 = arith.mulf %67, %71 : vector<8x1xf32>
    %cst_38 = arith.constant dense<0.000000e+00> : vector<8xf32>
    %73 = vector.multi_reduction <add>, %70, %cst_38 [1] : vector<8x8xf32> to vector<8xf32>
    %74 = vector.shape_cast %73 : vector<8xf32> to vector<8x1xf32>
    %75 = arith.addf %72, %74 : vector<8x1xf32>
    %c0_39 = arith.constant 0 : index
    %c1_40 = arith.constant 1 : index
    %76 = vector.load %arg16[%c0_39, %c1_40] : memref<8x4xf32, #tpu.memory_space<vmem>>, vector<8x1xf32>
    tpu.vector_store %arg16[%c0_39, %c1_40], %75 {strides = array<i32>} : memref<8x4xf32, #tpu.memory_space<vmem>>, vector<8x1xf32>,
    %c0_41 = arith.constant 0 : index
    %c8 = arith.constant 8 : index
    %77 = vector.load %arg17[%c0_41, %c8] : memref<8x32xf32, #tpu.memory_space<vmem>>, vector<8x8xf32>
    %78 = vector.broadcast %67 : vector<8x1xf32> to vector<8x8xf32>
    %79 = arith.mulf %78, %77 : vector<8x8xf32>
    %80 = arith.truncf %70 : vector<8x8xf32> to vector<8x8xbf16>
    %81 = vector.extract_strided_slice %10 {offsets = [0, 8], sizes = [8, 8], strides = [1, 1]} : vector<8x32xbf16> to vector<8x8xbf16>
    %cst_42 = arith.constant dense<0.000000e+00> : vector<8x8xf32>
    %82 = tpu.matmul %80, %81, %cst_42 {dimension_numbers = #tpu.dot_dimension_numbers<[1], [0], [0], [1], [0, 0, 1, 1], [], []>} : vector<8x8xbf16>, vector<8x8xbf16>, vector<8x8xf32> -> vector<8x8xf32>
    %83 = arith.addf %79, %82 : vector<8x8xf32>
    %c0_43 = arith.constant 0 : index
    %c8_44 = arith.constant 8 : index
    %84 = vector.load %arg17[%c0_43, %c8_44] : memref<8x32xf32, #tpu.memory_space<vmem>>, vector<8x8xf32>
    tpu.vector_store %arg17[%c0_43, %c8_44], %83 {strides = array<i32>} : memref<8x32xf32, #tpu.memory_space<vmem>>, vector<8x8xf32>,
    %c0_45 = arith.constant 0 : index
    %c1_46 = arith.constant 1 : index
    %85 = vector.load %arg15[%c0_45, %c1_46] : memref<8x4xf32, #tpu.memory_space<vmem>>, vector<8x1xf32>
    tpu.vector_store %arg15[%c0_45, %c1_46], %65 {strides = array<i32>} : memref<8x4xf32, #tpu.memory_space<vmem>>, vector<8x1xf32>,
    %86 = vector.extract_strided_slice %11 {offsets = [0, 16], sizes = [8, 8], strides = [1, 1]} : vector<8x32xbf16> to vector<8x8xbf16>
    %87 = vector.extract_strided_slice %7 {offsets = [0, 16], sizes = [8, 8], strides = [1, 1]} : vector<8x32xbf16> to vector<8x8xbf16>
    %cst_47 = arith.constant dense<0.000000e+00> : vector<8x8xf32>
    %88 = tpu.matmul %86, %87, %cst_47 {dimension_numbers = #tpu.dot_dimension_numbers<[1], [1], [0], [0], [0, 0, 1, 0], [], []>} : vector<8x8xbf16>, vector<8x8xbf16>, vector<8x8xf32> -> vector<8x8xf32>
    %cst_48 = arith.constant -3.53553395E+19 : f32
    %89 = vector.broadcast %cst_48 : f32 to vector<8x8xf32>
    %90 = arith.select %27, %88, %89 : vector<8x8xi1>, vector<8x8xf32>
    %c0_49 = arith.constant 0 : index
    %c2 = arith.constant 2 : index
    %91 = vector.load %arg15[%c0_49, %c2] : memref<8x4xf32, #tpu.memory_space<vmem>>, vector<8x1xf32>
    %cst_50 = arith.constant dense<0xFF800000> : vector<8xf32>
    %92 = vector.multi_reduction <maximumf>, %90, %cst_50 [1] : vector<8x8xf32> to vector<8xf32>
    %93 = vector.shape_cast %92 : vector<8xf32> to vector<8x1xf32>
    %94 = arith.maximumf %91, %93 : vector<8x1xf32>
    %95 = arith.subf %91, %94 : vector<8x1xf32>
    %96 = math.exp %95 : vector<8x1xf32>
    %97 = vector.broadcast %94 : vector<8x1xf32> to vector<8x8xf32>
    %98 = arith.subf %90, %97 : vector<8x8xf32>
    %99 = math.exp %98 : vector<8x8xf32>
    %c0_51 = arith.constant 0 : index
    %c2_52 = arith.constant 2 : index
    %100 = vector.load %arg16[%c0_51, %c2_52] : memref<8x4xf32, #tpu.memory_space<vmem>>, vector<8x1xf32>
    %101 = arith.mulf %96, %100 : vector<8x1xf32>
    %cst_53 = arith.constant dense<0.000000e+00> : vector<8xf32>
    %102 = vector.multi_reduction <add>, %99, %cst_53 [1] : vector<8x8xf32> to vector<8xf32>
    %103 = vector.shape_cast %102 : vector<8xf32> to vector<8x1xf32>
    %104 = arith.addf %101, %103 : vector<8x1xf32>
    %c0_54 = arith.constant 0 : index
    %c2_55 = arith.constant 2 : index
    %105 = vector.load %arg16[%c0_54, %c2_55] : memref<8x4xf32, #tpu.memory_space<vmem>>, vector<8x1xf32>
    tpu.vector_store %arg16[%c0_54, %c2_55], %104 {strides = array<i32>} : memref<8x4xf32, #tpu.memory_space<vmem>>, vector<8x1xf32>,
    %c0_56 = arith.constant 0 : index
    %c16 = arith.constant 16 : index
    %106 = vector.load %arg17[%c0_56, %c16] : memref<8x32xf32, #tpu.memory_space<vmem>>, vector<8x8xf32>
    %107 = vector.broadcast %96 : vector<8x1xf32> to vector<8x8xf32>
    %108 = arith.mulf %107, %106 : vector<8x8xf32>
    %109 = arith.truncf %99 : vector<8x8xf32> to vector<8x8xbf16>
    %110 = vector.extract_strided_slice %10 {offsets = [0, 16], sizes = [8, 8], strides = [1, 1]} : vector<8x32xbf16> to vector<8x8xbf16>
    %cst_57 = arith.constant dense<0.000000e+00> : vector<8x8xf32>
    %111 = tpu.matmul %109, %110, %cst_57 {dimension_numbers = #tpu.dot_dimension_numbers<[1], [0], [0], [1], [0, 0, 1, 1], [], []>} : vector<8x8xbf16>, vector<8x8xbf16>, vector<8x8xf32> -> vector<8x8xf32>
    %112 = arith.addf %108, %111 : vector<8x8xf32>
    %c0_58 = arith.constant 0 : index
    %c16_59 = arith.constant 16 : index
    %113 = vector.load %arg17[%c0_58, %c16_59] : memref<8x32xf32, #tpu.memory_space<vmem>>, vector<8x8xf32>
    tpu.vector_store %arg17[%c0_58, %c16_59], %112 {strides = array<i32>} : memref<8x32xf32, #tpu.memory_space<vmem>>, vector<8x8xf32>,
    %c0_60 = arith.constant 0 : index
    %c2_61 = arith.constant 2 : index
    %114 = vector.load %arg15[%c0_60, %c2_61] : memref<8x4xf32, #tpu.memory_space<vmem>>, vector<8x1xf32>
    tpu.vector_store %arg15[%c0_60, %c2_61], %94 {strides = array<i32>} : memref<8x4xf32, #tpu.memory_space<vmem>>, vector<8x1xf32>,
    %115 = vector.extract_strided_slice %11 {offsets = [0, 24], sizes = [8, 8], strides = [1, 1]} : vector<8x32xbf16> to vector<8x8xbf16>
    %116 = vector.extract_strided_slice %7 {offsets = [0, 24], sizes = [8, 8], strides = [1, 1]} : vector<8x32xbf16> to vector<8x8xbf16>
    %cst_62 = arith.constant dense<0.000000e+00> : vector<8x8xf32>
    %117 = tpu.matmul %115, %116, %cst_62 {dimension_numbers = #tpu.dot_dimension_numbers<[1], [1], [0], [0], [0, 0, 1, 0], [], []>} : vector<8x8xbf16>, vector<8x8xbf16>, vector<8x8xf32> -> vector<8x8xf32>
    %cst_63 = arith.constant -3.53553395E+19 : f32
    %118 = vector.broadcast %cst_63 : f32 to vector<8x8xf32>
    %119 = arith.select %27, %117, %118 : vector<8x8xi1>, vector<8x8xf32>
    %c0_64 = arith.constant 0 : index
    %c3 = arith.constant 3 : index
    %120 = vector.load %arg15[%c0_64, %c3] : memref<8x4xf32, #tpu.memory_space<vmem>>, vector<8x1xf32>
    %cst_65 = arith.constant dense<0xFF800000> : vector<8xf32>
    %121 = vector.multi_reduction <maximumf>, %119, %cst_65 [1] : vector<8x8xf32> to vector<8xf32>
    %122 = vector.shape_cast %121 : vector<8xf32> to vector<8x1xf32>
    %123 = arith.maximumf %120, %122 : vector<8x1xf32>
    %124 = arith.subf %120, %123 : vector<8x1xf32>
    %125 = math.exp %124 : vector<8x1xf32>
    %126 = vector.broadcast %123 : vector<8x1xf32> to vector<8x8xf32>
    %127 = arith.subf %119, %126 : vector<8x8xf32>
    %128 = math.exp %127 : vector<8x8xf32>
    %c0_66 = arith.constant 0 : index
    %c3_67 = arith.constant 3 : index
    %129 = vector.load %arg16[%c0_66, %c3_67] : memref<8x4xf32, #tpu.memory_space<vmem>>, vector<8x1xf32>
    %130 = arith.mulf %125, %129 : vector<8x1xf32>
    %cst_68 = arith.constant dense<0.000000e+00> : vector<8xf32>
    %131 = vector.multi_reduction <add>, %128, %cst_68 [1] : vector<8x8xf32> to vector<8xf32>
    %132 = vector.shape_cast %131 : vector<8xf32> to vector<8x1xf32>
    %133 = arith.addf %130, %132 : vector<8x1xf32>
    %c0_69 = arith.constant 0 : index
    %c3_70 = arith.constant 3 : index
    %134 = vector.load %arg16[%c0_69, %c3_70] : memref<8x4xf32, #tpu.memory_space<vmem>>, vector<8x1xf32>
    tpu.vector_store %arg16[%c0_69, %c3_70], %133 {strides = array<i32>} : memref<8x4xf32, #tpu.memory_space<vmem>>, vector<8x1xf32>,
    %c0_71 = arith.constant 0 : index
    %c24 = arith.constant 24 : index
    %135 = vector.load %arg17[%c0_71, %c24] : memref<8x32xf32, #tpu.memory_space<vmem>>, vector<8x8xf32>
    %136 = vector.broadcast %125 : vector<8x1xf32> to vector<8x8xf32>
    %137 = arith.mulf %136, %135 : vector<8x8xf32>
    %138 = arith.truncf %128 : vector<8x8xf32> to vector<8x8xbf16>
    %139 = vector.extract_strided_slice %10 {offsets = [0, 24], sizes = [8, 8], strides = [1, 1]} : vector<8x32xbf16> to vector<8x8xbf16>
    %cst_72 = arith.constant dense<0.000000e+00> : vector<8x8xf32>
    %140 = tpu.matmul %138, %139, %cst_72 {dimension_numbers = #tpu.dot_dimension_numbers<[1], [0], [0], [1], [0, 0, 1, 1], [], []>} : vector<8x8xbf16>, vector<8x8xbf16>, vector<8x8xf32> -> vector<8x8xf32>
    %141 = arith.addf %137, %140 : vector<8x8xf32>
    %c0_73 = arith.constant 0 : index
    %c24_74 = arith.constant 24 : index
    %142 = vector.load %arg17[%c0_73, %c24_74] : memref<8x32xf32, #tpu.memory_space<vmem>>, vector<8x8xf32>
    tpu.vector_store %arg17[%c0_73, %c24_74], %141 {strides = array<i32>} : memref<8x32xf32, #tpu.memory_space<vmem>>, vector<8x8xf32>,
    %c0_75 = arith.constant 0 : index
    %c3_76 = arith.constant 3 : index
    %143 = vector.load %arg15[%c0_75, %c3_76] : memref<8x4xf32, #tpu.memory_space<vmem>>, vector<8x1xf32>
    tpu.vector_store %arg15[%c0_75, %c3_76], %123 {strides = array<i32>} : memref<8x4xf32, #tpu.memory_space<vmem>>, vector<8x1xf32>,
    %c0_i32_77 = arith.constant 0 : i32
    %144 = arith.cmpi eq, %arg2, %c0_i32_77 : i32
    %145 = arith.extui %144 : i1 to i32
    %c0_i32_78 = arith.constant 0 : i32
    %146 = arith.cmpi ne, %145, %c0_i32_78 : i32
    scf.if %146 {
      %c0_79 = arith.constant 0 : index
      %c0_80 = arith.constant 0 : index
      %147 = vector.load %arg16[%c0_79, %c0_80] : memref<8x4xf32, #tpu.memory_space<vmem>>, vector<8x4xf32>
      %148 = tpu.reciprocal %147 {approx = true} : vector<8x4xf32> -> vector<8x4xf32>
      %c0_81 = arith.constant 0 : index
      %c0_82 = arith.constant 0 : index
      %149 = vector.load %arg17[%c0_81, %c0_82] : memref<8x32xf32, #tpu.memory_space<vmem>>, vector<8x8xf32>
      %150 = vector.extract_strided_slice %148 {offsets = [0, 0], sizes = [8, 1], strides = [1, 1]} : vector<8x4xf32> to vector<8x1xf32>
      %151 = vector.broadcast %150 : vector<8x1xf32> to vector<8x8xf32>
      %152 = arith.mulf %149, %151 : vector<8x8xf32>
      %c0_83 = arith.constant 0 : index
      %c0_84 = arith.constant 0 : index
      %153 = vector.load %arg17[%c0_83, %c0_84] : memref<8x32xf32, #tpu.memory_space<vmem>>, vector<8x8xf32>
      tpu.vector_store %arg17[%c0_83, %c0_84], %152 {strides = array<i32>} : memref<8x32xf32, #tpu.memory_space<vmem>>, vector<8x8xf32>,
      %c0_85 = arith.constant 0 : index
      %c8_86 = arith.constant 8 : index
      %154 = vector.load %arg17[%c0_85, %c8_86] : memref<8x32xf32, #tpu.memory_space<vmem>>, vector<8x8xf32>
      %155 = vector.extract_strided_slice %148 {offsets = [0, 1], sizes = [8, 1], strides = [1, 1]} : vector<8x4xf32> to vector<8x1xf32>
      %156 = vector.broadcast %155 : vector<8x1xf32> to vector<8x8xf32>
      %157 = arith.mulf %154, %156 : vector<8x8xf32>
      %c0_87 = arith.constant 0 : index
      %c8_88 = arith.constant 8 : index
      %158 = vector.load %arg17[%c0_87, %c8_88] : memref<8x32xf32, #tpu.memory_space<vmem>>, vector<8x8xf32>
      tpu.vector_store %arg17[%c0_87, %c8_88], %157 {strides = array<i32>} : memref<8x32xf32, #tpu.memory_space<vmem>>, vector<8x8xf32>,
      %c0_89 = arith.constant 0 : index
      %c16_90 = arith.constant 16 : index
      %159 = vector.load %arg17[%c0_89, %c16_90] : memref<8x32xf32, #tpu.memory_space<vmem>>, vector<8x8xf32>
      %160 = vector.extract_strided_slice %148 {offsets = [0, 2], sizes = [8, 1], strides = [1, 1]} : vector<8x4xf32> to vector<8x1xf32>
      %161 = vector.broadcast %160 : vector<8x1xf32> to vector<8x8xf32>
      %162 = arith.mulf %159, %161 : vector<8x8xf32>
      %c0_91 = arith.constant 0 : index
      %c16_92 = arith.constant 16 : index
      %163 = vector.load %arg17[%c0_91, %c16_92] : memref<8x32xf32, #tpu.memory_space<vmem>>, vector<8x8xf32>
      tpu.vector_store %arg17[%c0_91, %c16_92], %162 {strides = array<i32>} : memref<8x32xf32, #tpu.memory_space<vmem>>, vector<8x8xf32>,
      %c0_93 = arith.constant 0 : index
      %c24_94 = arith.constant 24 : index
      %164 = vector.load %arg17[%c0_93, %c24_94] : memref<8x32xf32, #tpu.memory_space<vmem>>, vector<8x8xf32>
      %165 = vector.extract_strided_slice %148 {offsets = [0, 3], sizes = [8, 1], strides = [1, 1]} : vector<8x4xf32> to vector<8x1xf32>
      %166 = vector.broadcast %165 : vector<8x1xf32> to vector<8x8xf32>
      %167 = arith.mulf %164, %166 : vector<8x8xf32>
      %c0_95 = arith.constant 0 : index
      %c24_96 = arith.constant 24 : index
      %168 = vector.load %arg17[%c0_95, %c24_96] : memref<8x32xf32, #tpu.memory_space<vmem>>, vector<8x8xf32>
      tpu.vector_store %arg17[%c0_95, %c24_96], %167 {strides = array<i32>} : memref<8x32xf32, #tpu.memory_space<vmem>>, vector<8x8xf32>,
      %c0_97 = arith.constant 0 : index
      %c0_98 = arith.constant 0 : index
      %169 = vector.load %arg17[%c0_97, %c0_98] : memref<8x32xf32, #tpu.memory_space<vmem>>, vector<8x32xf32>
      %170 = arith.truncf %169 : vector<8x32xf32> to vector<8x32xbf16>
      %c0_99 = arith.constant 0 : index
      %c0_100 = arith.constant 0 : index
      %171 = vector.load %arg9[%c0_99, %c0_100] : memref<32x32xbf16, #tpu.memory_space<vmem>>, vector<32x32xbf16>
      %cst_101 = arith.constant dense<0.000000e+00> : vector<8x32xf32>
      %172 = tpu.matmul %170, %171, %cst_101 {dimension_numbers = #tpu.dot_dimension_numbers<[1], [0], [0], [1], [0, 0, 1, 1], [], []>} : vector<8x32xbf16>, vector<32x32xbf16>, vector<8x32xf32> -> vector<8x32xf32>
      %c0_102 = arith.constant 0 : index
      %c0_103 = arith.constant 0 : index
      %173 = vector.load %arg10[%c0_102, %c0_103] : memref<1x32xf32, #tpu.memory_space<vmem>>, vector<1x32xf32>
      %174 = vector.broadcast %173 : vector<1x32xf32> to vector<8x32xf32>
      %175 = arith.addf %172, %174 : vector<8x32xf32>
      %c0_104 = arith.constant 0 : index
      %c0_105 = arith.constant 0 : index
      %c0_106 = arith.constant 0 : index
      %176 = vector.load %arg4[%c0_104, %c0_105, %c0_106] : memref<1x8x32xbf16, #tpu.memory_space<vmem>>, vector<1x8x32xbf16>
      %177 = vector.shape_cast %176 : vector<1x8x32xbf16> to vector<8x32xbf16>
      %178 = arith.extf %177 : vector<8x32xbf16> to vector<8x32xf32>
      %179 = arith.addf %175, %178 : vector<8x32xf32>
      %cst_107 = arith.constant dense<0.000000e+00> : vector<8xf32>
      %180 = vector.multi_reduction <add>, %179, %cst_107 [1] : vector<8x32xf32> to vector<8xf32>
      %181 = vector.shape_cast %180 : vector<8xf32> to vector<8x1xf32>
      %cst_108 = arith.constant 3.200000e+01 : f32
      %182 = vector.broadcast %cst_108 : f32 to vector<8x1xf32>
      %183 = arith.divf %181, %182 : vector<8x1xf32>
      %184 = vector.broadcast %183 : vector<8x1xf32> to vector<8x32xf32>
      %185 = arith.subf %179, %184 : vector<8x32xf32>
      %186 = arith.mulf %185, %185 : vector<8x32xf32>
      %cst_109 = arith.constant dense<0.000000e+00> : vector<8xf32>
      %187 = vector.multi_reduction <add>, %186, %cst_109 [1] : vector<8x32xf32> to vector<8xf32>
      %188 = vector.shape_cast %187 : vector<8xf32> to vector<8x1xf32>
      %cst_110 = arith.constant 3.200000e+01 : f32
      %189 = vector.broadcast %cst_110 : f32 to vector<8x1xf32>
      %190 = arith.divf %188, %189 : vector<8x1xf32>
      %191 = vector.broadcast %183 : vector<8x1xf32> to vector<8x32xf32>
      %192 = arith.subf %179, %191 : vector<8x32xf32>
      %cst_111 = arith.constant 9.99999974E-6 : f32
      %193 = vector.broadcast %cst_111 : f32 to vector<8x1xf32>
      %194 = arith.addf %190, %193 : vector<8x1xf32>
      %195 = math.rsqrt %194 : vector<8x1xf32>
      %196 = vector.broadcast %195 : vector<8x1xf32> to vector<8x32xf32>
      %197 = arith.mulf %192, %196 : vector<8x32xf32>
      %c0_112 = arith.constant 0 : index
      %c0_113 = arith.constant 0 : index
      %198 = vector.load %arg11[%c0_112, %c0_113] : memref<1x32xf32, #tpu.memory_space<vmem>>, vector<1x32xf32>
      %199 = vector.broadcast %198 : vector<1x32xf32> to vector<8x32xf32>
      %200 = arith.mulf %197, %199 : vector<8x32xf32>
      %c0_114 = arith.constant 0 : index
      %c0_115 = arith.constant 0 : index
      %201 = vector.load %arg12[%c0_114, %c0_115] : memref<1x32xf32, #tpu.memory_space<vmem>>, vector<1x32xf32>
      %202 = vector.broadcast %201 : vector<1x32xf32> to vector<8x32xf32>
      %203 = arith.addf %200, %202 : vector<8x32xf32>
      %204 = arith.truncf %203 : vector<8x32xf32> to vector<8x32xbf16>
      %c0_116 = arith.constant 0 : index
      %c0_117 = arith.constant 0 : index
      %c0_118 = arith.constant 0 : index
      %205 = vector.load %arg13[%c0_116, %c0_117, %c0_118] : memref<1x8x32xbf16, #tpu.memory_space<vmem>>, vector<1x8x32xbf16>
      %206 = vector.shape_cast %205 : vector<1x8x32xbf16> to vector<8x32xbf16>
      %207 = vector.shape_cast %204 : vector<8x32xbf16> to vector<1x8x32xbf16>
      tpu.vector_store %arg13[%c0_116, %c0_117, %c0_118], %207 {strides = array<i32>} : memref<1x8x32xbf16, #tpu.memory_space<vmem>>, vector<1x8x32xbf16>,
    } else {
    }
    return
  }
  func.func @transform_0(%arg0: i32, %arg1: i32, %arg2: i32) -> (i32, i32, i32) {
    %c0_i32 = arith.constant 0 : i32
    %c0_i32_0 = arith.constant 0 : i32
    return %arg0, %c0_i32, %arg2 : i32, i32, i32
  }
  func.func @transform_1(%arg0: i32, %arg1: i32, %arg2: i32) -> (i32, i32, i32) {
    %c0_i32 = arith.constant 0 : i32
    %c0_i32_0 = arith.constant 0 : i32
    return %arg0, %arg1, %c0_i32 : i32, i32, i32
  }
  func.func @transform_2(%arg0: i32, %arg1: i32, %arg2: i32) -> (i32, i32, i32) {
    %c0_i32 = arith.constant 0 : i32
    %c0_i32_0 = arith.constant 0 : i32
    return %arg0, %arg2, %c0_i32 : i32, i32, i32
  }
  func.func @transform_3(%arg0: i32, %arg1: i32, %arg2: i32) -> (i32, i32) {
    %c0_i32 = arith.constant 0 : i32
    %c0_i32_0 = arith.constant 0 : i32
    %c0_i32_1 = arith.constant 0 : i32
    return %c0_i32, %c0_i32_0 : i32, i32
  }
  func.func @transform_4(%arg0: i32, %arg1: i32, %arg2: i32) -> (i32, i32) {
    %c0_i32 = arith.constant 0 : i32
    %c0_i32_0 = arith.constant 0 : i32
    %c0_i32_1 = arith.constant 0 : i32
    return %c0_i32, %c0_i32_0 : i32, i32
  }
  func.func @transform_5(%arg0: i32, %arg1: i32, %arg2: i32) -> (i32, i32) {
    %c0_i32 = arith.constant 0 : i32
    %c0_i32_0 = arith.constant 0 : i32
    %c0_i32_1 = arith.constant 0 : i32
    return %c0_i32, %c0_i32_0 : i32, i32
  }
  func.func @transform_6(%arg0: i32, %arg1: i32, %arg2: i32) -> (i32, i32) {
    %c0_i32 = arith.constant 0 : i32
    %c0_i32_0 = arith.constant 0 : i32
    %c0_i32_1 = arith.constant 0 : i32
    return %c0_i32, %c0_i32_0 : i32, i32
  }
  func.func @transform_7(%arg0: i32, %arg1: i32, %arg2: i32) -> (i32, i32) {
    %c0_i32 = arith.constant 0 : i32
    %c0_i32_0 = arith.constant 0 : i32
    %c0_i32_1 = arith.constant 0 : i32
    return %c0_i32, %c0_i32_0 : i32, i32
  }
  func.func @transform_8(%arg0: i32, %arg1: i32, %arg2: i32) -> (i32, i32) {
    %c0_i32 = arith.constant 0 : i32
    %c0_i32_0 = arith.constant 0 : i32
    %c0_i32_1 = arith.constant 0 : i32
    return %c0_i32, %c0_i32_0 : i32, i32
  }
  func.func @transform_9(%arg0: i32, %arg1: i32, %arg2: i32) -> (i32, i32) {
    %c0_i32 = arith.constant 0 : i32
    %c0_i32_0 = arith.constant 0 : i32
    %c0_i32_1 = arith.constant 0 : i32
    return %c0_i32, %c0_i32_0 : i32, i32
  }
  func.func @transform_10(%arg0: i32, %arg1: i32, %arg2: i32) -> (i32, i32, i32) {
    %c0_i32 = arith.constant 0 : i32
    %c0_i32_0 = arith.constant 0 : i32
    return %arg0, %arg1, %c0_i32 : i32, i32, i32
  }
}

module attributes {stable_mosaic.version = 11 : i64} {
  func.func @_linear_kernel(%arg0: i32, %arg1: i32, %arg2: i32, %arg3: memref<16x32xbf16, #tpu.memory_space<vmem>>, %arg4: memref<32x16xbf16, #tpu.memory_space<vmem>>, %arg5: memref<1x16xf32, #tpu.memory_space<vmem>>, %arg6: memref<16x16xf32, #tpu.memory_space<vmem>>, %arg7: memref<16x16xf32, #tpu.memory_space<vmem>>) attributes {dimension_semantics = [#tpu.dimension_semantics<parallel>, #tpu.dimension_semantics<parallel>, #tpu.dimension_semantics<arbitrary>], iteration_bounds = array<i64: 1, 1, 1>, scalar_prefetch = 0 : i64, scratch_operands = 1 : i64, tpu.core_type = #tpu.core_type<tc>, window_params = [{transform_indices = @transform_0, window_bounds = array<i64: 16, 32>}, {transform_indices = @transform_1, window_bounds = array<i64: 32, 16>}, {transform_indices = @transform_2, window_bounds = array<i64: 1, 16>}, {transform_indices = @transform_3, window_bounds = array<i64: 16, 16>}]} {
    %c0_i32 = arith.constant 0 : i32
    %0 = arith.cmpi eq, %arg2, %c0_i32 : i32
    %1 = arith.extui %0 : i1 to i32
    %c0_i32_0 = arith.constant 0 : i32
    %2 = arith.cmpi ne, %1, %c0_i32_0 : i32
    scf.if %2 {
      %cst_10 = arith.constant 0.000000e+00 : f32
      %12 = vector.broadcast %cst_10 : f32 to vector<16x16xf32>
      %c0_11 = arith.constant 0 : index
      %c0_12 = arith.constant 0 : index
      %13 = vector.load %arg7[%c0_11, %c0_12] : memref<16x16xf32, #tpu.memory_space<vmem>>, vector<16x16xf32>
      tpu.vector_store %arg7[%c0_11, %c0_12], %12 {strides = array<i32>} : memref<16x16xf32, #tpu.memory_space<vmem>>, vector<16x16xf32>,
    } else {
    }
    %c0 = arith.constant 0 : index
    %c0_1 = arith.constant 0 : index
    %3 = vector.load %arg7[%c0, %c0_1] : memref<16x16xf32, #tpu.memory_space<vmem>>, vector<16x16xf32>
    %c0_2 = arith.constant 0 : index
    %c0_3 = arith.constant 0 : index
    %4 = vector.load %arg3[%c0_2, %c0_3] : memref<16x32xbf16, #tpu.memory_space<vmem>>, vector<16x32xbf16>
    %c0_4 = arith.constant 0 : index
    %c0_5 = arith.constant 0 : index
    %5 = vector.load %arg4[%c0_4, %c0_5] : memref<32x16xbf16, #tpu.memory_space<vmem>>, vector<32x16xbf16>
    %cst = arith.constant dense<0.000000e+00> : vector<16x16xf32>
    %6 = tpu.matmul %4, %5, %cst {dimension_numbers = #tpu.dot_dimension_numbers<[1], [0], [0], [1], [0, 0, 1, 1], [], []>} : vector<16x32xbf16>, vector<32x16xbf16>, vector<16x16xf32> -> vector<16x16xf32>
    %7 = arith.addf %3, %6 : vector<16x16xf32>
    %c0_6 = arith.constant 0 : index
    %c0_7 = arith.constant 0 : index
    %8 = vector.load %arg7[%c0_6, %c0_7] : memref<16x16xf32, #tpu.memory_space<vmem>>, vector<16x16xf32>
    tpu.vector_store %arg7[%c0_6, %c0_7], %7 {strides = array<i32>} : memref<16x16xf32, #tpu.memory_space<vmem>>, vector<16x16xf32>,
    %c0_i32_8 = arith.constant 0 : i32
    %9 = arith.cmpi eq, %arg2, %c0_i32_8 : i32
    %10 = arith.extui %9 : i1 to i32
    %c0_i32_9 = arith.constant 0 : i32
    %11 = arith.cmpi ne, %10, %c0_i32_9 : i32
    scf.if %11 {
      %c0_10 = arith.constant 0 : index
      %c0_11 = arith.constant 0 : index
      %12 = vector.load %arg7[%c0_10, %c0_11] : memref<16x16xf32, #tpu.memory_space<vmem>>, vector<16x16xf32>
      %c0_12 = arith.constant 0 : index
      %c0_13 = arith.constant 0 : index
      %13 = vector.load %arg5[%c0_12, %c0_13] : memref<1x16xf32, #tpu.memory_space<vmem>>, vector<1x16xf32>
      %14 = vector.broadcast %13 : vector<1x16xf32> to vector<16x16xf32>
      %15 = arith.addf %12, %14 : vector<16x16xf32>
      %cst_14 = arith.constant dense<0xFF800000> : vector<16xf32>
      %16 = vector.multi_reduction <maximumf>, %15, %cst_14 [1] : vector<16x16xf32> to vector<16xf32>
      %17 = vector.shape_cast %16 : vector<16xf32> to vector<16x1xf32>
      %18 = vector.broadcast %17 : vector<16x1xf32> to vector<16x16xf32>
      %19 = arith.subf %15, %18 : vector<16x16xf32>
      %20 = math.exp %19 : vector<16x16xf32>
      %cst_15 = arith.constant dense<0.000000e+00> : vector<16xf32>
      %21 = vector.multi_reduction <add>, %20, %cst_15 [1] : vector<16x16xf32> to vector<16xf32>
      %22 = vector.shape_cast %21 : vector<16xf32> to vector<16x1xf32>
      %23 = vector.broadcast %22 : vector<16x1xf32> to vector<16x16xf32>
      %24 = arith.divf %20, %23 : vector<16x16xf32>
      %c0_16 = arith.constant 0 : index
      %c0_17 = arith.constant 0 : index
      %25 = vector.load %arg6[%c0_16, %c0_17] : memref<16x16xf32, #tpu.memory_space<vmem>>, vector<16x16xf32>
      tpu.vector_store %arg6[%c0_16, %c0_17], %24 {strides = array<i32>} : memref<16x16xf32, #tpu.memory_space<vmem>>, vector<16x16xf32>,
    } else {
    }
    return
  }
  func.func @transform_0(%arg0: i32, %arg1: i32, %arg2: i32) -> (i32, i32) {
    %c0_i32 = arith.constant 0 : i32
    return %arg0, %arg2 : i32, i32
  }
  func.func @transform_1(%arg0: i32, %arg1: i32, %arg2: i32) -> (i32, i32) {
    %c0_i32 = arith.constant 0 : i32
    return %arg2, %arg1 : i32, i32
  }
  func.func @transform_2(%arg0: i32, %arg1: i32, %arg2: i32) -> (i32, i32) {
    %c0_i32 = arith.constant 0 : i32
    %c0_i32_0 = arith.constant 0 : i32
    return %c0_i32, %arg1 : i32, i32
  }
  func.func @transform_3(%arg0: i32, %arg1: i32, %arg2: i32) -> (i32, i32) {
    %c0_i32 = arith.constant 0 : i32
    return %arg0, %arg1 : i32, i32
  }
}

</mosaic_0001>

<bundles_post_ra>
// kernel: transformer_forward.16
= control target key start
LH: loop header
LB: loop body
LE: loop exit
PB: predicated region body
PF: predicated region fallthrough
CT: control target
= control target key end

     0   :  { %v155_v0 = vmov 0.0   ;;  %vm156_vm0 = vmmov 0   ;;  %vm46_vm1 = vcmask 261120   ;;  %s192_s1 = inlined_call_operand.vmem [shape: bf16[32,128], index: 1, kind: input, shape index: {}]   ;;  %s193_s0 = inlined_call_operand.vmem [shape: bf16[16,32], index: 0, kind: input, shape index: {}]   ;;  %s194_s2 = inlined_call_operand.vmem [shape: f32[1,128], index: 2, kind: input, shape index: {}]   ;;  %s195_s3 = inlined_call_operand.vmem [shape: bf16[16,128], index: 3, kind: output, shape index: {}]  }
   0x1   :  { %142 = vmatprep.subr.bf16.mxu0 %v155_v0  ;;  %v152_v1 = vld [vmem:[%s192_s1] sm:$0xff]   ;;  %146 = vmatprep.mubr.msk.bf16.mxu0 %vm156_vm0, %v155_v0  ;;  %v153_v2 = vld [vmem:[%s192_s1 + $0x8] sm:$0xff]  }
   0x2   :  { %143 = vmatpush3.bf16.msra.mxu0 %v152_v1  ;;  %v154_v3 = vld [vmem:[%s193_s0] sm:$0xff]  }
   0x3   :  { %144 = vmatprep.subr.bf16.mxu0 %v155_v0  ;;  %v129_v4 = vld [vmem:[%s194_s2] ss:$0 sm:$0xff] }
   0x6   :  { %145 = vmatpush3.bf16.msra.mxu0 %v153_v2 }
   0x9   :  { %147 = vmatmul.mubr.msk.bf16.vlgmr.msra.gmra.mrb[0].mxu0 %vm46_vm1, %v154_v3 }
  0xdc   :  { %v84_v5 = vpop.f32.mrb[0].mxu0 }
  0xdd   :  { %v107_v6 = vadd.f32 %v129_v4, %v84_v5  ;;  %v148_v7 = vpop.f32.mrb[1].mxu0 }
  0xde   :  { %v87_v8 = vpop.f32.mrb[2].mxu0 }
  0xdf   :  { %v108_v9 = vadd.f32 %v129_v4, %v87_v8  ;;  %v149_v10 = vpop.f32.mrb[3].mxu0  ;;  %v109_v11 = vmax.f32 %v107_v6, 0.0 }
  0xe1   :  { %v110_v12 = vmax.f32 %v108_v9, 0.0 }
  0xe3   :  { %v137_v13 = vpack.c.bf16 %v110_v12, %v109_v11 }
  0xe5   :  { %138 = vst [vmem:[%s195_s3] sm:$0xff] %v137_v13  }

// kernel: transformer_forward.17
= control target key start
LH: loop header
LB: loop body
LE: loop exit
PB: predicated region body
PF: predicated region fallthrough
CT: control target
= control target key end

     0   :  { %vm28_vm0 = vcmask 261120   ;;  %v295_v0 = vmov 0.0   ;;  %vm296_vm1 = vmmov 0   ;;  %vm224_vm2 = vcmask 257024   ;;  %s385_s2 = inlined_call_operand.vmem [shape: bf16[128,32], index: 2, kind: input, shape index: {}]   ;;  %s386_s0 = inlined_call_operand.vmem [shape: bf16[16,128], index: 0, kind: input, shape index: {}]   ;;  %s387_s1 = inlined_call_operand.vmem [shape: bf16[16,32], index: 1, kind: input, shape index: {}]   ;;  %s388_s3 = inlined_call_operand.vmem [shape: f32[1,32], index: 3, kind: input, shape index: {}]   ;;  %s389_s4 = inlined_call_operand.vmem [shape: f32[1,32], index: 4, kind: input, shape index: {}]   ;;  %s390_s5 = inlined_call_operand.vmem [shape: f32[1,32], index: 5, kind: input, shape index: {}]   ;;  %s391_s6 = inlined_call_operand.vmem [shape: bf16[16,32], index: 6, kind: output, shape index: {}]  }
   0x1   :  { %260 = vmatprep.subr.bf16.mxu0 %v295_v0  ;;  %v282_v1 = vld [vmem:[%s385_s2] sm:$0xff]   ;;  %276 = vmatprep.mubr.msk.bf16.mxu0 %vm296_vm1, %v295_v0  ;;  %29 = vst.msk [vmem:[#allocation2] sm:$0xff] %vm28_vm0, %v295_v0  ;;  %30 = vst.msk [vmem:[#allocation2 + $0x8] sm:$0xff] %vm28_vm0, %v295_v0  ;;  %v283_v2 = vld [vmem:[%s385_s2 + $0x8] sm:$0xff]  }
   0x2   :  { %261 = vmatpush3.bf16.msra.mxu0 %v282_v1  ;;  %v284_v3 = vld [vmem:[%s385_s2 + $0x10] sm:$0xff]   ;;  %v285_v4 = vld [vmem:[%s385_s2 + $0x18] sm:$0xff]   ;;  %v286_v5 = vld [vmem:[%s385_s2 + $0x20] sm:$0xff]  }
   0x3   :  { %262 = vmatprep.subr.bf16.mxu0 %v295_v0  ;;  %v287_v6 = vld [vmem:[%s385_s2 + $0x28] sm:$0xff]   ;;  %v288_v7 = vld [vmem:[%s385_s2 + $0x30] sm:$0xff]   ;;  %v289_v8 = vld [vmem:[%s385_s2 + $0x38] sm:$0xff]  }
   0x4   :  { %v290_v9 = vld [vmem:[%s386_s0] sm:$0xff]  }
   0x5   :  { %v248_v18 = vld [vmem:[%s387_s1] sm:$0xff]  }
   0x6   :  { %263 = vmatpush3.bf16.msra.mxu0 %v283_v2  ;;  %v240_v19 = vld [vmem:[%s388_s3] ss:$0 sm:$0xff]  ;;  %v249_v20 = vunpack.c.l.bf16 %v248_v18  ;;  %v250_v23 = vunpack.c.h.bf16 %v248_v18 }
   0x7   :  { %264 = vmatprep.subr.bf16.mxu0 %v295_v0  ;;  %v241_v47 = vld [vmem:[%s389_s4] ss:$0 sm:$0xff] }
   0x8   :  { %v31_v10 = vld [vmem:[#allocation2] sm:$0xff]  ;;  %v32_v12 = vld [vmem:[#allocation2 + $0x8] sm:$0xff] }
   0x9   :  { %v242_v49 = vld [vmem:[%s390_s5] ss:$0 sm:$0xff] }
   0xa   :  { %265 = vmatpush3.bf16.msra.mxu0 %v284_v3 }
   0xb   :  { %266 = vmatprep.subr.bf16.mxu0 %v295_v0 }
   0xe   :  { %267 = vmatpush3.bf16.msra.mxu0 %v285_v4 }
   0xf   :  { %268 = vmatprep.subr.bf16.mxu0 %v295_v0 }
  0x12   :  { %269 = vmatpush3.bf16.msra.mxu0 %v286_v5 }
  0x13   :  { %270 = vmatprep.subr.bf16.mxu0 %v295_v0 }
  0x16   :  { %271 = vmatpush3.bf16.msra.mxu0 %v287_v6 }
  0x17   :  { %272 = vmatprep.subr.bf16.mxu0 %v295_v0 }
  0x1a   :  { %273 = vmatpush3.bf16.msra.mxu0 %v288_v7 }
  0x1b   :  { %274 = vmatprep.subr.bf16.mxu0 %v295_v0 }
  0x1e   :  { %275 = vmatpush3.bf16.msra.mxu0 %v289_v8 }
  0x21   :  { %277 = vmatmul.mubr.bf16.vlgmr.msra.gmra.mrb[0].mxu0 %v290_v9 }
  0xf4   :  { %v139_v11 = vpop.f32.mrb[0].mxu0 }
  0xf5   :  { %v146_v13 = vadd.f32 %v139_v11, %v31_v10  ;;  %v278_v14 = vpop.f32.mrb[1].mxu0 }
  0xf6   :  { %v142_v15 = vpop.f32.mrb[2].mxu0 }
  0xf7   :  { %149 = vst.msk [vmem:[#allocation2] sm:$0xff] %vm28_vm0, %v146_v13  ;;  %v147_v16 = vadd.f32 %v142_v15, %v32_v12  ;;  %v279_v17 = vpop.f32.mrb[3].mxu0 }
  0xf9   :  { %150 = vst.msk [vmem:[#allocation2 + $0x8] sm:$0xff] %vm28_vm0, %v147_v16 }
  0xfe   :  { %v154_v21 = vld [vmem:[#allocation2] sm:$0xff] }
  0xff   :  { %v163_v22 = vadd.f32 %v240_v19, %v154_v21 }
 0x100   :  { %v155_v24 = vld [vmem:[#allocation2 + $0x8] sm:$0xff] }
 0x101   :  { %v169_v25 = vadd.f32 %v249_v20, %v163_v22  ;;  %v164_v26 = vadd.f32 %v240_v19, %v155_v24 }
 0x103   :  { %v171_v27 = vsel %vm28_vm0, %v169_v25, 0.0  ;;  %v170_v28 = vadd.f32 %v250_v23, %v164_v26 }
 0x104   :  { %172 = vadd.xlane.f32.xlu0 %v171_v27 }
 0x105   :  { %v174_v29 = vsel %vm28_vm0, %v170_v28, 0.0 }
 0x108   :  { %175 = vadd.xlane.f32.xlu0 %v174_v29 }
 0x191   :  { %v173_v30 = vpop.xlane.xlu0 %172 }
 0x192   :  { %v178_v31 = vmul.f32 0.03125, %v173_v30 }
 0x194   :  { %v180_v32 = vsub.f32 %v169_v25, %v178_v31 }
 0x195   :  { %v176_v33 = vpop.xlane.xlu0 %175 }
 0x196   :  { %v179_v34 = vmul.f32 0.03125, %v176_v33  ;;  %v182_v35 = vmul.f32 %v180_v32, %v180_v32 }
 0x198   :  { %v181_v36 = vsub.f32 %v170_v28, %v179_v34  ;;  %v184_v37 = vsel %vm28_vm0, %v182_v35, 0.0 }
 0x199   :  { %185 = vadd.xlane.f32.xlu1 %v184_v37 }
 0x19a   :  { %v183_v38 = vmul.f32 %v181_v36, %v181_v36 }
 0x19c   :  { %v187_v39 = vsel %vm28_vm0, %v183_v38, 0.0 }
 0x19d   :  { %188 = vadd.xlane.f32.xlu1 %v187_v39 }
 0x226   :  { %v186_v40 = vpop.xlane.xlu1 %185 }
 0x227   :  { %v190_v41 = vmul.f32 0.03125, %v186_v40 }
 0x229   :  { %v192_v42 = vadd.f32 1e-05, %v190_v41 }
 0x22a   :  { %v189_v43 = vpop.xlane.xlu1 %188 }
 0x22b   :  { %291 = vrsqrt.f32 %v192_v42  ;;  %v191_v44 = vmul.f32 0.03125, %v189_v43 }
 0x22d   :  { %v193_v45 = vadd.f32 1e-05, %v191_v44 }
 0x22f   :  { %293 = vrsqrt.f32 %v193_v45 }
 0x235   :  { %v292_v46 = vpop.eup %291 }
 0x236   :  { %v196_v48 = vmul.f32 %v292_v46, %v180_v32 }
 0x238   :  { %v205_v50 = vmul.f32 %v241_v47, %v196_v48 }
 0x239   :  { %v294_v51 = vpop.eup %293 }
 0x23a   :  { %v214_v52 = vadd.f32 %v242_v49, %v205_v50  ;;  %v197_v53 = vmul.f32 %v294_v51, %v181_v36 }
 0x23c   :  { %v245_v54 = vpack.c.bf16 %v214_v52, %v214_v52  ;;  %v206_v55 = vmul.f32 %v241_v47, %v197_v53 }
 0x23e   :  { %225 = vst.msk [vmem:[%s391_s6] sm:$0xf] %vm224_vm2, %v245_v54  ;;  %v215_v56 = vadd.f32 %v242_v49, %v206_v55 }
 0x240   :  { %v246_v57 = vpack.c.bf16 %v215_v56, %v215_v56 }
 0x242   :  { %226 = vst.msk [vmem:[%s391_s6 + $0x4] sm:$0xf] %vm224_vm2, %v246_v57 }

// kernel: transformer_forward.15
= control target key start
LH: loop header
LB: loop body
LE: loop exit
PB: predicated region body
PF: predicated region fallthrough
CT: control target
= control target key end

     0   :  { %s1755_s13 = smov 0   ;;  %s1757_s14 = smov 0   ;;  %s2022_s0 = inlined_call_operand.vmem [shape: f32[2,1,8], index: 0, kind: input, shape index: {}]   ;;  %s2023_s1 = inlined_call_operand.vmem [shape: bf16[2,8,32], index: 1, kind: input, shape index: {}, may-alias: {1,2}]   ;;  %s2024_s2 = inlined_call_operand.vmem [shape: bf16[2,8,32], index: 2, kind: input, shape index: {}, may-alias: {1,2}]   ;;  %s2025_s3 = inlined_call_operand.vmem [shape: bf16[32,32], index: 3, kind: input, shape index: {}]   ;;  %s2026_s4 = inlined_call_operand.vmem [shape: bf16[32,32], index: 4, kind: input, shape index: {}]   ;;  %s2027_s5 = inlined_call_operand.vmem [shape: bf16[32,32], index: 5, kind: input, shape index: {}]   ;;  %s2028_s6 = inlined_call_operand.vmem [shape: bf16[32,32], index: 6, kind: input, shape index: {}]   ;;  %s2029_s7 = inlined_call_operand.vmem [shape: f32[1,32], index: 7, kind: input, shape index: {}]   ;;  %s2030_s8 = inlined_call_operand.vmem [shape: f32[1,32], index: 8, kind: input, shape index: {}]   ;;  %s2031_s9 = inlined_call_operand.vmem [shape: f32[1,32], index: 9, kind: input, shape index: {}]   ;;  %s2032_s10 = inlined_call_operand.vmem [shape: bf16[2,8,32], index: 10, kind: output, shape index: {}]  }
   0x1   :  { %s1759_s15 = smov 0  }
   0x2 LB: > { %s39_s16 = sadd.s32 1, %s1681_s14  ;;  %p1446_p0 = scmp.ge.s32.totalorder %s1685_s15, 1  ;;  %s1685_s15 = sphi %s1759_s15, %s20_s15   ;;  %s1681_s14 = sphi %s1757_s14, %s2034_s14   ;;  %s1677_s13 = sphi %s1755_s13, %s2033_s13  }
   0x3   : > { %p41_p1 = scmp.ge.s32.totalorder %s39_s16, 2  ;;  %p364_p2 = scmp.lt.s32.totalorder %s1685_s15, 3 }
   0x5   : > { %s2036_s16 = smov (%p41_p1, %s39_s16), 0  ;;  %p365_p3 = pnand %p1446_p0, %p364_p2 }
   0x6   : > { %v1634_v0 = vld [vmem:[%s2025_s3] sm:$0xff] (!%p365_p3)   ;;  %v1687_v1 = vmov (!%p365_p3), 0.0   ;;  %v1636_v3 = vld [vmem:[%s2025_s3 + $0x8] sm:$0xff] (!%p365_p3)   ;;  %vm1688_vm0 = vmmov (!%p365_p3), 0   ;;  %p419_p4 = scmp.lt.s32.totalorder (!%p365_p3), %s1677_s13, 1  ;;  %vm468_vm1 = vcmask (!%p365_p3), 261120   ;;  %v643_v33 = vlaneseq (!%p365_p3) }
   0x7   : > { %368 = sbr.rel (%p365_p3) target bundleno = 1807 (0x70f), region = 60  ;;  %1504 = vmatprep.subr.bf16.mxu0 (!%p365_p3), %v1687_v1  ;;  %1512 = vmatprep.subr.bf16.mxu1 (!%p365_p3), %v1687_v1  ;;  %v1635_v2 = vld [vmem:[%s2026_s4] sm:$0xff] (!%p365_p3)   ;;  %v1637_v4 = vld [vmem:[%s2026_s4 + $0x8] sm:$0xff] (!%p365_p3)   ;;  %519 = vst.msk [vmem:[#allocation5] sm:$0xff] (!%p365_p3), %vm468_vm1, %v1687_v1  ;;  %vm648_vm2 = vcmask (!%p365_p3), 64512   ;;  %vm514_vm3 = vcmask (!%p365_p3), 257024  }
   0x8   : > { %1505 = vmatpush3.bf16.msra.mxu0 (!%p365_p3), %v1634_v0  ;;  %1508 = vmatprep.mubr.msk.bf16.mxu0 (!%p365_p3), %vm1688_vm0, %v1687_v1  ;;  %s1689_s12 = smov (!%p365_p3), 120   ;;  %s1690_s17 = smov (!%p365_p3), 112   ;;  %v1692_v21 = vmov (!%p365_p3), 0   ;;  %v1639_v22 = vld [vmem:[%s2027_s5] sm:$0xff] (!%p365_p3)   ;;  %v1640_v23 = vld [vmem:[%s2027_s5 + $0x8] sm:$0xff] (!%p365_p3)   ;;  %v644_v35 = vshrl.u32 (!%p365_p3), %v643_v33, 7 }
   0x9   : > { %1513 = vmatpush3.bf16.msra.mxu1 (!%p365_p3), %v1635_v2  ;;  %1506 = vmatprep.subr.bf16.mxu0 (!%p365_p3), %v1687_v1  ;;  %s1691_s18 = smov (!%p365_p3), 104   ;;  %vm516_vm6 = vcmask (!%p365_p3), 31744   ;;  %v1693_v45 = vmov (!%p365_p3), -inf   ;;  %v1694_v0 = vmov (!%p365_p3), 1   ;;  %vm718_vm7 = vcmask (!%p365_p3), 7168   ;;  %s1698_s27 = smov (!%p365_p3), 16  }
   0xa   : > { %1514 = vmatprep.subr.bf16.mxu1 (!%p365_p3), %v1687_v1  ;;  %1516 = vmatprep.mubr.msk.bf16.mxu1 (!%p365_p3), %vm1688_vm0, %v1687_v1  ;;  %v645_v36 = vsub.s32 (!%p365_p3), 0, %v644_v35  ;;  %517 = vst.msk [vmem:[#allocation3] sm:$0xff] (!%p365_p3), %vm516_vm6, %v1693_v45  ;;  %518 = vst.msk [vmem:[#allocation4] sm:$0xff] (!%p365_p3), %vm516_vm6, %v1687_v1  ;;  %vm731_vm8 = vcmask (!%p365_p3), 1043456   ;;  %vm855_vm9 = vcmask (!%p365_p3), 15368   ;;  %vm995_vm10 = vcmask (!%p365_p3), 23568  }
   0xb   : > { %1621 = vset.pattern.permute.xlu1 (!%p365_p3), %v1692_v21  ;;  %1622 = vset.pattern.permute.xlu0 (!%p365_p3), %v1694_v0  ;;  %vm1134_vm11 = vcmask (!%p365_p3), 31768   ;;  %s1699_s29 = smov (!%p365_p3), 24   ;;  %vm919_vm12 = vcmask (!%p365_p3), 130112   ;;  %vm1058_vm13 = vcmask (!%p365_p3), 195712   ;;  %vm1197_vm14 = vcmask (!%p365_p3), 261312  }
   0xc   : > { %1507 = vmatpush3.bf16.msra.mxu0 (!%p365_p3), %v1636_v3 }
   0xd   : > { %1515 = vmatpush3.bf16.msra.mxu1 (!%p365_p3), %v1637_v4  ;;  %1520 = vmatprep.subr.bf16.mxu0 (!%p365_p3), %v1687_v1 }
   0xe   : > { %s2038_s13 = smov (!%p419_p4, %s1677_s13), 1  ;;  %1528 = vmatprep.subr.bf16.mxu1 %v1687_v1 }
   0xf   : > { %s1798_s25 = sshll.u32 %s2038_s13, 2  ;;  %s424_s26 = scalar_lea.vmem %s2022_s0, %s2038_s13 }
  0x10   : > { %s1804_s28 = scalar_lea.vmem %s2023_s1, %s1798_s25  ;;  %s438_s11 = scalar_lea.vmem %s2024_s2, %s1798_s25  ;;  %v640_v34 = vld [vmem:[%s424_s26] sm:$0x1] }
  0x11   : > { %v451_v5 = vld [vmem:[%s1804_s28] sm:$0xf]  ;;  %vm641_vm4 = vcmp.ne.f32.partialorder %v640_v34, 0.0  ;;  %v1885_v2 = vld [vmem:[#allocation3] sm:$0xff]  ;;  %s1697_s13 = smov 8   ;;  %s445_s26 = scalar_lea.vmem %s2032_s10, %s1798_s25 }
  0x12   : > { %1509 = vmatmul.mubr.msk.bf16.vlgmr.msra.gmra.mrb[0].mxu0 %vm468_vm1, %v451_v5  ;;  %v520_v6 = vld [vmem:[%s438_s11] sm:$0xf]  ;;  %v642_v37 = vsel %vm641_vm4, 1, %v1692_v21 }
  0x13   : > { %1517 = vmatmul.mubr.msk.bf16.vlgmr.msra.gmra.mrb[0].mxu1 %vm468_vm1, %v520_v6  ;;  %1524 = vmatprep.mubr.msk.bf16.mxu0 %vm1688_vm0, %v1687_v1  ;;  %v646_v38 = vrot.slane %v642_v37, %v645_v36 }
  0x14   : > { %1530 = vmatprep.mubr.msk.bf16.mxu1 %vm1688_vm0, %v1687_v1  ;;  %1521 = vmatpush3.bf16.msra.mxu0 %v1639_v22 }
  0x15   : > { %1522 = vmatprep.subr.bf16.mxu0 %v1687_v1  ;;  %vm647_vm5 = vcmp.eq.s32.totalorder %v646_v38, 1 }
  0x18   : > { %1523 = vmatpush3.bf16.msra.mxu0 %v1640_v23 }
  0x19   : > { %1534 = vmatprep.subr.bf16.mxu0 %v1687_v1 }
  0x1b   : > { %1525 = vmatmul.mubr.msk.bf16.vlgmr.msra.gmra.mrb[4].mxu0 %vm468_vm1, %v520_v6 }
  0x1c   : > { %1536 = vmatprep.mubr.msk.bf16.mxu0 %vm1688_vm0, %v1687_v1 }
  0xe5   : > { %v506_v7 = vpop.f32.mrb[0].mxu0 }
  0xe6   : > { %v512_v8 = vmul.f32 0.35355338, %v506_v7  ;;  %v1510_v9 = vpop.f32.mrb[1].mxu0  ;;  %v575_v10 = vpop.f32.mrb[0].mxu1 }
  0xe7   : > { %v581_v11 = vpack.c.bf16 %v575_v10, %v575_v10  ;;  %v509_v12 = vpop.f32.mrb[2].mxu0  ;;  %v1518_v13 = vpop.f32.mrb[1].mxu1 }
  0xe8   : > { %v513_v14 = vpack.c.bf16 %v512_v8, %v512_v8  ;;  %v1511_v15 = vpop.f32.mrb[3].mxu0  ;;  %v578_v16 = vpop.f32.mrb[2].mxu1  ;;  %v1695_v8 = vmov 2  }
  0xe9   : > { %v1519_v17 = vpop.f32.mrb[3].mxu1  ;;  %784 = vrot.lane.b32.xlu0 %v581_v11, %s1689_s12  ;;  %v653_v18 = vsel %vm648_vm2, %v581_v11, 0  ;;  %924 = vrot.lane.b32.xlu1 %v581_v11, %s1690_s17 }
  0xea   : > { %515 = vst.msk [vmem:[#allocation2] sm:$0xf] %vm514_vm3, %v513_v14  ;;  %1529 = vmatpush3.bf16.xpose.msra.mxu1 %v653_v18 }
  0xeb   : > { %1540 = vmatprep.subr.bf16.mxu1 %v1687_v1 }
  0xee   : > { %v632_v6 = vpop.f32.mrb[4].mxu0 }
  0xef   : > { %v1526_v7 = vpop.f32.mrb[5].mxu0 }
  0xf0   : > { %v635_v9 = vpop.f32.mrb[6].mxu0 }
  0xf1   : > { %v639_v19 = vld [vmem:[#allocation2] sm:$0xf]  ;;  %v1527_v10 = vpop.f32.mrb[7].mxu0 }
  0xf2   : > { %1531 = vmatmul.mubr.msk.bf16.vlgmr.msra.gmra.mrb[4].mxu1 %vm648_vm2, %v639_v19  ;;  %v1461_v20 = vcombine.low %v639_v19, %v639_v19 }
  0xf3   : > { %1542 = vmatprep.mubr.msk.bf16.mxu1 %vm1688_vm0, %v1687_v1 }
  0xf4   : > { %922 = vrot.lane.b32.xlu1 %v1461_v20, %s1690_s17  ;;  %781 = vrot.lane.b32.xlu0 %v1461_v20, %s1689_s12 }
  0xf8   : > { %1061 = vrot.lane.b32.xlu1 %v1461_v20, %s1691_s18  ;;  %1063 = vrot.lane.b32.xlu0 %v581_v11, %s1691_s18  ;;  %v638_v11 = vpack.c.bf16 %v632_v6, %v632_v6 }
  0xfa   : > { %v733_v12 = vsel %vm731_vm8, %v638_v11, 0 }
  0xfb   : > { %1535 = vmatpush3.bf16.msra.mxu0 %v733_v12  ;;  %v720_v12 = vld [vmem:[#allocation5] sm:$0xff] }
  0xfc   : > { %1546 = vmatprep.subr.bf16.mxu0 %v1687_v1 }
 0x15b   : > { %v785_v24 = vpop.permute.xlu0 %784  ;;  %v925_v26 = vpop.permute.xlu1 %924 }
 0x15c   : > { %v790_v25 = vsel %vm648_vm2, %v785_v24, 0  ;;  %v930_v28 = vsel %vm648_vm2, %v925_v26, 0 }
 0x15d   : > { %1541 = vmatpush3.bf16.xpose.msra.mxu1 %v790_v25  ;;  %v1696_v25 = vmov 3  }
 0x15e   : > { %1552 = vmatprep.subr.bf16.mxu1 %v1687_v1 }
 0x166   : > { %v782_v27 = vpop.permute.xlu0 %781  ;;  %v923_v30 = vpop.permute.xlu1 %922 }
 0x167   : > { %1543 = vmatmul.mubr.msk.bf16.vlgmr.msra.gmra.mrb[8].mxu1 %vm648_vm2, %v782_v27 }
 0x168   : > { %1553 = vmatpush3.bf16.xpose.msra.mxu1 %v930_v28  ;;  %1554 = vmatprep.mubr.msk.bf16.mxu1 %vm1688_vm0, %v1687_v1 }
 0x169   : > { %1564 = vmatprep.subr.bf16.mxu1 %v1687_v1 }
 0x16a   : > { %v1064_v29 = vpop.permute.xlu0 %1063  ;;  %v1062_v32 = vpop.permute.xlu1 %1061 }
 0x16b   : > { %v1069_v31 = vsel %vm648_vm2, %v1064_v29, 0 }
 0x16f   : > { %1555 = vmatmul.mubr.msk.bf16.vlgmr.msra.gmra.mrb[12].mxu1 %vm648_vm2, %v923_v30 }
 0x170   : > { %1565 = vmatpush3.bf16.xpose.msra.mxu1 %v1069_v31  ;;  %1566 = vmatprep.mubr.msk.bf16.mxu1 %vm1688_vm0, %v1687_v1 }
 0x171   : > { %1576 = vmatprep.subr.bf16.mxu1 %v1687_v1 }
 0x177   : > { %1567 = vmatmul.mubr.msk.bf16.vlgmr.msra.gmra.mrb[16].mxu1 %vm648_vm2, %v1062_v32 }
 0x178   : > { %1580 = vmatprep.mubr.msk.bf16.mxu1 %vm1688_vm0, %v1687_v1 }
 0x1c5   : > { %v689_v39 = vpop.f32.mrb[4].mxu1 }
 0x1c6   : > { %v1864_v40 = vsel %vm647_vm5, %v689_v39, -3.535534e+19  ;;  %v1532_v41 = vpop.f32.mrb[5].mxu1 }
 0x1c7   : > { %v692_v42 = vpop.f32.mrb[6].mxu1  ;;  %v697_v43 = vsel %vm648_vm2, %v1864_v40, -inf }
 0x1c8   : > { %v1533_v44 = vpop.f32.mrb[7].mxu1  ;;  %698 = vmax.xlane.f32.xlu0 %v697_v43 }
 0x23a   : > { %v826_v46 = vpop.f32.mrb[8].mxu1 }
 0x23b   : > { %v1870_v47 = vsel %vm647_vm5, %v826_v46, -3.535534e+19  ;;  %v1544_v48 = vpop.f32.mrb[9].mxu1 }
 0x23c   : > { %v829_v49 = vpop.f32.mrb[10].mxu1  ;;  %v834_v50 = vsel %vm648_vm2, %v1870_v47, -inf }
 0x23d   : > { %v1545_v51 = vpop.f32.mrb[11].mxu1  ;;  %835 = vmax.xlane.f32.xlu1 %v834_v50 }
 0x242   : > { %v966_v52 = vpop.f32.mrb[12].mxu1 }
 0x243   : > { %v1875_v53 = vsel %vm647_vm5, %v966_v52, -3.535534e+19  ;;  %v1556_v54 = vpop.f32.mrb[13].mxu1 }
 0x244   : > { %v969_v55 = vpop.f32.mrb[14].mxu1  ;;  %v974_v56 = vsel %vm648_vm2, %v1875_v53, -inf }
 0x245   : > { %v1557_v57 = vpop.f32.mrb[15].mxu1  ;;  %975 = vmax.xlane.f32.xlu0 %v974_v56 }
 0x24a   : > { %v1105_v58 = vpop.f32.mrb[16].mxu1 }
 0x24b   : > { %v1880_v59 = vsel %vm647_vm5, %v1105_v58, -3.535534e+19  ;;  %v1568_v60 = vpop.f32.mrb[17].mxu1 }
 0x24c   : > { %v1108_v61 = vpop.f32.mrb[18].mxu1  ;;  %v1113_v62 = vsel %vm648_vm2, %v1880_v59, -inf }
 0x24d   : > { %v1569_v63 = vpop.f32.mrb[19].mxu1  ;;  %1114 = vmax.xlane.f32.xlu0 %v1113_v62  ;;  %v712_v61 = vld [vmem:[#allocation4] sm:$0xff] }
 0x255   : > { %v699_v3 = vpop.xlane.xlu0 %698 }
 0x256   : > { %v1888_v4 = vmax.f32 %v1885_v2, %v699_v3 }
 0x258   : > { %v701_v5 = vsub.f32 %v1885_v2, %v1888_v4  ;;  %777 = vst.msk [vmem:[#allocation3] sm:$0xff] %vm718_vm7, %v1888_v4  ;;  %706 = vperm.xlu1 %1621, %v1888_v4  }
 0x25c   : > { %1623 = vset.pattern.permute.xlu1 %v1695_v8 }
 0x25f   : > { %v1898_v14 = vld [vmem:[#allocation3] sm:$0xff] }
 0x2ca   : > { %v836_v13 = vpop.xlane.xlu1 %835 }
 0x2cb   : > { %v1901_v15 = vmax.f32 %v1898_v14, %v836_v13 }
 0x2cd   : > { %v838_v16 = vsub.f32 %v1898_v14, %v1901_v15  ;;  %921 = vst.msk [vmem:[#allocation3] sm:$0xff] %vm855_vm9, %v1901_v15  ;;  %843 = vperm.xlu0 %1622, %v1901_v15  }
 0x2d1   : > { %1625 = vset.pattern.permute.xlu0 %v1692_v21 }
 0x2d2   : > { %v976_v18 = vpop.xlane.xlu0 %975 }
 0x2d4   : > { %v1909_v17 = vld [vmem:[#allocation3] sm:$0xff] }
 0x2d5   : > { %v1912_v19 = vmax.f32 %v1909_v17, %v976_v18 }
 0x2d7   : > { %v978_v20 = vsub.f32 %v1909_v17, %v1912_v19  ;;  %1060 = vst.msk [vmem:[#allocation3] sm:$0xff] %vm995_vm10, %v1912_v19  ;;  %v707_v22 = vpop.permute.xlu1 %706  ;;  %983 = vperm.xlu1 %1623, %v1912_v19  }
 0x2d8   : > { %v709_v23 = vsub.f32 %v1864_v40, %v707_v22 }
 0x2d9   : > { %v979_v7 = vmul.f32 1.442695, %v978_v20 }
 0x2da   : > { %v710_v24 = vmul.f32 1.442695, %v709_v23  ;;  %v1115_v27 = vpop.xlane.xlu0 %1114 }
 0x2db   : > { %866 = vrot.lane.b32.xlu1 %v638_v11, %s1689_s12 }
 0x2dc   : > { %1643 = vpow2.f32 %v710_v24  ;;  %1624 = vset.pattern.permute.xlu1 %v1696_v25 }
 0x2de   : > { %v1922_v26 = vld [vmem:[#allocation3] sm:$0xff] }
 0x2df   : > { %v1925_v28 = vmax.f32 %v1922_v26, %v1115_v27 }
 0x2e1   : > { %v1117_v29 = vsub.f32 %v1922_v26, %v1925_v28  ;;  %1199 = vst.msk [vmem:[#allocation3] sm:$0xff] %vm1134_vm11, %v1925_v28  ;;  %1122 = vperm.xlu1 %1624, %v1925_v28  }
 0x2e3   : > { %v1118_v13 = vmul.f32 1.442695, %v1117_v29 }
 0x2e5   : > { %1005 = vrot.lane.b32.xlu1 %v638_v11, %s1690_s17 }
 0x2e6   : > { %v1644_v30 = vpop.eup %1643  ;;  %1626 = vset.pattern.permute.xlu1 %v1694_v0 }
 0x2e7   : > { %v727_v31 = vpack.c.bf16 %v1644_v30, %v1644_v30  ;;  %v714_v32 = vsel %vm648_vm2, %v1644_v30, 0.0 }
 0x2e9   : > { %1537 = vmatmul.mubr.msk.bf16.vlgmr.msra.gmra.mrb[8].mxu0 %vm648_vm2, %v727_v31  ;;  %1144 = vrot.lane.b32.xlu1 %v638_v11, %s1691_s18 }
 0x2ea   : > { %1548 = vmatprep.mubr.msk.bf16.mxu0 %vm1688_vm0, %v1687_v1 }
 0x30d   : > { %715 = vadd.xlane.f32.xlu1 %v714_v32 }
 0x34c   : > { %v844_v33 = vpop.permute.xlu0 %843 }
 0x34d   : > { %v846_v34 = vsub.f32 %v1870_v47, %v844_v33  ;;  %v702_v47 = vmul.f32 1.442695, %v701_v5 }
 0x34f   : > { %v847_v35 = vmul.f32 1.442695, %v846_v34 }
 0x351   : > { %1645 = vpow2.f32 %v847_v35 }
 0x356   : > { %v984_v36 = vpop.permute.xlu1 %983 }
 0x357   : > { %v986_v37 = vsub.f32 %v1875_v53, %v984_v36 }
 0x359   : > { %v987_v38 = vmul.f32 1.442695, %v986_v37 }
 0x35a   : > { %v867_v39 = vpop.permute.xlu1 %866 }
 0x35b   : > { %v1646_v40 = vpop.eup %1645  ;;  %1647 = vpow2.f32 %v987_v38  ;;  %v872_v41 = vsel %vm731_vm8, %v867_v39, 0 }
 0x35c   : > { %1547 = vmatpush3.bf16.msra.mxu0 %v872_v41  ;;  %v851_v42 = vsel %vm648_vm2, %v1646_v40, 0.0  ;;  %v864_v43 = vpack.c.bf16 %v1646_v40, %v1646_v40 }
 0x35d   : > { %852 = vadd.xlane.f32.xlu0 %v851_v42  ;;  %1558 = vmatprep.subr.bf16.mxu0 %v1687_v1 }
 0x35f   : > { %1549 = vmatmul.mubr.msk.bf16.vlgmr.msra.gmra.mrb[12].mxu0 %vm648_vm2, %v864_v43  ;;  %v1641_v43 = vld [vmem:[%s2028_s6] sm:$0xff]  }
 0x360   : > { %v1123_v44 = vpop.permute.xlu1 %1122  ;;  %1560 = vmatprep.mubr.msk.bf16.mxu0 %vm1688_vm0, %v1687_v1  ;;  %1577 = vmatpush3.bf16.msra.mxu1 %v1641_v43 }
 0x361   : > { %v1125_v45 = vsub.f32 %v1880_v59, %v1123_v44  ;;  %v839_v59 = vmul.f32 1.442695, %v838_v16  ;;  %1578 = vmatprep.subr.bf16.mxu1 %v1687_v1 }
 0x363   : > { %v1126_v46 = vmul.f32 1.442695, %v1125_v45 }
 0x364   : > { %v1006_v48 = vpop.permute.xlu1 %1005 }
 0x365   : > { %v1648_v49 = vpop.eup %1647  ;;  %1649 = vpow2.f32 %v1126_v46  ;;  %v1011_v50 = vsel %vm731_vm8, %v1006_v48, 0 }
 0x366   : > { %1559 = vmatpush3.bf16.msra.mxu0 %v1011_v50  ;;  %v991_v51 = vsel %vm648_vm2, %v1648_v49, 0.0  ;;  %v1004_v52 = vpack.c.bf16 %v1648_v49, %v1648_v49  ;;  %1651 = vpow2.f32 %v702_v47 }
 0x367   : > { %992 = vadd.xlane.f32.xlu1 %v991_v51  ;;  %1570 = vmatprep.subr.bf16.mxu0 %v1687_v1  ;;  %1653 = vpow2.f32 %v839_v59 }
 0x368   : > { %v1145_v53 = vpop.permute.xlu1 %1144  ;;  %1655 = vpow2.f32 %v979_v7 }
 0x369   : > { %v1150_v54 = vsel %vm731_vm8, %v1145_v53, 0  ;;  %1561 = vmatmul.mubr.msk.bf16.vlgmr.msra.gmra.mrb[16].mxu0 %vm648_vm2, %v1004_v52  ;;  %1657 = vpow2.f32 %v1118_v13 }
 0x36a   : > { %1571 = vmatpush3.bf16.msra.mxu0 %v1150_v54  ;;  %1572 = vmatprep.mubr.msk.bf16.mxu0 %vm1688_vm0, %v1687_v1 }
 0x36f   : > { %v1650_v55 = vpop.eup %1649 }
 0x370   : > { %v1130_v56 = vsel %vm648_vm2, %v1650_v55, 0.0  ;;  %v1143_v57 = vpack.c.bf16 %v1650_v55, %v1650_v55  ;;  %v1652_v58 = vpop.eup %1651 }
 0x371   : > { %1131 = vadd.xlane.f32.xlu1 %v1130_v56  ;;  %v1654_v60 = vpop.eup %1653  ;;  %v713_v62 = vmul.f32 %v1652_v58, %v712_v61 }
 0x372   : > { %1573 = vmatmul.mubr.msk.bf16.vlgmr.msra.gmra.mrb[20].mxu0 %vm648_vm2, %v1143_v57  ;;  %v1656_v16 = vpop.eup %1655 }
 0x373   : > { %723 = vperm.xlu0 %1625, %v1652_v58   ;;  %v1658_v20 = vpop.eup %1657 }
 0x377   : > { %1630 = vset.pattern.permute.xlu0 %v1694_v0 }
 0x382   : > { %860 = vperm.xlu1 %1626, %v1654_v60  }
 0x386   : > { %1627 = vset.pattern.permute.xlu1 %v1695_v8 }
 0x39a   : > { %v716_v63 = vpop.xlane.xlu1 %715 }
 0x39b   : > { %v717_v2 = vadd.f32 %v716_v63, %v713_v62 }
 0x39d   : > { %719 = vst.msk [vmem:[#allocation4] sm:$0xff] %vm718_vm7, %v717_v2 }
 0x3a4   : > { %v849_v9 = vld [vmem:[#allocation4] sm:$0xff] }
 0x3a5   : > { %v850_v0 = vmul.f32 %v1654_v60, %v849_v9  ;;  %v1302_v9 = vld [vmem:[%s1804_s28] sm:$0xf] }
 0x3bc   : > { %v769_v3 = vpop.f32.mrb[8].mxu0 }
 0x3bd   : > { %v1538_v4 = vpop.f32.mrb[9].mxu0 }
 0x3be   : > { %v772_v5 = vpop.f32.mrb[10].mxu0 }
 0x3bf   : > { %v1539_v6 = vpop.f32.mrb[11].mxu0 }
 0x3ea   : > { %v853_v10 = vpop.xlane.xlu0 %852 }
 0x3eb   : > { %v854_v11 = vadd.f32 %v853_v10, %v850_v0  ;;  %v1468_v0 = vld [vmem:[%s2029_s7] ss:$0 sm:$0xff]  ;;  %v1303_v10 = vunpack.c.l.bf16 %v1302_v9 }
 0x3ed   : > { %856 = vst.msk [vmem:[#allocation4] sm:$0xff] %vm855_vm9, %v854_v11 }
 0x3f2   : > { %v724_v14 = vpop.permute.xlu0 %723 }
 0x3f3   : > { %v726_v15 = vmul.f32 %v724_v14, %v720_v12 }
 0x3f4   : > { %v989_v18 = vld [vmem:[#allocation4] sm:$0xff]  ;;  %v993_v17 = vpop.xlane.xlu1 %992 }
 0x3f5   : > { %v775_v22 = vadd.f32 %v769_v3, %v726_v15  ;;  %v990_v23 = vmul.f32 %v1656_v16, %v989_v18 }
 0x3f7   : > { %776 = vst.msk [vmem:[#allocation5] sm:$0xff] %vm648_vm2, %v775_v22  ;;  %v994_v19 = vadd.f32 %v993_v17, %v990_v23 }
 0x3f9   : > { %996 = vst.msk [vmem:[#allocation4] sm:$0xff] %vm995_vm10, %v994_v19 }
 0x3fe   : > { %v1132_v30 = vpop.xlane.xlu1 %1131  ;;  %v857_v45 = vld [vmem:[#allocation5] sm:$0xff] }
 0x400   : > { %v1128_v24 = vld [vmem:[#allocation4] sm:$0xff] }
 0x401   : > { %v1129_v27 = vmul.f32 %v1658_v20, %v1128_v24 }
 0x402   : > { %v861_v44 = vpop.permute.xlu1 %860 }
 0x403   : > { %v1133_v31 = vadd.f32 %v1132_v30, %v1129_v27  ;;  %v863_v46 = vmul.f32 %v861_v44, %v857_v45 }
 0x405   : > { %1135 = vst.msk [vmem:[#allocation4] sm:$0xff] %vm1134_vm11, %v1133_v31 }
 0x40c   : > { %v1203_v26 = vld [vmem:[#allocation4] sm:$0xff] }
 0x40d   : > { %1659 = vrcp.f32 %v1203_v26  ;;  %v1472_v26 = vld [vmem:[%s2030_s8] ss:$0 sm:$0xff] }
 0x417   : > { %v1660_v28 = vpop.eup %1659 }
 0x418   : > { %1215 = vperm.xlu0 %1630, %v1660_v28  }
 0x41c   : > { %1633 = vset.pattern.permute.xlu0 %v1696_v25 }
 0x432   : > { %v908_v29 = vpop.f32.mrb[12].mxu0 }
 0x433   : > { %915 = vrot.lane.b32.xlu1 %v908_v29, %s1697_s13  ;;  %v1550_v32 = vpop.f32.mrb[13].mxu0  ;;  %v1473_v29 = vld [vmem:[%s2031_s9] ss:$0 sm:$0xff] }
 0x434   : > { %v911_v33 = vpop.f32.mrb[14].mxu0 }
 0x435   : > { %v1551_v34 = vpop.f32.mrb[15].mxu0 }
 0x437   : > { %1000 = vperm.xlu1 %1627, %v1656_v16  }
 0x43b   : > { %1628 = vset.pattern.permute.xlu1 %v1696_v25 }
 0x43c   : > { %v1047_v35 = vpop.f32.mrb[16].mxu0 }
 0x43d   : > { %1054 = vrot.lane.b32.xlu1 %v1047_v35, %s1698_s27  ;;  %v1562_v36 = vpop.f32.mrb[17].mxu0 }
 0x43e   : > { %v1050_v37 = vpop.f32.mrb[18].mxu0 }
 0x43f   : > { %v1563_v38 = vpop.f32.mrb[19].mxu0 }
 0x441   : > { %1139 = vperm.xlu1 %1628, %v1658_v20  }
 0x445   : > { %v1186_v39 = vpop.f32.mrb[20].mxu0  ;;  %1629 = vset.pattern.permute.xlu1 %v1692_v21  ;;  %v1642_v21 = vld [vmem:[%s2028_s6 + $0x8] sm:$0xff]  }
 0x446   : > { %1193 = vrot.lane.b32.xlu1 %v1186_v39, %s1699_s29  ;;  %v1574_v40 = vpop.f32.mrb[21].mxu0  ;;  %1579 = vmatpush3.bf16.msra.mxu1 %v1642_v21 }
 0x447   : > { %v1189_v41 = vpop.f32.mrb[22].mxu0 }
 0x448   : > { %v1575_v42 = vpop.f32.mrb[23].mxu0 }
 0x44a   : > { %1208 = vperm.xlu1 %1629, %v1660_v28  }
 0x44e   : > { %1631 = vset.pattern.permute.xlu1 %v1695_v8 }
 0x44f   : > { %1222 = vperm.xlu1 %1631, %v1660_v28  }
 0x453   : > { %1632 = vset.pattern.permute.xlu1 %v1696_v25 }
 0x454   : > { %1229 = vperm.xlu1 %1632, %v1660_v28  }
 0x497   : > { %v1216_v59 = vpop.permute.xlu0 %1215 }
 0x4a5   : > { %v916_v8 = vpop.permute.xlu1 %915 }
 0x4a6   : > { %v918_v47 = vadd.f32 %v916_v8, %v863_v46 }
 0x4a8   : > { %920 = vst.msk [vmem:[#allocation5] sm:$0xff] %vm919_vm12, %v918_v47 }
 0x4af   : > { %v997_v48 = vld [vmem:[#allocation5] sm:$0xff] }
 0x4b6   : > { %v1001_v25 = vpop.permute.xlu1 %1000 }
 0x4b7   : > { %v1003_v49 = vmul.f32 %v1001_v25, %v997_v48 }
 0x4ba   : > { %v1055_v50 = vpop.permute.xlu1 %1054 }
 0x4bb   : > { %v1057_v51 = vadd.f32 %v1055_v50, %v1003_v49 }
 0x4bd   : > { %1059 = vst.msk [vmem:[#allocation5] sm:$0xff] %vm1058_vm13, %v1057_v51 }
 0x4c0   : > { %v1140_v52 = vpop.permute.xlu1 %1139 }
 0x4c4   : > { %v1136_v53 = vld [vmem:[#allocation5] sm:$0xff]  ;;  %v1194_v54 = vpop.permute.xlu1 %1193 }
 0x4c5   : > { %v1142_v1 = vmul.f32 %v1140_v52, %v1136_v53 }
 0x4c7   : > { %v1196_v55 = vadd.f32 %v1194_v54, %v1142_v1 }
 0x4c9   : > { %1198 = vst.msk [vmem:[#allocation5] sm:$0xff] %vm1197_vm14, %v1196_v55  ;;  %v1209_v56 = vpop.permute.xlu1 %1208 }
 0x4ce   : > { %v1223_v62 = vpop.permute.xlu1 %1222 }
 0x4d0   : > { %v1205_v57 = vld [vmem:[#allocation5] sm:$0xff] }
 0x4d1   : > { %v1211_v58 = vmul.f32 %v1209_v56, %v1205_v57 }
 0x4d3   : > { %1212 = vst.msk [vmem:[#allocation5] sm:$0xff] %vm648_vm2, %v1211_v58  ;;  %v1230_v3 = vpop.permute.xlu1 %1229 }
 0x4da   : > { %v1213_v60 = vld [vmem:[#allocation5] sm:$0xff] }
 0x4db   : > { %v1218_v61 = vmul.f32 %v1216_v59, %v1213_v60 }
 0x4dd   : > { %1219 = vst.msk [vmem:[#allocation5] sm:$0xff] %vm919_vm12, %v1218_v61 }
 0x4e4   : > { %v1220_v63 = vld [vmem:[#allocation5] sm:$0xff] }
 0x4e5   : > { %v1225_v2 = vmul.f32 %v1223_v62, %v1220_v63 }
 0x4e7   : > { %1226 = vst.msk [vmem:[#allocation5] sm:$0xff] %vm1058_vm13, %v1225_v2 }
 0x4ee   : > { %v1227_v4 = vld [vmem:[#allocation5] sm:$0xff] }
 0x4ef   : > { %v1232_v5 = vmul.f32 %v1230_v3, %v1227_v4 }
 0x4f1   : > { %1233 = vst.msk [vmem:[#allocation5] sm:$0xff] %vm1197_vm14, %v1232_v5 }
 0x4f8   : > { %v1234_v6 = vld [vmem:[#allocation5] sm:$0xff] }
 0x4f9   : > { %v1235_v7 = vpack.c.bf16 %v1234_v6, %v1234_v6 }
 0x4fb   : > { %1581 = vmatmul.mubr.msk.bf16.vlgmr.msra.gmra.mrb[20].mxu1 %vm468_vm1, %v1235_v7 }
 0x5ce   : > { %v1296_v11 = vpop.f32.mrb[20].mxu1 }
 0x5cf   : > { %v1297_v12 = vadd.f32 %v1468_v0, %v1296_v11  ;;  %v1582_v13 = vpop.f32.mrb[21].mxu1 }
 0x5d0   : > { %v1299_v14 = vpop.f32.mrb[22].mxu1 }
 0x5d1   : > { %v1583_v15 = vpop.f32.mrb[23].mxu1  ;;  %v1304_v16 = vadd.f32 %v1303_v10, %v1297_v12 }
 0x5d3   : > { %v1305_v18 = vsel %vm468_vm1, %v1304_v16, 0.0 }
 0x5d4   : > { %1306 = vadd.xlane.f32.xlu0 %v1305_v18 }
 0x661   : > { %v1307_v22 = vpop.xlane.xlu0 %1306 }
 0x662   : > { %v1309_v23 = vmul.f32 0.03125, %v1307_v22 }
 0x664   : > { %v1310_v17 = vsub.f32 %v1304_v16, %v1309_v23 }
 0x666   : > { %v1311_v19 = vmul.f32 %v1310_v17, %v1310_v17 }
 0x668   : > { %v1312_v20 = vsel %vm468_vm1, %v1311_v19, 0.0 }
 0x669   : > { %1313 = vadd.xlane.f32.xlu1 %v1312_v20 }
 0x6f6   : > { %v1314_v24 = vpop.xlane.xlu1 %1313 }
 0x6f7   : > { %v1315_v27 = vmul.f32 0.03125, %v1314_v24 }
 0x6f9   : > { %v1316_v30 = vadd.f32 1e-05, %v1315_v27 }
 0x6fb   : > { %1661 = vrsqrt.f32 %v1316_v30 }
 0x705   : > { %v1662_v31 = vpop.eup %1661 }
 0x706   : > { %v1318_v28 = vmul.f32 %v1662_v31, %v1310_v17 }
 0x708   : > { %v1326_v32 = vmul.f32 %v1472_v26, %v1318_v28 }
 0x70a   : > { %v1334_v33 = vadd.f32 %v1473_v29, %v1326_v32 }
 0x70c   : > { %v1335_v34 = vpack.c.bf16 %v1334_v33, %v1334_v33 }
 0x70e   : > { %1337 = vst.msk [vmem:[%s445_s26] sm:$0xf] %vm514_vm3, %v1335_v34 }
 0x70f PF: > { %s20_s15 = sadd.s32 1, %s1685_s15   ;;  %s2033_s13 = smov %s1681_s14 }
 0x710   : > { %p17_p5 = scmp.ge.s32.totalorder %s20_s15, 4   ;;  %s2034_s14 = smov %s2036_s16 }
 0x712   :  { %19 = sbr.rel (!%p17_p5) target bundleno = 2 (0x2), region = 104 }

// kernel: transformer_forward.21
= control target key start
LH: loop header
LB: loop body
LE: loop exit
PB: predicated region body
PF: predicated region fallthrough
CT: control target
= control target key end

     0   :  { %s1767_s13 = smov 0   ;;  %s1769_s14 = smov 0   ;;  %s2042_s0 = inlined_call_operand.vmem [shape: f32[2,1,8], index: 0, kind: input, shape index: {}]   ;;  %s2043_s1 = inlined_call_operand.vmem [shape: bf16[2,8,32], index: 1, kind: input, shape index: {}, may-alias: {1,2}]   ;;  %s2044_s2 = inlined_call_operand.vmem [shape: bf16[2,8,32], index: 2, kind: input, shape index: {}, may-alias: {1,2}]   ;;  %s2045_s3 = inlined_call_operand.vmem [shape: bf16[32,32], index: 3, kind: input, shape index: {}]   ;;  %s2046_s4 = inlined_call_operand.vmem [shape: bf16[32,32], index: 4, kind: input, shape index: {}]   ;;  %s2047_s5 = inlined_call_operand.vmem [shape: bf16[32,32], index: 5, kind: input, shape index: {}]   ;;  %s2048_s6 = inlined_call_operand.vmem [shape: bf16[32,32], index: 6, kind: input, shape index: {}]   ;;  %s2049_s7 = inlined_call_operand.vmem [shape: f32[1,32], index: 7, kind: input, shape index: {}]   ;;  %s2050_s8 = inlined_call_operand.vmem [shape: f32[1,32], index: 8, kind: input, shape index: {}]   ;;  %s2051_s9 = inlined_call_operand.vmem [shape: f32[1,32], index: 9, kind: input, shape index: {}]   ;;  %s2052_s10 = inlined_call_operand.vmem [shape: bf16[2,8,32], index: 10, kind: output, shape index: {}]  }
   0x1   :  { %s1771_s15 = smov 0  }
   0x2 LB: > { %s39_s16 = sadd.s32 1, %s1693_s14  ;;  %p1458_p0 = scmp.ge.s32.totalorder %s1697_s15, 1  ;;  %s1697_s15 = sphi %s1771_s15, %s20_s15   ;;  %s1693_s14 = sphi %s1769_s14, %s2056_s14   ;;  %s1689_s13 = sphi %s1767_s13, %s2055_s13  }
   0x3   : > { %p41_p1 = scmp.ge.s32.totalorder %s39_s16, 2  ;;  %p364_p2 = scmp.lt.s32.totalorder %s1697_s15, 3 }
   0x5   : > { %s2058_s16 = smov (%p41_p1, %s39_s16), 0  ;;  %p365_p3 = pnand %p1458_p0, %p364_p2 }
   0x6   : > { %v1646_v0 = vld [vmem:[%s2045_s3] sm:$0xff] (!%p365_p3)   ;;  %v1699_v1 = vmov (!%p365_p3), 0.0   ;;  %v1648_v3 = vld [vmem:[%s2045_s3 + $0x8] sm:$0xff] (!%p365_p3)   ;;  %vm1700_vm0 = vmmov (!%p365_p3), 0   ;;  %p419_p4 = scmp.lt.s32.totalorder (!%p365_p3), %s1689_s13, 1  ;;  %vm468_vm1 = vcmask (!%p365_p3), 261120   ;;  %v643_v33 = vlaneseq (!%p365_p3) }
   0x7   : > { %368 = sbr.rel (%p365_p3) target bundleno = 1807 (0x70f), region = 60  ;;  %1516 = vmatprep.subr.bf16.mxu0 (!%p365_p3), %v1699_v1  ;;  %1524 = vmatprep.subr.bf16.mxu1 (!%p365_p3), %v1699_v1  ;;  %v1647_v2 = vld [vmem:[%s2046_s4] sm:$0xff] (!%p365_p3)   ;;  %v1649_v4 = vld [vmem:[%s2046_s4 + $0x8] sm:$0xff] (!%p365_p3)   ;;  %519 = vst.msk [vmem:[#allocation5] sm:$0xff] (!%p365_p3), %vm468_vm1, %v1699_v1  ;;  %vm660_vm2 = vcmask (!%p365_p3), 64512   ;;  %vm514_vm3 = vcmask (!%p365_p3), 257024  }
   0x8   : > { %1517 = vmatpush3.bf16.msra.mxu0 (!%p365_p3), %v1646_v0  ;;  %1520 = vmatprep.mubr.msk.bf16.mxu0 (!%p365_p3), %vm1700_vm0, %v1699_v1  ;;  %s1701_s12 = smov (!%p365_p3), 120   ;;  %s1702_s17 = smov (!%p365_p3), 112   ;;  %v1704_v21 = vmov (!%p365_p3), 0   ;;  %v1651_v22 = vld [vmem:[%s2047_s5] sm:$0xff] (!%p365_p3)   ;;  %v1652_v23 = vld [vmem:[%s2047_s5 + $0x8] sm:$0xff] (!%p365_p3)   ;;  %v644_v35 = vshrl.u32 (!%p365_p3), %v643_v33, 7 }
   0x9   : > { %1525 = vmatpush3.bf16.msra.mxu1 (!%p365_p3), %v1647_v2  ;;  %1518 = vmatprep.subr.bf16.mxu0 (!%p365_p3), %v1699_v1  ;;  %s1703_s18 = smov (!%p365_p3), 104   ;;  %v655_v39 = vand.u32 (!%p365_p3), 127, %v643_v33  ;;  %vm516_vm8 = vcmask (!%p365_p3), 31744   ;;  %v1705_v47 = vmov (!%p365_p3), -inf   ;;  %vm730_vm9 = vcmask (!%p365_p3), 7168   ;;  %s1710_s27 = smov (!%p365_p3), 16  }
   0xa   : > { %1526 = vmatprep.subr.bf16.mxu1 (!%p365_p3), %v1699_v1  ;;  %1528 = vmatprep.mubr.msk.bf16.mxu1 (!%p365_p3), %vm1700_vm0, %v1699_v1  ;;  %v645_v36 = vsub.s32 (!%p365_p3), 0, %v644_v35  ;;  %517 = vst.msk [vmem:[#allocation3] sm:$0xff] (!%p365_p3), %vm516_vm8, %v1705_v47  ;;  %518 = vst.msk [vmem:[#allocation4] sm:$0xff] (!%p365_p3), %vm516_vm8, %v1699_v1  ;;  %vm743_vm10 = vcmask (!%p365_p3), 1043456   ;;  %vm867_vm11 = vcmask (!%p365_p3), 15368   ;;  %vm1007_vm12 = vcmask (!%p365_p3), 23568  }
   0xb   : > { %1633 = vset.pattern.permute.xlu1 (!%p365_p3), %v1704_v21  ;;  %vm658_vm6 = vcmp.le.s32.totalorder (!%p365_p3), %v655_v39, %v644_v35  ;;  %vm1146_vm13 = vcmask (!%p365_p3), 31768   ;;  %s1711_s29 = smov (!%p365_p3), 24   ;;  %vm931_vm14 = vcmask (!%p365_p3), 130112   ;;  %vm1070_vm15 = vcmask (!%p365_p3), 195712  }
   0xc   : > { %1519 = vmatpush3.bf16.msra.mxu0 (!%p365_p3), %v1648_v3  ;;  %v1706_v3 = vmov (!%p365_p3), 1  }
   0xd   : > { %1527 = vmatpush3.bf16.msra.mxu1 (!%p365_p3), %v1649_v4  ;;  %1532 = vmatprep.subr.bf16.mxu0 (!%p365_p3), %v1699_v1 }
   0xe   : > { %s2060_s13 = smov (!%p419_p4, %s1689_s13), 1  ;;  %1540 = vmatprep.subr.bf16.mxu1 %v1699_v1  ;;  %1634 = vset.pattern.permute.xlu0 %v1706_v3 }
   0xf   : > { %s1810_s25 = sshll.u32 %s2060_s13, 2  ;;  %s424_s26 = scalar_lea.vmem %s2042_s0, %s2060_s13 }
  0x10   : > { %s1816_s28 = scalar_lea.vmem %s2043_s1, %s1810_s25  ;;  %s438_s11 = scalar_lea.vmem %s2044_s2, %s1810_s25  ;;  %v640_v34 = vld [vmem:[%s424_s26] sm:$0x1] }
  0x11   : > { %v451_v5 = vld [vmem:[%s1816_s28] sm:$0xf]  ;;  %vm641_vm4 = vcmp.ne.f32.partialorder %v640_v34, 0.0  ;;  %v1905_v4 = vld [vmem:[#allocation3] sm:$0xff]  ;;  %s1709_s13 = smov 8   ;;  %s445_s26 = scalar_lea.vmem %s2052_s10, %s1810_s25 }
  0x12   : > { %1521 = vmatmul.mubr.msk.bf16.vlgmr.msra.gmra.mrb[0].mxu0 %vm468_vm1, %v451_v5  ;;  %v520_v6 = vld [vmem:[%s438_s11] sm:$0xf]  ;;  %v642_v37 = vsel %vm641_vm4, 1, %v1704_v21 }
  0x13   : > { %1529 = vmatmul.mubr.msk.bf16.vlgmr.msra.gmra.mrb[0].mxu1 %vm468_vm1, %v520_v6  ;;  %1536 = vmatprep.mubr.msk.bf16.mxu0 %vm1700_vm0, %v1699_v1  ;;  %v646_v38 = vrot.slane %v642_v37, %v645_v36 }
  0x14   : > { %1542 = vmatprep.mubr.msk.bf16.mxu1 %vm1700_vm0, %v1699_v1  ;;  %1533 = vmatpush3.bf16.msra.mxu0 %v1651_v22 }
  0x15   : > { %1534 = vmatprep.subr.bf16.mxu0 %v1699_v1  ;;  %vm647_vm5 = vcmp.eq.s32.totalorder %v646_v38, 1 }
  0x16   : > { %vm1875_vm7 = vmand %vm647_vm5, %vm658_vm6 }
  0x18   : > { %1535 = vmatpush3.bf16.msra.mxu0 %v1652_v23 }
  0x19   : > { %1546 = vmatprep.subr.bf16.mxu0 %v1699_v1 }
  0x1b   : > { %1537 = vmatmul.mubr.msk.bf16.vlgmr.msra.gmra.mrb[4].mxu0 %vm468_vm1, %v520_v6 }
  0x1c   : > { %1548 = vmatprep.mubr.msk.bf16.mxu0 %vm1700_vm0, %v1699_v1 }
  0xe5   : > { %v506_v7 = vpop.f32.mrb[0].mxu0 }
  0xe6   : > { %v512_v8 = vmul.f32 0.35355338, %v506_v7  ;;  %v1522_v9 = vpop.f32.mrb[1].mxu0  ;;  %v575_v10 = vpop.f32.mrb[0].mxu1 }
  0xe7   : > { %v581_v11 = vpack.c.bf16 %v575_v10, %v575_v10  ;;  %v509_v12 = vpop.f32.mrb[2].mxu0  ;;  %v1530_v13 = vpop.f32.mrb[1].mxu1  ;;  %v1707_v10 = vmov 2  }
  0xe8   : > { %v513_v14 = vpack.c.bf16 %v512_v8, %v512_v8  ;;  %v1523_v15 = vpop.f32.mrb[3].mxu0  ;;  %v578_v16 = vpop.f32.mrb[2].mxu1 }
  0xe9   : > { %v1531_v17 = vpop.f32.mrb[3].mxu1  ;;  %796 = vrot.lane.b32.xlu0 %v581_v11, %s1701_s12  ;;  %v665_v18 = vsel %vm660_vm2, %v581_v11, 0  ;;  %936 = vrot.lane.b32.xlu1 %v581_v11, %s1702_s17 }
  0xea   : > { %515 = vst.msk [vmem:[#allocation2] sm:$0xf] %vm514_vm3, %v513_v14  ;;  %1541 = vmatpush3.bf16.xpose.msra.mxu1 %v665_v18 }
  0xeb   : > { %1552 = vmatprep.subr.bf16.mxu1 %v1699_v1 }
  0xee   : > { %v632_v8 = vpop.f32.mrb[4].mxu0 }
  0xef   : > { %v1538_v9 = vpop.f32.mrb[5].mxu0  ;;  %v638_v13 = vpack.c.bf16 %v632_v8, %v632_v8 }
  0xf1   : > { %v639_v19 = vld [vmem:[#allocation2] sm:$0xf]  ;;  %v745_v14 = vsel %vm743_vm10, %v638_v13, 0 }
  0xf2   : > { %1543 = vmatmul.mubr.msk.bf16.vlgmr.msra.gmra.mrb[4].mxu1 %vm660_vm2, %v639_v19  ;;  %v1473_v20 = vcombine.low %v639_v19, %v639_v19  ;;  %1547 = vmatpush3.bf16.msra.mxu0 %v745_v14  ;;  %v732_v14 = vld [vmem:[#allocation5] sm:$0xff] }
  0xf3   : > { %1554 = vmatprep.mubr.msk.bf16.mxu1 %vm1700_vm0, %v1699_v1  ;;  %1558 = vmatprep.subr.bf16.mxu0 %v1699_v1 }
  0xf4   : > { %934 = vrot.lane.b32.xlu1 %v1473_v20, %s1702_s17  ;;  %793 = vrot.lane.b32.xlu0 %v1473_v20, %s1701_s12 }
  0xf8   : > { %1073 = vrot.lane.b32.xlu1 %v1473_v20, %s1703_s18  ;;  %1075 = vrot.lane.b32.xlu0 %v581_v11, %s1703_s18  ;;  %v635_v11 = vpop.f32.mrb[6].mxu0 }
  0xf9   : > { %v1539_v12 = vpop.f32.mrb[7].mxu0 }
 0x15b   : > { %v797_v24 = vpop.permute.xlu0 %796  ;;  %v937_v26 = vpop.permute.xlu1 %936 }
 0x15c   : > { %v802_v25 = vsel %vm660_vm2, %v797_v24, 0  ;;  %v942_v28 = vsel %vm660_vm2, %v937_v26, 0 }
 0x15d   : > { %1553 = vmatpush3.bf16.xpose.msra.mxu1 %v802_v25 }
 0x15e   : > { %1564 = vmatprep.subr.bf16.mxu1 %v1699_v1 }
 0x166   : > { %v794_v27 = vpop.permute.xlu0 %793  ;;  %v935_v30 = vpop.permute.xlu1 %934 }
 0x167   : > { %1555 = vmatmul.mubr.msk.bf16.vlgmr.msra.gmra.mrb[8].mxu1 %vm660_vm2, %v794_v27  ;;  %v1708_v27 = vmov 3  }
 0x168   : > { %1565 = vmatpush3.bf16.xpose.msra.mxu1 %v942_v28  ;;  %1566 = vmatprep.mubr.msk.bf16.mxu1 %vm1700_vm0, %v1699_v1 }
 0x169   : > { %1576 = vmatprep.subr.bf16.mxu1 %v1699_v1 }
 0x16a   : > { %v1076_v29 = vpop.permute.xlu0 %1075  ;;  %v1074_v32 = vpop.permute.xlu1 %1073 }
 0x16b   : > { %v1081_v31 = vsel %vm660_vm2, %v1076_v29, 0 }
 0x16f   : > { %1567 = vmatmul.mubr.msk.bf16.vlgmr.msra.gmra.mrb[12].mxu1 %vm660_vm2, %v935_v30 }
 0x170   : > { %1577 = vmatpush3.bf16.xpose.msra.mxu1 %v1081_v31  ;;  %1578 = vmatprep.mubr.msk.bf16.mxu1 %vm1700_vm0, %v1699_v1 }
 0x171   : > { %1588 = vmatprep.subr.bf16.mxu1 %v1699_v1 }
 0x177   : > { %1579 = vmatmul.mubr.msk.bf16.vlgmr.msra.gmra.mrb[16].mxu1 %vm660_vm2, %v1074_v32 }
 0x178   : > { %1592 = vmatprep.mubr.msk.bf16.mxu1 %vm1700_vm0, %v1699_v1 }
 0x1c5   : > { %v701_v41 = vpop.f32.mrb[4].mxu1 }
 0x1c6   : > { %v1881_v42 = vsel %vm1875_vm7, %v701_v41, -3.535534e+19  ;;  %v1544_v43 = vpop.f32.mrb[5].mxu1 }
 0x1c7   : > { %v704_v44 = vpop.f32.mrb[6].mxu1  ;;  %v709_v45 = vsel %vm660_vm2, %v1881_v42, -inf }
 0x1c8   : > { %v1545_v46 = vpop.f32.mrb[7].mxu1  ;;  %710 = vmax.xlane.f32.xlu0 %v709_v45 }
 0x23a   : > { %v838_v48 = vpop.f32.mrb[8].mxu1 }
 0x23b   : > { %v1888_v49 = vsel %vm1875_vm7, %v838_v48, -3.535534e+19  ;;  %v1556_v50 = vpop.f32.mrb[9].mxu1 }
 0x23c   : > { %v841_v51 = vpop.f32.mrb[10].mxu1  ;;  %v846_v52 = vsel %vm660_vm2, %v1888_v49, -inf }
 0x23d   : > { %v1557_v53 = vpop.f32.mrb[11].mxu1  ;;  %847 = vmax.xlane.f32.xlu1 %v846_v52 }
 0x242   : > { %v978_v54 = vpop.f32.mrb[12].mxu1 }
 0x243   : > { %v1894_v55 = vsel %vm1875_vm7, %v978_v54, -3.535534e+19  ;;  %v1568_v56 = vpop.f32.mrb[13].mxu1 }
 0x244   : > { %v981_v57 = vpop.f32.mrb[14].mxu1  ;;  %v986_v58 = vsel %vm660_vm2, %v1894_v55, -inf }
 0x245   : > { %v1569_v59 = vpop.f32.mrb[15].mxu1  ;;  %987 = vmax.xlane.f32.xlu0 %v986_v58 }
 0x24a   : > { %v1117_v60 = vpop.f32.mrb[16].mxu1 }
 0x24b   : > { %v1900_v61 = vsel %vm1875_vm7, %v1117_v60, -3.535534e+19  ;;  %v1580_v62 = vpop.f32.mrb[17].mxu1 }
 0x24c   : > { %v1120_v63 = vpop.f32.mrb[18].mxu1  ;;  %v1125_v0 = vsel %vm660_vm2, %v1900_v61, -inf }
 0x24d   : > { %v1581_v2 = vpop.f32.mrb[19].mxu1  ;;  %1126 = vmax.xlane.f32.xlu0 %v1125_v0  ;;  %v724_v63 = vld [vmem:[#allocation4] sm:$0xff] }
 0x255   : > { %v711_v5 = vpop.xlane.xlu0 %710 }
 0x256   : > { %v1908_v6 = vmax.f32 %v1905_v4, %v711_v5 }
 0x258   : > { %v713_v7 = vsub.f32 %v1905_v4, %v1908_v6  ;;  %789 = vst.msk [vmem:[#allocation3] sm:$0xff] %vm730_vm9, %v1908_v6  ;;  %718 = vperm.xlu1 %1633, %v1908_v6  }
 0x25c   : > { %1635 = vset.pattern.permute.xlu1 %v1707_v10 }
 0x25f   : > { %v1918_v16 = vld [vmem:[#allocation3] sm:$0xff] }
 0x2ca   : > { %v848_v15 = vpop.xlane.xlu1 %847 }
 0x2cb   : > { %v1921_v17 = vmax.f32 %v1918_v16, %v848_v15 }
 0x2cd   : > { %v850_v18 = vsub.f32 %v1918_v16, %v1921_v17  ;;  %933 = vst.msk [vmem:[#allocation3] sm:$0xff] %vm867_vm11, %v1921_v17  ;;  %855 = vperm.xlu0 %1634, %v1921_v17  }
 0x2d1   : > { %1637 = vset.pattern.permute.xlu0 %v1704_v21 }
 0x2d2   : > { %v988_v20 = vpop.xlane.xlu0 %987 }
 0x2d4   : > { %v1929_v19 = vld [vmem:[#allocation3] sm:$0xff] }
 0x2d5   : > { %v1932_v22 = vmax.f32 %v1929_v19, %v988_v20 }
 0x2d7   : > { %v990_v23 = vsub.f32 %v1929_v19, %v1932_v22  ;;  %1072 = vst.msk [vmem:[#allocation3] sm:$0xff] %vm1007_vm12, %v1932_v22  ;;  %v719_v24 = vpop.permute.xlu1 %718  ;;  %995 = vperm.xlu1 %1635, %v1932_v22  }
 0x2d8   : > { %v721_v25 = vsub.f32 %v1881_v42, %v719_v24 }
 0x2d9   : > { %v991_v9 = vmul.f32 1.442695, %v990_v23 }
 0x2da   : > { %v722_v26 = vmul.f32 1.442695, %v721_v25  ;;  %v1127_v29 = vpop.xlane.xlu0 %1126 }
 0x2db   : > { %878 = vrot.lane.b32.xlu1 %v638_v13, %s1701_s12 }
 0x2dc   : > { %1655 = vpow2.f32 %v722_v26  ;;  %1636 = vset.pattern.permute.xlu1 %v1708_v27 }
 0x2de   : > { %v1942_v28 = vld [vmem:[#allocation3] sm:$0xff] }
 0x2df   : > { %v1945_v30 = vmax.f32 %v1942_v28, %v1127_v29 }
 0x2e1   : > { %v1129_v31 = vsub.f32 %v1942_v28, %v1945_v30  ;;  %1211 = vst.msk [vmem:[#allocation3] sm:$0xff] %vm1146_vm13, %v1945_v30  ;;  %1134 = vperm.xlu1 %1636, %v1945_v30  }
 0x2e3   : > { %v1130_v15 = vmul.f32 1.442695, %v1129_v31 }
 0x2e5   : > { %1017 = vrot.lane.b32.xlu1 %v638_v13, %s1702_s17 }
 0x2e6   : > { %v1656_v32 = vpop.eup %1655  ;;  %1638 = vset.pattern.permute.xlu1 %v1706_v3 }
 0x2e7   : > { %v739_v33 = vpack.c.bf16 %v1656_v32, %v1656_v32  ;;  %v726_v34 = vsel %vm660_vm2, %v1656_v32, 0.0 }
 0x2e9   : > { %1549 = vmatmul.mubr.msk.bf16.vlgmr.msra.gmra.mrb[8].mxu0 %vm660_vm2, %v739_v33  ;;  %1156 = vrot.lane.b32.xlu1 %v638_v13, %s1703_s18 }
 0x2ea   : > { %1560 = vmatprep.mubr.msk.bf16.mxu0 %vm1700_vm0, %v1699_v1 }
 0x30d   : > { %727 = vadd.xlane.f32.xlu1 %v726_v34 }
 0x34c   : > { %v856_v35 = vpop.permute.xlu0 %855 }
 0x34d   : > { %v858_v36 = vsub.f32 %v1888_v49, %v856_v35  ;;  %v714_v49 = vmul.f32 1.442695, %v713_v7 }
 0x34f   : > { %v859_v37 = vmul.f32 1.442695, %v858_v36 }
 0x351   : > { %1657 = vpow2.f32 %v859_v37 }
 0x356   : > { %v996_v38 = vpop.permute.xlu1 %995 }
 0x357   : > { %v998_v39 = vsub.f32 %v1894_v55, %v996_v38 }
 0x359   : > { %v999_v40 = vmul.f32 1.442695, %v998_v39 }
 0x35a   : > { %v879_v41 = vpop.permute.xlu1 %878 }
 0x35b   : > { %v1658_v42 = vpop.eup %1657  ;;  %1659 = vpow2.f32 %v999_v40  ;;  %v884_v43 = vsel %vm743_vm10, %v879_v41, 0 }
 0x35c   : > { %1559 = vmatpush3.bf16.msra.mxu0 %v884_v43  ;;  %v863_v44 = vsel %vm660_vm2, %v1658_v42, 0.0  ;;  %v876_v45 = vpack.c.bf16 %v1658_v42, %v1658_v42 }
 0x35d   : > { %864 = vadd.xlane.f32.xlu0 %v863_v44  ;;  %1570 = vmatprep.subr.bf16.mxu0 %v1699_v1 }
 0x35f   : > { %1561 = vmatmul.mubr.msk.bf16.vlgmr.msra.gmra.mrb[12].mxu0 %vm660_vm2, %v876_v45  ;;  %v1653_v45 = vld [vmem:[%s2048_s6] sm:$0xff]  }
 0x360   : > { %v1135_v46 = vpop.permute.xlu1 %1134  ;;  %1572 = vmatprep.mubr.msk.bf16.mxu0 %vm1700_vm0, %v1699_v1  ;;  %1589 = vmatpush3.bf16.msra.mxu1 %v1653_v45 }
 0x361   : > { %v1137_v47 = vsub.f32 %v1900_v61, %v1135_v46  ;;  %v851_v61 = vmul.f32 1.442695, %v850_v18  ;;  %1590 = vmatprep.subr.bf16.mxu1 %v1699_v1 }
 0x363   : > { %v1138_v48 = vmul.f32 1.442695, %v1137_v47 }
 0x364   : > { %v1018_v50 = vpop.permute.xlu1 %1017 }
 0x365   : > { %v1660_v51 = vpop.eup %1659  ;;  %1661 = vpow2.f32 %v1138_v48  ;;  %v1023_v52 = vsel %vm743_vm10, %v1018_v50, 0 }
 0x366   : > { %1571 = vmatpush3.bf16.msra.mxu0 %v1023_v52  ;;  %v1003_v53 = vsel %vm660_vm2, %v1660_v51, 0.0  ;;  %v1016_v54 = vpack.c.bf16 %v1660_v51, %v1660_v51  ;;  %1663 = vpow2.f32 %v714_v49 }
 0x367   : > { %1004 = vadd.xlane.f32.xlu1 %v1003_v53  ;;  %1582 = vmatprep.subr.bf16.mxu0 %v1699_v1  ;;  %1665 = vpow2.f32 %v851_v61 }
 0x368   : > { %v1157_v55 = vpop.permute.xlu1 %1156  ;;  %1667 = vpow2.f32 %v991_v9 }
 0x369   : > { %v1162_v56 = vsel %vm743_vm10, %v1157_v55, 0  ;;  %1573 = vmatmul.mubr.msk.bf16.vlgmr.msra.gmra.mrb[16].mxu0 %vm660_vm2, %v1016_v54  ;;  %1669 = vpow2.f32 %v1130_v15 }
 0x36a   : > { %1583 = vmatpush3.bf16.msra.mxu0 %v1162_v56  ;;  %1584 = vmatprep.mubr.msk.bf16.mxu0 %vm1700_vm0, %v1699_v1  ;;  %vm1209_vm0 = vcmask 261312  }
 0x36f   : > { %v1662_v57 = vpop.eup %1661 }
 0x370   : > { %v1142_v58 = vsel %vm660_vm2, %v1662_v57, 0.0  ;;  %v1155_v59 = vpack.c.bf16 %v1662_v57, %v1662_v57  ;;  %v1664_v60 = vpop.eup %1663 }
 0x371   : > { %1143 = vadd.xlane.f32.xlu1 %v1142_v58  ;;  %v1666_v62 = vpop.eup %1665  ;;  %v725_v0 = vmul.f32 %v1664_v60, %v724_v63 }
 0x372   : > { %1585 = vmatmul.mubr.msk.bf16.vlgmr.msra.gmra.mrb[20].mxu0 %vm660_vm2, %v1155_v59  ;;  %v1668_v18 = vpop.eup %1667 }
 0x373   : > { %735 = vperm.xlu0 %1637, %v1664_v60   ;;  %v1670_v23 = vpop.eup %1669 }
 0x377   : > { %1642 = vset.pattern.permute.xlu0 %v1706_v3 }
 0x382   : > { %872 = vperm.xlu1 %1638, %v1666_v62  }
 0x386   : > { %1639 = vset.pattern.permute.xlu1 %v1707_v10 }
 0x39a   : > { %v728_v2 = vpop.xlane.xlu1 %727 }
 0x39b   : > { %v729_v4 = vadd.f32 %v728_v2, %v725_v0 }
 0x39d   : > { %731 = vst.msk [vmem:[#allocation4] sm:$0xff] %vm730_vm9, %v729_v4 }
 0x3a4   : > { %v861_v11 = vld [vmem:[#allocation4] sm:$0xff] }
 0x3a5   : > { %v862_v3 = vmul.f32 %v1666_v62, %v861_v11  ;;  %v1314_v11 = vld [vmem:[%s1816_s28] sm:$0xf] }
 0x3bc   : > { %v781_v5 = vpop.f32.mrb[8].mxu0 }
 0x3bd   : > { %v1550_v6 = vpop.f32.mrb[9].mxu0 }
 0x3be   : > { %v784_v7 = vpop.f32.mrb[10].mxu0 }
 0x3bf   : > { %v1551_v8 = vpop.f32.mrb[11].mxu0 }
 0x3ea   : > { %v865_v12 = vpop.xlane.xlu0 %864 }
 0x3eb   : > { %v866_v13 = vadd.f32 %v865_v12, %v862_v3  ;;  %v1480_v3 = vld [vmem:[%s2049_s7] ss:$0 sm:$0xff]  ;;  %v1315_v12 = vunpack.c.l.bf16 %v1314_v11 }
 0x3ed   : > { %868 = vst.msk [vmem:[#allocation4] sm:$0xff] %vm867_vm11, %v866_v13 }
 0x3f2   : > { %v736_v16 = vpop.permute.xlu0 %735 }
 0x3f3   : > { %v738_v17 = vmul.f32 %v736_v16, %v732_v14 }
 0x3f4   : > { %v1001_v20 = vld [vmem:[#allocation4] sm:$0xff]  ;;  %v1005_v19 = vpop.xlane.xlu1 %1004 }
 0x3f5   : > { %v787_v24 = vadd.f32 %v781_v5, %v738_v17  ;;  %v1002_v25 = vmul.f32 %v1668_v18, %v1001_v20 }
 0x3f7   : > { %788 = vst.msk [vmem:[#allocation5] sm:$0xff] %vm660_vm2, %v787_v24  ;;  %v1006_v22 = vadd.f32 %v1005_v19, %v1002_v25 }
 0x3f9   : > { %1008 = vst.msk [vmem:[#allocation4] sm:$0xff] %vm1007_vm12, %v1006_v22 }
 0x3fe   : > { %v1144_v32 = vpop.xlane.xlu1 %1143  ;;  %v869_v47 = vld [vmem:[#allocation5] sm:$0xff] }
 0x400   : > { %v1140_v26 = vld [vmem:[#allocation4] sm:$0xff] }
 0x401   : > { %v1141_v29 = vmul.f32 %v1670_v23, %v1140_v26 }
 0x402   : > { %v873_v46 = vpop.permute.xlu1 %872 }
 0x403   : > { %v1145_v33 = vadd.f32 %v1144_v32, %v1141_v29  ;;  %v875_v48 = vmul.f32 %v873_v46, %v869_v47 }
 0x405   : > { %1147 = vst.msk [vmem:[#allocation4] sm:$0xff] %vm1146_vm13, %v1145_v33 }
 0x40c   : > { %v1215_v28 = vld [vmem:[#allocation4] sm:$0xff] }
 0x40d   : > { %1671 = vrcp.f32 %v1215_v28  ;;  %v1484_v28 = vld [vmem:[%s2050_s8] ss:$0 sm:$0xff] }
 0x417   : > { %v1672_v30 = vpop.eup %1671 }
 0x418   : > { %1227 = vperm.xlu0 %1642, %v1672_v30  }
 0x41c   : > { %1645 = vset.pattern.permute.xlu0 %v1708_v27 }
 0x432   : > { %v920_v31 = vpop.f32.mrb[12].mxu0 }
 0x433   : > { %927 = vrot.lane.b32.xlu1 %v920_v31, %s1709_s13  ;;  %v1562_v34 = vpop.f32.mrb[13].mxu0  ;;  %v1485_v31 = vld [vmem:[%s2051_s9] ss:$0 sm:$0xff] }
 0x434   : > { %v923_v35 = vpop.f32.mrb[14].mxu0 }
 0x435   : > { %v1563_v36 = vpop.f32.mrb[15].mxu0 }
 0x437   : > { %1012 = vperm.xlu1 %1639, %v1668_v18  }
 0x43b   : > { %1640 = vset.pattern.permute.xlu1 %v1708_v27 }
 0x43c   : > { %v1059_v37 = vpop.f32.mrb[16].mxu0 }
 0x43d   : > { %1066 = vrot.lane.b32.xlu1 %v1059_v37, %s1710_s27  ;;  %v1574_v38 = vpop.f32.mrb[17].mxu0 }
 0x43e   : > { %v1062_v39 = vpop.f32.mrb[18].mxu0 }
 0x43f   : > { %v1575_v40 = vpop.f32.mrb[19].mxu0 }
 0x441   : > { %1151 = vperm.xlu1 %1640, %v1670_v23  }
 0x445   : > { %v1198_v41 = vpop.f32.mrb[20].mxu0  ;;  %1641 = vset.pattern.permute.xlu1 %v1704_v21  ;;  %v1654_v21 = vld [vmem:[%s2048_s6 + $0x8] sm:$0xff]  }
 0x446   : > { %1205 = vrot.lane.b32.xlu1 %v1198_v41, %s1711_s29  ;;  %v1586_v42 = vpop.f32.mrb[21].mxu0  ;;  %1591 = vmatpush3.bf16.msra.mxu1 %v1654_v21 }
 0x447   : > { %v1201_v43 = vpop.f32.mrb[22].mxu0 }
 0x448   : > { %v1587_v44 = vpop.f32.mrb[23].mxu0 }
 0x44a   : > { %1220 = vperm.xlu1 %1641, %v1672_v30  }
 0x44e   : > { %1643 = vset.pattern.permute.xlu1 %v1707_v10 }
 0x44f   : > { %1234 = vperm.xlu1 %1643, %v1672_v30  }
 0x453   : > { %1644 = vset.pattern.permute.xlu1 %v1708_v27 }
 0x454   : > { %1241 = vperm.xlu1 %1644, %v1672_v30  }
 0x497   : > { %v1228_v61 = vpop.permute.xlu0 %1227 }
 0x4a5   : > { %v928_v10 = vpop.permute.xlu1 %927 }
 0x4a6   : > { %v930_v49 = vadd.f32 %v928_v10, %v875_v48 }
 0x4a8   : > { %932 = vst.msk [vmem:[#allocation5] sm:$0xff] %vm931_vm14, %v930_v49 }
 0x4af   : > { %v1009_v50 = vld [vmem:[#allocation5] sm:$0xff] }
 0x4b6   : > { %v1013_v27 = vpop.permute.xlu1 %1012 }
 0x4b7   : > { %v1015_v51 = vmul.f32 %v1013_v27, %v1009_v50 }
 0x4ba   : > { %v1067_v52 = vpop.permute.xlu1 %1066 }
 0x4bb   : > { %v1069_v53 = vadd.f32 %v1067_v52, %v1015_v51 }
 0x4bd   : > { %1071 = vst.msk [vmem:[#allocation5] sm:$0xff] %vm1070_vm15, %v1069_v53 }
 0x4c0   : > { %v1152_v54 = vpop.permute.xlu1 %1151 }
 0x4c4   : > { %v1148_v55 = vld [vmem:[#allocation5] sm:$0xff]  ;;  %v1206_v56 = vpop.permute.xlu1 %1205 }
 0x4c5   : > { %v1154_v1 = vmul.f32 %v1152_v54, %v1148_v55 }
 0x4c7   : > { %v1208_v57 = vadd.f32 %v1206_v56, %v1154_v1 }
 0x4c9   : > { %1210 = vst.msk [vmem:[#allocation5] sm:$0xff] %vm1209_vm0, %v1208_v57  ;;  %v1221_v58 = vpop.permute.xlu1 %1220 }
 0x4ce   : > { %v1235_v0 = vpop.permute.xlu1 %1234 }
 0x4d0   : > { %v1217_v59 = vld [vmem:[#allocation5] sm:$0xff] }
 0x4d1   : > { %v1223_v60 = vmul.f32 %v1221_v58, %v1217_v59 }
 0x4d3   : > { %1224 = vst.msk [vmem:[#allocation5] sm:$0xff] %vm660_vm2, %v1223_v60  ;;  %v1242_v5 = vpop.permute.xlu1 %1241 }
 0x4da   : > { %v1225_v62 = vld [vmem:[#allocation5] sm:$0xff] }
 0x4db   : > { %v1230_v63 = vmul.f32 %v1228_v61, %v1225_v62 }
 0x4dd   : > { %1231 = vst.msk [vmem:[#allocation5] sm:$0xff] %vm931_vm14, %v1230_v63 }
 0x4e4   : > { %v1232_v2 = vld [vmem:[#allocation5] sm:$0xff] }
 0x4e5   : > { %v1237_v4 = vmul.f32 %v1235_v0, %v1232_v2 }
 0x4e7   : > { %1238 = vst.msk [vmem:[#allocation5] sm:$0xff] %vm1070_vm15, %v1237_v4 }
 0x4ee   : > { %v1239_v6 = vld [vmem:[#allocation5] sm:$0xff] }
 0x4ef   : > { %v1244_v7 = vmul.f32 %v1242_v5, %v1239_v6 }
 0x4f1   : > { %1245 = vst.msk [vmem:[#allocation5] sm:$0xff] %vm1209_vm0, %v1244_v7 }
 0x4f8   : > { %v1246_v8 = vld [vmem:[#allocation5] sm:$0xff] }
 0x4f9   : > { %v1247_v9 = vpack.c.bf16 %v1246_v8, %v1246_v8 }
 0x4fb   : > { %1593 = vmatmul.mubr.msk.bf16.vlgmr.msra.gmra.mrb[20].mxu1 %vm468_vm1, %v1247_v9 }
 0x5ce   : > { %v1308_v13 = vpop.f32.mrb[20].mxu1 }
 0x5cf   : > { %v1309_v14 = vadd.f32 %v1480_v3, %v1308_v13  ;;  %v1594_v15 = vpop.f32.mrb[21].mxu1 }
 0x5d0   : > { %v1311_v16 = vpop.f32.mrb[22].mxu1 }
 0x5d1   : > { %v1595_v17 = vpop.f32.mrb[23].mxu1  ;;  %v1316_v18 = vadd.f32 %v1315_v12, %v1309_v14 }
 0x5d3   : > { %v1317_v20 = vsel %vm468_vm1, %v1316_v18, 0.0 }
 0x5d4   : > { %1318 = vadd.xlane.f32.xlu0 %v1317_v20 }
 0x661   : > { %v1319_v24 = vpop.xlane.xlu0 %1318 }
 0x662   : > { %v1321_v25 = vmul.f32 0.03125, %v1319_v24 }
 0x664   : > { %v1322_v19 = vsub.f32 %v1316_v18, %v1321_v25 }
 0x666   : > { %v1323_v22 = vmul.f32 %v1322_v19, %v1322_v19 }
 0x668   : > { %v1324_v23 = vsel %vm468_vm1, %v1323_v22, 0.0 }
 0x669   : > { %1325 = vadd.xlane.f32.xlu1 %v1324_v23 }
 0x6f6   : > { %v1326_v26 = vpop.xlane.xlu1 %1325 }
 0x6f7   : > { %v1327_v29 = vmul.f32 0.03125, %v1326_v26 }
 0x6f9   : > { %v1328_v32 = vadd.f32 1e-05, %v1327_v29 }
 0x6fb   : > { %1673 = vrsqrt.f32 %v1328_v32 }
 0x705   : > { %v1674_v33 = vpop.eup %1673 }
 0x706   : > { %v1330_v30 = vmul.f32 %v1674_v33, %v1322_v19 }
 0x708   : > { %v1338_v34 = vmul.f32 %v1484_v28, %v1330_v30 }
 0x70a   : > { %v1346_v35 = vadd.f32 %v1485_v31, %v1338_v34 }
 0x70c   : > { %v1347_v36 = vpack.c.bf16 %v1346_v35, %v1346_v35 }
 0x70e   : > { %1349 = vst.msk [vmem:[%s445_s26] sm:$0xf] %vm514_vm3, %v1347_v36 }
 0x70f PF: > { %s20_s15 = sadd.s32 1, %s1697_s15   ;;  %s2055_s13 = smov %s1693_s14 }
 0x710   : > { %p17_p5 = scmp.ge.s32.totalorder %s20_s15, 4   ;;  %s2056_s14 = smov %s2058_s16 }
 0x712   :  { %19 = sbr.rel (!%p17_p5) target bundleno = 2 (0x2), region = 104 }

// kernel: transformer_forward.29
= control target key start
LH: loop header
LB: loop body
LE: loop exit
PB: predicated region body
PF: predicated region fallthrough
CT: control target
= control target key end

     0   :  { %v208_v1 = vmov 0.0   ;;  %vm209_vm0 = vmmov 0   ;;  %vm20_vm1 = vcmask 130048   ;;  %s267_s0 = inlined_call_operand.vmem [shape: bf16[16,32], index: 0, kind: input, shape index: {}]   ;;  %s268_s1 = inlined_call_operand.vmem [shape: bf16[32,16], index: 1, kind: input, shape index: {}]   ;;  %s269_s2 = inlined_call_operand.vmem [shape: f32[1,16], index: 2, kind: input, shape index: {}]   ;;  %s270_s3 = inlined_call_operand.hbm [shape: f32[16,16], index: 3, kind: output, shape index: {}]  }
   0x1   :  { %v173_v0 = vld [vmem:[%s268_s1] sm:$0xff]   ;;  %160 = vmatprep.subr.bf16.mxu0 %v208_v1  ;;  %v174_v2 = vld [vmem:[%s268_s1 + $0x8] sm:$0xff]   ;;  %164 = vmatprep.mubr.msk.bf16.mxu0 %vm209_vm0, %v208_v1 }
   0x2   :  { %161 = vmatpush3.bf16.msra.mxu0 %v173_v0 }
   0x3   :  { %162 = vmatprep.subr.bf16.mxu0 %v208_v1 }
   0x4   :  { %8 = vsyncpa [#allocation4], 0  ;;  %21 = vst.msk [vmem:[#allocation2] sm:$0xff] %vm20_vm1, %v208_v1  ;;  %v175_v3 = vld [vmem:[%s267_s0] sm:$0xff]   ;;  %vm48_vm2 = vcmask 261120   ;;  %s210_s0 = smov [#allocation3]  }
   0x5   :  { %22 = vst.msk [vmem:[#allocation2 + $0x8] sm:$0xff] %vm20_vm1, %v208_v1  ;;  %v156_v12 = vld [vmem:[%s269_s2] ss:$0 sm:$0xff]  ;;  %s141_s2 = sshll.u32 %s210_s0, 4  ;;  %s142_s2 = int_to_ptr.vmem [resolvable:$true] %s141_s2 }
   0x6   :  { %163 = vmatpush3.bf16.msra.mxu0 %v174_v2  ;;  %s184_s19 = scalar_lea.vmem %s142_s2, 256  ;;  %p189_p1 = scmp.lt.s32.totalorder %s142_s2, %s142_s2 }
   0x7   :  { %p185_p0 = scmp.ne.s32.totalorder %s142_s2, %s184_s19  ;;  %p190_p2 = scmp.lt.s32.totalorder %s184_s19, %s184_s19 }
   0x9   :  { %165 = vmatmul.mubr.msk.bf16.vlgmr.msra.gmra.mrb[0].mxu0 %vm48_vm2, %v175_v3  ;;  %p191_p3 = por %p190_p2, %p189_p1 }
   0xb   :  { %v23_v4 = vld [vmem:[#allocation2] sm:$0xff]  ;;  %p192_p4 = pnand %p191_p3, %p185_p0 }
   0xc   :  { %v24_v6 = vld [vmem:[#allocation2 + $0x8] sm:$0xff] }
  0xdc   :  { %v86_v5 = vpop.f32.mrb[0].mxu0 }
  0xdd   :  { %v93_v7 = vadd.f32 %v86_v5, %v23_v4  ;;  %v166_v8 = vpop.f32.mrb[1].mxu0 }
  0xde   :  { %v89_v9 = vpop.f32.mrb[2].mxu0 }
  0xdf   :  { %96 = vst.msk [vmem:[#allocation2] sm:$0xff] %vm20_vm1, %v93_v7  ;;  %v94_v10 = vadd.f32 %v89_v9, %v24_v6  ;;  %v167_v11 = vpop.f32.mrb[3].mxu0 }
  0xe1   :  { %97 = vst.msk [vmem:[#allocation2 + $0x8] sm:$0xff] %vm20_vm1, %v94_v10 }
  0xe6   :  { %v101_v13 = vld [vmem:[#allocation2] sm:$0xff] }
  0xe7   :  { %v110_v14 = vadd.f32 %v156_v12, %v101_v13 }
  0xe8   :  { %v102_v15 = vld [vmem:[#allocation2 + $0x8] sm:$0xff] }
  0xe9   :  { %v112_v16 = vsel %vm20_vm1, %v110_v14, -inf  ;;  %v111_v17 = vadd.f32 %v156_v12, %v102_v15 }
  0xea   :  { %113 = vmax.xlane.f32.xlu0 %v112_v16 }
  0xeb   :  { %v115_v18 = vsel %vm20_vm1, %v111_v17, -inf }
  0xee   :  { %116 = vmax.xlane.f32.xlu0 %v115_v18 }
 0x177   :  { %v114_v19 = vpop.xlane.xlu0 %113 }
 0x178   :  { %v118_v20 = vsub.f32 %v110_v14, %v114_v19 }
 0x17a   :  { %v120_v21 = vmul.f32 1.442695, %v118_v20 }
 0x17b   :  { %v117_v22 = vpop.xlane.xlu0 %116 }
 0x17c   :  { %176 = vpow2.f32 %v120_v21  ;;  %v119_v23 = vsub.f32 %v111_v17, %v117_v22 }
 0x17e   :  { %v122_v24 = vmul.f32 1.442695, %v119_v23 }
 0x180   :  { %178 = vpow2.f32 %v122_v24 }
 0x186   :  { %v177_v25 = vpop.eup %176 }
 0x187   :  { %v124_v26 = vsel %vm20_vm1, %v177_v25, 0.0 }
 0x188   :  { %125 = vadd.xlane.f32.xlu1 %v124_v26 }
 0x18a   :  { %v179_v27 = vpop.eup %178 }
 0x18b   :  { %v127_v28 = vsel %vm20_vm1, %v179_v27, 0.0 }
 0x18c   :  { %128 = vadd.xlane.f32.xlu1 %v127_v28 }
 0x215   :  { %v126_v29 = vpop.xlane.xlu1 %125 }
 0x216   :  { %180 = vrcp.f32 %v126_v29 }
 0x219   :  { %v129_v30 = vpop.xlane.xlu1 %128 }
 0x21a   :  { %182 = vrcp.f32 %v129_v30 }
 0x220   :  { %v181_v31 = vpop.eup %180 }
 0x221   :  { %v131_v32 = vmul.f32 %v181_v31, %v177_v25 }
 0x223   :  { %134 = vst.msk [vmem:[#allocation3] sm:$0xff] %vm20_vm1, %v131_v32 }
 0x224   :  { %v183_v33 = vpop.eup %182 }
 0x225   :  { %v133_v34 = vmul.f32 %v183_v33, %v179_v27 }
 0x227   :  { %135 = vst.msk [vmem:[#allocation3 + $0x8] sm:$0xff] %vm20_vm1, %v133_v34 }
 0x228   :  { %195 = shalt.err (!%p192_p4)
}
 0x229   :  { %s196_s22 = scalar_lea.hbm %s270_s3, 256 }
 0x22a   :  { %p197_p5 = scmp.ne.s32.totalorder %s270_s3, %s196_s22  ;;  %p200_p6 = scmp.lt.u32.totalorder %s196_s22, %s270_s3 }
 0x22c   :  { %p202_p7 = pnand %p200_p6, %p197_p5 }
 0x22e   :  { %205 = shalt.err (!%p202_p7)
}
 0x22f   :  { %s211_s27 = smov 128   ;;  %s212_s28 = smov 8  }
 0x230   :  { %147 = dma.vmem_to_hbm [thread:$0]  %s142_s2, 256, %s270_s3, [#allocation4], %s211_s27, %s211_s27, %s212_s28  }
 0x231   :  { %206 = dma.done.wait [#allocation4], 256  }
 0x232   :  { %207 = vsyncadd [#allocation4], 4294967040 }
 0x233   :  { %151 = vsyncpa [#allocation4], 1 }

</bundles_post_ra>
